<compile_context>
chip_gen: v7x
topology: tpu7x:2x2x1
jax: 0.10.0
libtpu: 0.0.40
codegen_flags: <defaults>
</compile_context>

<pallas_src>
import math
from functools import partial

import jax
import jax.numpy as jnp
from jax.experimental import pallas as pl
from jax.experimental.pallas import tpu as pltpu

# ---- model dims (small, synthetic) ----
B = 2            # batch
S = 8            # sequence length
D = 128          # d_model (BERT hidden_size)
H = 4            # attention heads
DH = D // H      # head dim
FF = 4 * D       # FFN intermediate size
V = 64           # vocab size
N_LABELS = 8     # n_labels
HID = D          # params.hidden_dim == -1  ->  d_model
N_LAYERS = 2     # encoder layers
LN_EPS = 1e-12
PADL = 128       # lane-dense padded label width for the scores output
BS = B * S


def _layernorm(x, g, b):
    mu = jnp.mean(x, axis=-1, keepdims=True)
    xc = x - mu
    var = jnp.mean(xc * xc, axis=-1, keepdims=True)
    return xc * jax.lax.rsqrt(var + LN_EPS) * g + b


# ----------------------------- fused Pallas kernel ---------------------------

def bert_fused_kernel(y_ref,                                   # SMEM (B,) int32
                      emb_ref, eg_ref, eb_ref,                 # (BS,D), (1,D), (1,D)
                      wqkv_ref, bqkv_ref, wo_ref, bo_ref,      # stacked per-layer
                      ln1g_ref, ln1b_ref, w1_ref, b1_ref,
                      w2_ref, b2_ref, ln2g_ref, ln2b_ref,
                      hw1_ref, hb1_ref, hw2_ref, hb2_ref,      # head (padded W2/b2)
                      scores_ref, loss_ref):
    # ---- embeddings LayerNorm (whole batch at once, (BS, D)) ----
    h = _layernorm(emb_ref[...], eg_ref[...], eb_ref[...])

    scale = 1.0 / math.sqrt(DH)
    for l in range(N_LAYERS):                                  # static unroll (2)
        # fused QKV projection: one (BS, D) @ (D, 3D) dot
        qkv = jnp.dot(h, wqkv_ref[l],
                      preferred_element_type=jnp.float32) + bqkv_ref[l]  # (BS, 3D)

        # self-attention, per batch row (B=2, static), per head (H=4, static)
        ctx_rows = []
        for b in range(B):
            qkv_b = qkv[b * S:(b + 1) * S, :]                  # (S, 3D)
            ctx_heads = []
            for hd in range(H):
                qh = qkv_b[:, hd * DH:(hd + 1) * DH]           # (S, DH)
                kh = qkv_b[:, D + hd * DH: D + (hd + 1) * DH]
                vh = qkv_b[:, 2 * D + hd * DH: 2 * D + (hd + 1) * DH]
                s = jnp.dot(qh, kh.T,
                            preferred_element_type=jnp.float32) * scale  # (S, S)
                s = s - jnp.max(s, axis=-1, keepdims=True)
                p = jnp.exp(s)
                p = p * pl.reciprocal(jnp.sum(p, axis=-1, keepdims=True),
                                      approx=True)
                ctx_heads.append(jnp.dot(p, vh,
                                         preferred_element_type=jnp.float32))
            ctx_rows.append(jnp.concatenate(ctx_heads, axis=-1))   # (S, D)
        ctx = jnp.concatenate(ctx_rows, axis=0)                    # (BS, D)

        # single full-depth (K=128) output projection
        attn = jnp.dot(ctx, wo_ref[l],
                       preferred_element_type=jnp.float32) + bo_ref[l]
        h1 = _layernorm(h + attn, ln1g_ref[l], ln1b_ref[l])

        # FFN.  NOTE: tanh-approx GELU (HF BERT default is erf-GELU).
        f = jnp.dot(h1, w1_ref[l],
                    preferred_element_type=jnp.float32) + b1_ref[l]
        f = jax.nn.gelu(f, approximate=True)
        f = jnp.dot(f, w2_ref[l],
                    preferred_element_type=jnp.float32) + b2_ref[l]
        h = _layernorm(h1 + f, ln2g_ref[l], ln2b_ref[l])

    # ---- CLS tokens (rows b*S of flattened h), head + cross-entropy ----
    cls_h = jnp.concatenate([h[b * S:b * S + 1, :] for b in range(B)], axis=0)  # (B, D)
    z = jnp.tanh(jnp.dot(cls_h, hw1_ref[...],
                         preferred_element_type=jnp.float32) + hb1_ref[...])
    # W2/b2 are padded to PADL lanes (pad cols: W=0, b=-1e9 so they vanish in lse)
    logits = jnp.dot(z, hw2_ref[...],
                     preferred_element_type=jnp.float32) + hb2_ref[...]          # (B, PADL)
    scores_ref[...] = logits                                   # lane-dense store

    m = jnp.max(logits, axis=-1, keepdims=True)
    lse = m + jnp.log(jnp.sum(jnp.exp(logits - m), axis=-1, keepdims=True))      # (B, 1)

    row_ids = jax.lax.broadcasted_iota(jnp.int32, (B, PADL), 0)
    col_ids = jax.lax.broadcasted_iota(jnp.int32, (B, PADL), 1)
    y_bcast = jnp.zeros((B, PADL), jnp.int32)
    for b in range(B):                                         # y from SMEM scalars
        y_bcast = jnp.where(row_ids == b, y_ref[b], y_bcast)
    onehot = (col_ids == y_bcast).astype(jnp.float32)
    true_logit = jnp.sum(logits * onehot, axis=-1, keepdims=True)
    loss_ref[0, 0] = jnp.mean(lse - true_logit)


# ------------------------------- wrapper --------------------------------------

@jax.jit
def google_bert_classifier_forward(params, x_ids, y):
    """x_ids: (B, S) int32 token ids; y: (B,) int32 labels.  Returns (scores, loss)."""
    # BertModel embeddings: word + position + token_type(0).  Gather stays in JAX glue.
    tok = jnp.take(params['word_emb'], x_ids, axis=0)              # (B, S, D)
    emb = tok + params['pos_emb'][None, :, :] + params['type_emb'][0][None, None, :]
    emb = emb.reshape(BS, D)

    vmem = pl.BlockSpec(memory_space=pltpu.MemorySpace.VMEM)
    smem = pl.BlockSpec(memory_space=pltpu.MemorySpace.SMEM)

    args = (y.astype(jnp.int32),
            emb, params['emb_ln_g'], params['emb_ln_b'],
            params['wqkv'], params['bqkv'], params['wo'], params['bo'],
            params['ln1_g'], params['ln1_b'], params['w1'], params['b1'],
            params['w2'], params['b2'], params['ln2_g'], params['ln2_b'],
            params['head_w1'], params['head_b1'],
            params['head_w2p'], params['head_b2p'])

    scores_p, loss = pl.pallas_call(
        bert_fused_kernel,
        out_shape=(jax.ShapeDtypeStruct((B, PADL), jnp.float32),
                   jax.ShapeDtypeStruct((1, 1), jnp.float32)),
        in_specs=[smem] + [vmem] * (len(args) - 1),
        out_specs=(vmem, smem),
    )(*args)
    return scores_p[:, :N_LABELS], loss[0, 0]


# -------------------------- deterministic params ------------------------------

def init_params(key):
    keys = iter(jax.random.split(key, 64))

    def nrm(shape, std=0.02):
        return std * jax.random.normal(next(keys), shape, dtype=jnp.float32)

    zeros = lambda s: jnp.zeros(s, jnp.float32)
    ones = lambda s: jnp.ones(s, jnp.float32)

    wqkv, bqkv, wo, bo = [], [], [], []
    ln1g, ln1b, w1, b1, w2, b2, ln2g, ln2b = [], [], [], [], [], [], [], []
    for _ in range(N_LAYERS):
        wqkv.append(jnp.concatenate([nrm((D, D)), nrm((D, D)), nrm((D, D))], axis=1))
        bqkv.append(zeros((1, 3 * D)))
        wo.append(nrm((D, D)));   bo.append(zeros((1, D)))
        ln1g.append(ones((1, D))); ln1b.append(zeros((1, D)))
        w1.append(nrm((D, FF)));  b1.append(zeros((1, FF)))
        w2.append(nrm((FF, D)));  b2.append(zeros((1, D)))
        ln2g.append(ones((1, D))); ln2b.append(zeros((1, D)))
    stack = lambda xs: jnp.stack(xs, axis=0)

    head_w2 = nrm((HID, N_LABELS))
    head_w2p = jnp.concatenate(
        [head_w2, jnp.zeros((HID, PADL - N_LABELS), jnp.float32)], axis=1)
    head_b2p = jnp.concatenate(
        [jnp.zeros((1, N_LABELS), jnp.float32),
         jnp.full((1, PADL - N_LABELS), -1e9, jnp.float32)], axis=1)

    return dict(
        word_emb=nrm((V, D)), pos_emb=nrm((S, D)), type_emb=nrm((2, D)),
        emb_ln_g=ones((1, D)), emb_ln_b=zeros((1, D)),
        wqkv=stack(wqkv), bqkv=stack(bqkv), wo=stack(wo), bo=stack(bo),
        ln1_g=stack(ln1g), ln1_b=stack(ln1b),
        w1=stack(w1), b1=stack(b1), w2=stack(w2), b2=stack(b2),
        ln2_g=stack(ln2g), ln2_b=stack(ln2b),
        head_w1=nrm((D, HID)), head_b1=zeros((1, HID)),
        head_w2p=head_w2p, head_b2p=head_b2p,
    )


# ------------------------------ pure-JAX reference ----------------------------

def reference_forward(params, x_ids, y):
    dot = partial(jnp.matmul, precision=jax.lax.Precision.HIGHEST)
    tok = params['word_emb'][x_ids]
    h = _layernorm(tok + params['pos_emb'][None] + params['type_emb'][0][None, None],
                   params['emb_ln_g'], params['emb_ln_b'])
    for l in range(N_LAYERS):
        qkv = dot(h, params['wqkv'][l]) + params['bqkv'][l]          # (B, S, 3D)
        q, k, v = qkv[..., :D], qkv[..., D:2 * D], qkv[..., 2 * D:]
        qh = q.reshape(B, S, H, DH).transpose(0, 2, 1, 3)
        kh = k.reshape(B, S, H, DH).transpose(0, 2, 1, 3)
        vh = v.reshape(B, S, H, DH).transpose(0, 2, 1, 3)
        s = jnp.einsum('bhqd,bhkd->bhqk', qh, kh,
                       precision=jax.lax.Precision.HIGHEST) / math.sqrt(DH)
        p = jax.nn.softmax(s, axis=-1)
        ctx = jnp.einsum('bhqk,bhkd->bhqd', p, vh,
                         precision=jax.lax.Precision.HIGHEST)
        ctx = ctx.transpose(0, 2, 1, 3).reshape(B, S, D)
        attn = dot(ctx, params['wo'][l]) + params['bo'][l]
        h1 = _layernorm(h + attn, params['ln1_g'][l], params['ln1_b'][l])
        f = jax.nn.gelu(dot(h1, params['w1'][l]) + params['b1'][l], approximate=True)
        f = dot(f, params['w2'][l]) + params['b2'][l]
        h = _layernorm(h1 + f, params['ln2_g'][l], params['ln2_b'][l])
    cls_h = h[:, 0]
    z = jnp.tanh(dot(cls_h, params['head_w1']) + params['head_b1'])
    logits = (dot(z, params['head_w2p'][:, :N_LABELS])
              + params['head_b2p'][:, :N_LABELS])
    lse = jax.nn.logsumexp(logits, axis=-1)
    true_logit = jnp.take_along_axis(logits, y[:, None], axis=-1)[:, 0]
    return logits, jnp.mean(lse - true_logit)


# ---------------------------------- main ---------------------------------------

if __name__ == "__main__":
    import numpy as np

    key = jax.random.PRNGKey(0)
    kp, kx, ky = jax.random.split(key, 3)
    params = init_params(kp)

    x_ids = jax.random.randint(kx, (B, S), 0, V, dtype=jnp.int32)
    lengths = jnp.full((B,), S, dtype=jnp.int32)   # present in the torch signature; unused
    y = jax.random.randint(ky, (B,), 0, N_LABELS, dtype=jnp.int32)

    scores, loss = google_bert_classifier_forward(params, x_ids, y)
    scores, loss = jax.block_until_ready((scores, loss))

    ref_scores, ref_loss = reference_forward(params, x_ids, y)
    assert np.all(np.isfinite(np.asarray(scores))) and np.isfinite(float(loss))
    assert np.allclose(np.asarray(scores), np.asarray(ref_scores), atol=1e-3, rtol=1e-3)
    assert np.allclose(float(loss), float(ref_loss), atol=1e-3, rtol=1e-3)

    print("KERNEL_OK")
</pallas_src>

<mosaic_0001>
module attributes {stable_mosaic.version = 11 : i64} {
  func.func @bert_fused_kernel(%arg0: memref<2xi32, #tpu.memory_space<smem>>, %arg1: memref<16x128xf32, #tpu.memory_space<vmem>>, %arg2: memref<1x128xf32, #tpu.memory_space<vmem>>, %arg3: memref<1x128xf32, #tpu.memory_space<vmem>>, %arg4: memref<2x128x384xf32, #tpu.memory_space<vmem>>, %arg5: memref<2x1x384xf32, #tpu.memory_space<vmem>>, %arg6: memref<2x128x128xf32, #tpu.memory_space<vmem>>, %arg7: memref<2x1x128xf32, #tpu.memory_space<vmem>>, %arg8: memref<2x1x128xf32, #tpu.memory_space<vmem>>, %arg9: memref<2x1x128xf32, #tpu.memory_space<vmem>>, %arg10: memref<2x128x512xf32, #tpu.memory_space<vmem>>, %arg11: memref<2x1x512xf32, #tpu.memory_space<vmem>>, %arg12: memref<2x512x128xf32, #tpu.memory_space<vmem>>, %arg13: memref<2x1x128xf32, #tpu.memory_space<vmem>>, %arg14: memref<2x1x128xf32, #tpu.memory_space<vmem>>, %arg15: memref<2x1x128xf32, #tpu.memory_space<vmem>>, %arg16: memref<128x128xf32, #tpu.memory_space<vmem>>, %arg17: memref<1x128xf32, #tpu.memory_space<vmem>>, %arg18: memref<128x128xf32, #tpu.memory_space<vmem>>, %arg19: memref<1x128xf32, #tpu.memory_space<vmem>>, %arg20: memref<2x128xf32, #tpu.memory_space<vmem>>, %arg21: memref<1x1xf32, #tpu.memory_space<smem>>) attributes {dimension_semantics = [], scalar_prefetch = 0 : i64, scratch_operands = 0 : i64, tpu.core_type = #tpu.core_type<tc>} {
    %c0 = arith.constant 0 : index
    %c0_0 = arith.constant 0 : index
    %0 = vector.load %arg1[%c0, %c0_0] : memref<16x128xf32, #tpu.memory_space<vmem>>, vector<16x128xf32>
    %c0_1 = arith.constant 0 : index
    %c0_2 = arith.constant 0 : index
    %1 = vector.load %arg2[%c0_1, %c0_2] : memref<1x128xf32, #tpu.memory_space<vmem>>, vector<1x128xf32>
    %c0_3 = arith.constant 0 : index
    %c0_4 = arith.constant 0 : index
    %2 = vector.load %arg3[%c0_3, %c0_4] : memref<1x128xf32, #tpu.memory_space<vmem>>, vector<1x128xf32>
    %cst = arith.constant dense<0.000000e+00> : vector<16xf32>
    %3 = vector.multi_reduction <add>, %0, %cst [1] : vector<16x128xf32> to vector<16xf32>
    %4 = vector.shape_cast %3 : vector<16xf32> to vector<16x1xf32>
    %cst_5 = arith.constant 1.280000e+02 : f32
    %5 = vector.broadcast %cst_5 : f32 to vector<16x1xf32>
    %6 = arith.divf %4, %5 : vector<16x1xf32>
    %7 = vector.broadcast %6 : vector<16x1xf32> to vector<16x128xf32>
    %8 = arith.subf %0, %7 : vector<16x128xf32>
    %9 = arith.mulf %8, %8 : vector<16x128xf32>
    %cst_6 = arith.constant dense<0.000000e+00> : vector<16xf32>
    %10 = vector.multi_reduction <add>, %9, %cst_6 [1] : vector<16x128xf32> to vector<16xf32>
    %11 = vector.shape_cast %10 : vector<16xf32> to vector<16x1xf32>
    %cst_7 = arith.constant 1.280000e+02 : f32
    %12 = vector.broadcast %cst_7 : f32 to vector<16x1xf32>
    %13 = arith.divf %11, %12 : vector<16x1xf32>
    %cst_8 = arith.constant 9.99999996E-13 : f32
    %14 = vector.broadcast %cst_8 : f32 to vector<16x1xf32>
    %15 = arith.addf %13, %14 : vector<16x1xf32>
    %16 = math.rsqrt %15 : vector<16x1xf32>
    %17 = vector.broadcast %16 : vector<16x1xf32> to vector<16x128xf32>
    %18 = arith.mulf %8, %17 : vector<16x128xf32>
    %19 = vector.broadcast %1 : vector<1x128xf32> to vector<16x128xf32>
    %20 = arith.mulf %18, %19 : vector<16x128xf32>
    %21 = vector.broadcast %2 : vector<1x128xf32> to vector<16x128xf32>
    %22 = arith.addf %20, %21 : vector<16x128xf32>
    %c0_9 = arith.constant 0 : index
    %c0_10 = arith.constant 0 : index
    %c0_11 = arith.constant 0 : index
    %23 = vector.load %arg4[%c0_9, %c0_10, %c0_11] : memref<2x128x384xf32, #tpu.memory_space<vmem>>, vector<1x128x384xf32>
    %24 = vector.shape_cast %23 : vector<1x128x384xf32> to vector<128x384xf32>
    %cst_12 = arith.constant dense<0.000000e+00> : vector<16x384xf32>
    %25 = tpu.matmul %22, %24, %cst_12 {dimension_numbers = #tpu.dot_dimension_numbers<[1], [0], [0], [1], [0, 0, 1, 1], [], []>} : vector<16x128xf32>, vector<128x384xf32>, vector<16x384xf32> -> vector<16x384xf32>
    %c0_13 = arith.constant 0 : index
    %c0_14 = arith.constant 0 : index
    %c0_15 = arith.constant 0 : index
    %26 = vector.load %arg5[%c0_13, %c0_14, %c0_15] : memref<2x1x384xf32, #tpu.memory_space<vmem>>, vector<1x1x384xf32>
    %27 = vector.shape_cast %26 : vector<1x1x384xf32> to vector<1x384xf32>
    %28 = vector.broadcast %27 : vector<1x384xf32> to vector<16x384xf32>
    %29 = arith.addf %25, %28 : vector<16x384xf32>
    %30 = vector.extract_strided_slice %29 {offsets = [0, 0], sizes = [8, 384], strides = [1, 1]} : vector<16x384xf32> to vector<8x384xf32>
    %31 = vector.extract_strided_slice %30 {offsets = [0, 0], sizes = [8, 32], strides = [1, 1]} : vector<8x384xf32> to vector<8x32xf32>
    %32 = vector.extract_strided_slice %30 {offsets = [0, 128], sizes = [8, 32], strides = [1, 1]} : vector<8x384xf32> to vector<8x32xf32>
    %33 = vector.extract_strided_slice %30 {offsets = [0, 256], sizes = [8, 32], strides = [1, 1]} : vector<8x384xf32> to vector<8x32xf32>
    %34 = tpu.transpose %32, [1, 0] : vector<8x32xf32> -> vector<32x8xf32>
    %cst_16 = arith.constant dense<0.000000e+00> : vector<8x8xf32>
    %35 = tpu.matmul %31, %34, %cst_16 {dimension_numbers = #tpu.dot_dimension_numbers<[1], [0], [0], [1], [0, 0, 1, 1], [], []>} : vector<8x32xf32>, vector<32x8xf32>, vector<8x8xf32> -> vector<8x8xf32>
    %cst_17 = arith.constant 0.176776692 : f32
    %36 = vector.broadcast %cst_17 : f32 to vector<8x8xf32>
    %37 = arith.mulf %35, %36 : vector<8x8xf32>
    %cst_18 = arith.constant dense<0xFF800000> : vector<8xf32>
    %38 = vector.multi_reduction <maximumf>, %37, %cst_18 [1] : vector<8x8xf32> to vector<8xf32>
    %39 = vector.shape_cast %38 : vector<8xf32> to vector<8x1xf32>
    %40 = vector.broadcast %39 : vector<8x1xf32> to vector<8x8xf32>
    %41 = arith.subf %37, %40 : vector<8x8xf32>
    %42 = math.exp %41 : vector<8x8xf32>
    %cst_19 = arith.constant dense<0.000000e+00> : vector<8xf32>
    %43 = vector.multi_reduction <add>, %42, %cst_19 [1] : vector<8x8xf32> to vector<8xf32>
    %44 = vector.shape_cast %43 : vector<8xf32> to vector<8x1xf32>
    %45 = tpu.reciprocal %44 {approx = true} : vector<8x1xf32> -> vector<8x1xf32>
    %46 = vector.broadcast %45 : vector<8x1xf32> to vector<8x8xf32>
    %47 = arith.mulf %42, %46 : vector<8x8xf32>
    %cst_20 = arith.constant dense<0.000000e+00> : vector<8x32xf32>
    %48 = tpu.matmul %47, %33, %cst_20 {dimension_numbers = #tpu.dot_dimension_numbers<[1], [0], [0], [1], [0, 0, 1, 1], [], []>} : vector<8x8xf32>, vector<8x32xf32>, vector<8x32xf32> -> vector<8x32xf32>
    %49 = vector.extract_strided_slice %30 {offsets = [0, 32], sizes = [8, 32], strides = [1, 1]} : vector<8x384xf32> to vector<8x32xf32>
    %50 = vector.extract_strided_slice %30 {offsets = [0, 160], sizes = [8, 32], strides = [1, 1]} : vector<8x384xf32> to vector<8x32xf32>
    %51 = vector.extract_strided_slice %30 {offsets = [0, 288], sizes = [8, 32], strides = [1, 1]} : vector<8x384xf32> to vector<8x32xf32>
    %52 = tpu.transpose %50, [1, 0] : vector<8x32xf32> -> vector<32x8xf32>
    %cst_21 = arith.constant dense<0.000000e+00> : vector<8x8xf32>
    %53 = tpu.matmul %49, %52, %cst_21 {dimension_numbers = #tpu.dot_dimension_numbers<[1], [0], [0], [1], [0, 0, 1, 1], [], []>} : vector<8x32xf32>, vector<32x8xf32>, vector<8x8xf32> -> vector<8x8xf32>
    %cst_22 = arith.constant 0.176776692 : f32
    %54 = vector.broadcast %cst_22 : f32 to vector<8x8xf32>
    %55 = arith.mulf %53, %54 : vector<8x8xf32>
    %cst_23 = arith.constant dense<0xFF800000> : vector<8xf32>
    %56 = vector.multi_reduction <maximumf>, %55, %cst_23 [1] : vector<8x8xf32> to vector<8xf32>
    %57 = vector.shape_cast %56 : vector<8xf32> to vector<8x1xf32>
    %58 = vector.broadcast %57 : vector<8x1xf32> to vector<8x8xf32>
    %59 = arith.subf %55, %58 : vector<8x8xf32>
    %60 = math.exp %59 : vector<8x8xf32>
    %cst_24 = arith.constant dense<0.000000e+00> : vector<8xf32>
    %61 = vector.multi_reduction <add>, %60, %cst_24 [1] : vector<8x8xf32> to vector<8xf32>
    %62 = vector.shape_cast %61 : vector<8xf32> to vector<8x1xf32>
    %63 = tpu.reciprocal %62 {approx = true} : vector<8x1xf32> -> vector<8x1xf32>
    %64 = vector.broadcast %63 : vector<8x1xf32> to vector<8x8xf32>
    %65 = arith.mulf %60, %64 : vector<8x8xf32>
    %cst_25 = arith.constant dense<0.000000e+00> : vector<8x32xf32>
    %66 = tpu.matmul %65, %51, %cst_25 {dimension_numbers = #tpu.dot_dimension_numbers<[1], [0], [0], [1], [0, 0, 1, 1], [], []>} : vector<8x8xf32>, vector<8x32xf32>, vector<8x32xf32> -> vector<8x32xf32>
    %67 = vector.extract_strided_slice %30 {offsets = [0, 64], sizes = [8, 32], strides = [1, 1]} : vector<8x384xf32> to vector<8x32xf32>
    %68 = vector.extract_strided_slice %30 {offsets = [0, 192], sizes = [8, 32], strides = [1, 1]} : vector<8x384xf32> to vector<8x32xf32>
    %69 = vector.extract_strided_slice %30 {offsets = [0, 320], sizes = [8, 32], strides = [1, 1]} : vector<8x384xf32> to vector<8x32xf32>
    %70 = tpu.transpose %68, [1, 0] : vector<8x32xf32> -> vector<32x8xf32>
    %cst_26 = arith.constant dense<0.000000e+00> : vector<8x8xf32>
    %71 = tpu.matmul %67, %70, %cst_26 {dimension_numbers = #tpu.dot_dimension_numbers<[1], [0], [0], [1], [0, 0, 1, 1], [], []>} : vector<8x32xf32>, vector<32x8xf32>, vector<8x8xf32> -> vector<8x8xf32>
    %cst_27 = arith.constant 0.176776692 : f32
    %72 = vector.broadcast %cst_27 : f32 to vector<8x8xf32>
    %73 = arith.mulf %71, %72 : vector<8x8xf32>
    %cst_28 = arith.constant dense<0xFF800000> : vector<8xf32>
    %74 = vector.multi_reduction <maximumf>, %73, %cst_28 [1] : vector<8x8xf32> to vector<8xf32>
    %75 = vector.shape_cast %74 : vector<8xf32> to vector<8x1xf32>
    %76 = vector.broadcast %75 : vector<8x1xf32> to vector<8x8xf32>
    %77 = arith.subf %73, %76 : vector<8x8xf32>
    %78 = math.exp %77 : vector<8x8xf32>
    %cst_29 = arith.constant dense<0.000000e+00> : vector<8xf32>
    %79 = vector.multi_reduction <add>, %78, %cst_29 [1] : vector<8x8xf32> to vector<8xf32>
    %80 = vector.shape_cast %79 : vector<8xf32> to vector<8x1xf32>
    %81 = tpu.reciprocal %80 {approx = true} : vector<8x1xf32> -> vector<8x1xf32>
    %82 = vector.broadcast %81 : vector<8x1xf32> to vector<8x8xf32>
    %83 = arith.mulf %78, %82 : vector<8x8xf32>
    %cst_30 = arith.constant dense<0.000000e+00> : vector<8x32xf32>
    %84 = tpu.matmul %83, %69, %cst_30 {dimension_numbers = #tpu.dot_dimension_numbers<[1], [0], [0], [1], [0, 0, 1, 1], [], []>} : vector<8x8xf32>, vector<8x32xf32>, vector<8x32xf32> -> vector<8x32xf32>
    %85 = vector.extract_strided_slice %30 {offsets = [0, 96], sizes = [8, 32], strides = [1, 1]} : vector<8x384xf32> to vector<8x32xf32>
    %86 = vector.extract_strided_slice %30 {offsets = [0, 224], sizes = [8, 32], strides = [1, 1]} : vector<8x384xf32> to vector<8x32xf32>
    %87 = vector.extract_strided_slice %30 {offsets = [0, 352], sizes = [8, 32], strides = [1, 1]} : vector<8x384xf32> to vector<8x32xf32>
    %88 = tpu.transpose %86, [1, 0] : vector<8x32xf32> -> vector<32x8xf32>
    %cst_31 = arith.constant dense<0.000000e+00> : vector<8x8xf32>
    %89 = tpu.matmul %85, %88, %cst_31 {dimension_numbers = #tpu.dot_dimension_numbers<[1], [0], [0], [1], [0, 0, 1, 1], [], []>} : vector<8x32xf32>, vector<32x8xf32>, vector<8x8xf32> -> vector<8x8xf32>
    %cst_32 = arith.constant 0.176776692 : f32
    %90 = vector.broadcast %cst_32 : f32 to vector<8x8xf32>
    %91 = arith.mulf %89, %90 : vector<8x8xf32>
    %cst_33 = arith.constant dense<0xFF800000> : vector<8xf32>
    %92 = vector.multi_reduction <maximumf>, %91, %cst_33 [1] : vector<8x8xf32> to vector<8xf32>
    %93 = vector.shape_cast %92 : vector<8xf32> to vector<8x1xf32>
    %94 = vector.broadcast %93 : vector<8x1xf32> to vector<8x8xf32>
    %95 = arith.subf %91, %94 : vector<8x8xf32>
    %96 = math.exp %95 : vector<8x8xf32>
    %cst_34 = arith.constant dense<0.000000e+00> : vector<8xf32>
    %97 = vector.multi_reduction <add>, %96, %cst_34 [1] : vector<8x8xf32> to vector<8xf32>
    %98 = vector.shape_cast %97 : vector<8xf32> to vector<8x1xf32>
    %99 = tpu.reciprocal %98 {approx = true} : vector<8x1xf32> -> vector<8x1xf32>
    %100 = vector.broadcast %99 : vector<8x1xf32> to vector<8x8xf32>
    %101 = arith.mulf %96, %100 : vector<8x8xf32>
    %cst_35 = arith.constant dense<0.000000e+00> : vector<8x32xf32>
    %102 = tpu.matmul %101, %87, %cst_35 {dimension_numbers = #tpu.dot_dimension_numbers<[1], [0], [0], [1], [0, 0, 1, 1], [], []>} : vector<8x8xf32>, vector<8x32xf32>, vector<8x32xf32> -> vector<8x32xf32>
    %103 = tpu.concatenate %48, %66, %84, %102 in 1 : vector<8x32xf32>, vector<8x32xf32>, vector<8x32xf32>, vector<8x32xf32> -> vector<8x128xf32>
    %104 = vector.extract_strided_slice %29 {offsets = [8, 0], sizes = [8, 384], strides = [1, 1]} : vector<16x384xf32> to vector<8x384xf32>
    %105 = vector.extract_strided_slice %104 {offsets = [0, 0], sizes = [8, 32], strides = [1, 1]} : vector<8x384xf32> to vector<8x32xf32>
    %106 = vector.extract_strided_slice %104 {offsets = [0, 128], sizes = [8, 32], strides = [1, 1]} : vector<8x384xf32> to vector<8x32xf32>
    %107 = vector.extract_strided_slice %104 {offsets = [0, 256], sizes = [8, 32], strides = [1, 1]} : vector<8x384xf32> to vector<8x32xf32>
    %108 = tpu.transpose %106, [1, 0] : vector<8x32xf32> -> vector<32x8xf32>
    %cst_36 = arith.constant dense<0.000000e+00> : vector<8x8xf32>
    %109 = tpu.matmul %105, %108, %cst_36 {dimension_numbers = #tpu.dot_dimension_numbers<[1], [0], [0], [1], [0, 0, 1, 1], [], []>} : vector<8x32xf32>, vector<32x8xf32>, vector<8x8xf32> -> vector<8x8xf32>
    %cst_37 = arith.constant 0.176776692 : f32
    %110 = vector.broadcast %cst_37 : f32 to vector<8x8xf32>
    %111 = arith.mulf %109, %110 : vector<8x8xf32>
    %cst_38 = arith.constant dense<0xFF800000> : vector<8xf32>
    %112 = vector.multi_reduction <maximumf>, %111, %cst_38 [1] : vector<8x8xf32> to vector<8xf32>
    %113 = vector.shape_cast %112 : vector<8xf32> to vector<8x1xf32>
    %114 = vector.broadcast %113 : vector<8x1xf32> to vector<8x8xf32>
    %115 = arith.subf %111, %114 : vector<8x8xf32>
    %116 = math.exp %115 : vector<8x8xf32>
    %cst_39 = arith.constant dense<0.000000e+00> : vector<8xf32>
    %117 = vector.multi_reduction <add>, %116, %cst_39 [1] : vector<8x8xf32> to vector<8xf32>
    %118 = vector.shape_cast %117 : vector<8xf32> to vector<8x1xf32>
    %119 = tpu.reciprocal %118 {approx = true} : vector<8x1xf32> -> vector<8x1xf32>
    %120 = vector.broadcast %119 : vector<8x1xf32> to vector<8x8xf32>
    %121 = arith.mulf %116, %120 : vector<8x8xf32>
    %cst_40 = arith.constant dense<0.000000e+00> : vector<8x32xf32>
    %122 = tpu.matmul %121, %107, %cst_40 {dimension_numbers = #tpu.dot_dimension_numbers<[1], [0], [0], [1], [0, 0, 1, 1], [], []>} : vector<8x8xf32>, vector<8x32xf32>, vector<8x32xf32> -> vector<8x32xf32>
    %123 = vector.extract_strided_slice %104 {offsets = [0, 32], sizes = [8, 32], strides = [1, 1]} : vector<8x384xf32> to vector<8x32xf32>
    %124 = vector.extract_strided_slice %104 {offsets = [0, 160], sizes = [8, 32], strides = [1, 1]} : vector<8x384xf32> to vector<8x32xf32>
    %125 = vector.extract_strided_slice %104 {offsets = [0, 288], sizes = [8, 32], strides = [1, 1]} : vector<8x384xf32> to vector<8x32xf32>
    %126 = tpu.transpose %124, [1, 0] : vector<8x32xf32> -> vector<32x8xf32>
    %cst_41 = arith.constant dense<0.000000e+00> : vector<8x8xf32>
    %127 = tpu.matmul %123, %126, %cst_41 {dimension_numbers = #tpu.dot_dimension_numbers<[1], [0], [0], [1], [0, 0, 1, 1], [], []>} : vector<8x32xf32>, vector<32x8xf32>, vector<8x8xf32> -> vector<8x8xf32>
    %cst_42 = arith.constant 0.176776692 : f32
    %128 = vector.broadcast %cst_42 : f32 to vector<8x8xf32>
    %129 = arith.mulf %127, %128 : vector<8x8xf32>
    %cst_43 = arith.constant dense<0xFF800000> : vector<8xf32>
    %130 = vector.multi_reduction <maximumf>, %129, %cst_43 [1] : vector<8x8xf32> to vector<8xf32>
    %131 = vector.shape_cast %130 : vector<8xf32> to vector<8x1xf32>
    %132 = vector.broadcast %131 : vector<8x1xf32> to vector<8x8xf32>
    %133 = arith.subf %129, %132 : vector<8x8xf32>
    %134 = math.exp %133 : vector<8x8xf32>
    %cst_44 = arith.constant dense<0.000000e+00> : vector<8xf32>
    %135 = vector.multi_reduction <add>, %134, %cst_44 [1] : vector<8x8xf32> to vector<8xf32>
    %136 = vector.shape_cast %135 : vector<8xf32> to vector<8x1xf32>
    %137 = tpu.reciprocal %136 {approx = true} : vector<8x1xf32> -> vector<8x1xf32>
    %138 = vector.broadcast %137 : vector<8x1xf32> to vector<8x8xf32>
    %139 = arith.mulf %134, %138 : vector<8x8xf32>
    %cst_45 = arith.constant dense<0.000000e+00> : vector<8x32xf32>
    %140 = tpu.matmul %139, %125, %cst_45 {dimension_numbers = #tpu.dot_dimension_numbers<[1], [0], [0], [1], [0, 0, 1, 1], [], []>} : vector<8x8xf32>, vector<8x32xf32>, vector<8x32xf32> -> vector<8x32xf32>
    %141 = vector.extract_strided_slice %104 {offsets = [0, 64], sizes = [8, 32], strides = [1, 1]} : vector<8x384xf32> to vector<8x32xf32>
    %142 = vector.extract_strided_slice %104 {offsets = [0, 192], sizes = [8, 32], strides = [1, 1]} : vector<8x384xf32> to vector<8x32xf32>
    %143 = vector.extract_strided_slice %104 {offsets = [0, 320], sizes = [8, 32], strides = [1, 1]} : vector<8x384xf32> to vector<8x32xf32>
    %144 = tpu.transpose %142, [1, 0] : vector<8x32xf32> -> vector<32x8xf32>
    %cst_46 = arith.constant dense<0.000000e+00> : vector<8x8xf32>
    %145 = tpu.matmul %141, %144, %cst_46 {dimension_numbers = #tpu.dot_dimension_numbers<[1], [0], [0], [1], [0, 0, 1, 1], [], []>} : vector<8x32xf32>, vector<32x8xf32>, vector<8x8xf32> -> vector<8x8xf32>
    %cst_47 = arith.constant 0.176776692 : f32
    %146 = vector.broadcast %cst_47 : f32 to vector<8x8xf32>
    %147 = arith.mulf %145, %146 : vector<8x8xf32>
    %cst_48 = arith.constant dense<0xFF800000> : vector<8xf32>
    %148 = vector.multi_reduction <maximumf>, %147, %cst_48 [1] : vector<8x8xf32> to vector<8xf32>
    %149 = vector.shape_cast %148 : vector<8xf32> to vector<8x1xf32>
    %150 = vector.broadcast %149 : vector<8x1xf32> to vector<8x8xf32>
    %151 = arith.subf %147, %150 : vector<8x8xf32>
    %152 = math.exp %151 : vector<8x8xf32>
    %cst_49 = arith.constant dense<0.000000e+00> : vector<8xf32>
    %153 = vector.multi_reduction <add>, %152, %cst_49 [1] : vector<8x8xf32> to vector<8xf32>
    %154 = vector.shape_cast %153 : vector<8xf32> to vector<8x1xf32>
    %155 = tpu.reciprocal %154 {approx = true} : vector<8x1xf32> -> vector<8x1xf32>
    %156 = vector.broadcast %155 : vector<8x1xf32> to vector<8x8xf32>
    %157 = arith.mulf %152, %156 : vector<8x8xf32>
    %cst_50 = arith.constant dense<0.000000e+00> : vector<8x32xf32>
    %158 = tpu.matmul %157, %143, %cst_50 {dimension_numbers = #tpu.dot_dimension_numbers<[1], [0], [0], [1], [0, 0, 1, 1], [], []>} : vector<8x8xf32>, vector<8x32xf32>, vector<8x32xf32> -> vector<8x32xf32>
    %159 = vector.extract_strided_slice %104 {offsets = [0, 96], sizes = [8, 32], strides = [1, 1]} : vector<8x384xf32> to vector<8x32xf32>
    %160 = vector.extract_strided_slice %104 {offsets = [0, 224], sizes = [8, 32], strides = [1, 1]} : vector<8x384xf32> to vector<8x32xf32>
    %161 = vector.extract_strided_slice %104 {offsets = [0, 352], sizes = [8, 32], strides = [1, 1]} : vector<8x384xf32> to vector<8x32xf32>
    %162 = tpu.transpose %160, [1, 0] : vector<8x32xf32> -> vector<32x8xf32>
    %cst_51 = arith.constant dense<0.000000e+00> : vector<8x8xf32>
    %163 = tpu.matmul %159, %162, %cst_51 {dimension_numbers = #tpu.dot_dimension_numbers<[1], [0], [0], [1], [0, 0, 1, 1], [], []>} : vector<8x32xf32>, vector<32x8xf32>, vector<8x8xf32> -> vector<8x8xf32>
    %cst_52 = arith.constant 0.176776692 : f32
    %164 = vector.broadcast %cst_52 : f32 to vector<8x8xf32>
    %165 = arith.mulf %163, %164 : vector<8x8xf32>
    %cst_53 = arith.constant dense<0xFF800000> : vector<8xf32>
    %166 = vector.multi_reduction <maximumf>, %165, %cst_53 [1] : vector<8x8xf32> to vector<8xf32>
    %167 = vector.shape_cast %166 : vector<8xf32> to vector<8x1xf32>
    %168 = vector.broadcast %167 : vector<8x1xf32> to vector<8x8xf32>
    %169 = arith.subf %165, %168 : vector<8x8xf32>
    %170 = math.exp %169 : vector<8x8xf32>
    %cst_54 = arith.constant dense<0.000000e+00> : vector<8xf32>
    %171 = vector.multi_reduction <add>, %170, %cst_54 [1] : vector<8x8xf32> to vector<8xf32>
    %172 = vector.shape_cast %171 : vector<8xf32> to vector<8x1xf32>
    %173 = tpu.reciprocal %172 {approx = true} : vector<8x1xf32> -> vector<8x1xf32>
    %174 = vector.broadcast %173 : vector<8x1xf32> to vector<8x8xf32>
    %175 = arith.mulf %170, %174 : vector<8x8xf32>
    %cst_55 = arith.constant dense<0.000000e+00> : vector<8x32xf32>
    %176 = tpu.matmul %175, %161, %cst_55 {dimension_numbers = #tpu.dot_dimension_numbers<[1], [0], [0], [1], [0, 0, 1, 1], [], []>} : vector<8x8xf32>, vector<8x32xf32>, vector<8x32xf32> -> vector<8x32xf32>
    %177 = tpu.concatenate %122, %140, %158, %176 in 1 : vector<8x32xf32>, vector<8x32xf32>, vector<8x32xf32>, vector<8x32xf32> -> vector<8x128xf32>
    %178 = tpu.concatenate %103, %177 in 0 : vector<8x128xf32>, vector<8x128xf32> -> vector<16x128xf32>
    %c0_56 = arith.constant 0 : index
    %c0_57 = arith.constant 0 : index
    %c0_58 = arith.constant 0 : index
    %179 = vector.load %arg6[%c0_56, %c0_57, %c0_58] : memref<2x128x128xf32, #tpu.memory_space<vmem>>, vector<1x128x128xf32>
    %180 = vector.shape_cast %179 : vector<1x128x128xf32> to vector<128x128xf32>
    %cst_59 = arith.constant dense<0.000000e+00> : vector<16x128xf32>
    %181 = tpu.matmul %178, %180, %cst_59 {dimension_numbers = #tpu.dot_dimension_numbers<[1], [0], [0], [1], [0, 0, 1, 1], [], []>} : vector<16x128xf32>, vector<128x128xf32>, vector<16x128xf32> -> vector<16x128xf32>
    %c0_60 = arith.constant 0 : index
    %c0_61 = arith.constant 0 : index
    %c0_62 = arith.constant 0 : index
    %182 = vector.load %arg7[%c0_60, %c0_61, %c0_62] : memref<2x1x128xf32, #tpu.memory_space<vmem>>, vector<1x1x128xf32>
    %183 = vector.shape_cast %182 : vector<1x1x128xf32> to vector<1x128xf32>
    %184 = vector.broadcast %183 : vector<1x128xf32> to vector<16x128xf32>
    %185 = arith.addf %181, %184 : vector<16x128xf32>
    %186 = arith.addf %22, %185 : vector<16x128xf32>
    %c0_63 = arith.constant 0 : index
    %c0_64 = arith.constant 0 : index
    %c0_65 = arith.constant 0 : index
    %187 = vector.load %arg8[%c0_63, %c0_64, %c0_65] : memref<2x1x128xf32, #tpu.memory_space<vmem>>, vector<1x1x128xf32>
    %188 = vector.shape_cast %187 : vector<1x1x128xf32> to vector<1x128xf32>
    %c0_66 = arith.constant 0 : index
    %c0_67 = arith.constant 0 : index
    %c0_68 = arith.constant 0 : index
    %189 = vector.load %arg9[%c0_66, %c0_67, %c0_68] : memref<2x1x128xf32, #tpu.memory_space<vmem>>, vector<1x1x128xf32>
    %190 = vector.shape_cast %189 : vector<1x1x128xf32> to vector<1x128xf32>
    %cst_69 = arith.constant dense<0.000000e+00> : vector<16xf32>
    %191 = vector.multi_reduction <add>, %186, %cst_69 [1] : vector<16x128xf32> to vector<16xf32>
    %192 = vector.shape_cast %191 : vector<16xf32> to vector<16x1xf32>
    %cst_70 = arith.constant 1.280000e+02 : f32
    %193 = vector.broadcast %cst_70 : f32 to vector<16x1xf32>
    %194 = arith.divf %192, %193 : vector<16x1xf32>
    %195 = vector.broadcast %194 : vector<16x1xf32> to vector<16x128xf32>
    %196 = arith.subf %186, %195 : vector<16x128xf32>
    %197 = arith.mulf %196, %196 : vector<16x128xf32>
    %cst_71 = arith.constant dense<0.000000e+00> : vector<16xf32>
    %198 = vector.multi_reduction <add>, %197, %cst_71 [1] : vector<16x128xf32> to vector<16xf32>
    %199 = vector.shape_cast %198 : vector<16xf32> to vector<16x1xf32>
    %cst_72 = arith.constant 1.280000e+02 : f32
    %200 = vector.broadcast %cst_72 : f32 to vector<16x1xf32>
    %201 = arith.divf %199, %200 : vector<16x1xf32>
    %cst_73 = arith.constant 9.99999996E-13 : f32
    %202 = vector.broadcast %cst_73 : f32 to vector<16x1xf32>
    %203 = arith.addf %201, %202 : vector<16x1xf32>
    %204 = math.rsqrt %203 : vector<16x1xf32>
    %205 = vector.broadcast %204 : vector<16x1xf32> to vector<16x128xf32>
    %206 = arith.mulf %196, %205 : vector<16x128xf32>
    %207 = vector.broadcast %188 : vector<1x128xf32> to vector<16x128xf32>
    %208 = arith.mulf %206, %207 : vector<16x128xf32>
    %209 = vector.broadcast %190 : vector<1x128xf32> to vector<16x128xf32>
    %210 = arith.addf %208, %209 : vector<16x128xf32>
    %c0_74 = arith.constant 0 : index
    %c0_75 = arith.constant 0 : index
    %c0_76 = arith.constant 0 : index
    %211 = vector.load %arg10[%c0_74, %c0_75, %c0_76] : memref<2x128x512xf32, #tpu.memory_space<vmem>>, vector<1x128x512xf32>
    %212 = vector.shape_cast %211 : vector<1x128x512xf32> to vector<128x512xf32>
    %cst_77 = arith.constant dense<0.000000e+00> : vector<16x512xf32>
    %213 = tpu.matmul %210, %212, %cst_77 {dimension_numbers = #tpu.dot_dimension_numbers<[1], [0], [0], [1], [0, 0, 1, 1], [], []>} : vector<16x128xf32>, vector<128x512xf32>, vector<16x512xf32> -> vector<16x512xf32>
    %c0_78 = arith.constant 0 : index
    %c0_79 = arith.constant 0 : index
    %c0_80 = arith.constant 0 : index
    %214 = vector.load %arg11[%c0_78, %c0_79, %c0_80] : memref<2x1x512xf32, #tpu.memory_space<vmem>>, vector<1x1x512xf32>
    %215 = vector.shape_cast %214 : vector<1x1x512xf32> to vector<1x512xf32>
    %216 = vector.broadcast %215 : vector<1x512xf32> to vector<16x512xf32>
    %217 = arith.addf %213, %216 : vector<16x512xf32>
    %218 = arith.mulf %217, %217 : vector<16x512xf32>
    %219 = arith.mulf %217, %218 : vector<16x512xf32>
    %cst_81 = arith.constant 4.471500e-02 : f32
    %220 = vector.broadcast %cst_81 : f32 to vector<16x512xf32>
    %221 = arith.mulf %220, %219 : vector<16x512xf32>
    %222 = arith.addf %217, %221 : vector<16x512xf32>
    %cst_82 = arith.constant 0.797884583 : f32
    %223 = vector.broadcast %cst_82 : f32 to vector<16x512xf32>
    %224 = arith.mulf %223, %222 : vector<16x512xf32>
    %225 = math.tanh %224 : vector<16x512xf32>
    %cst_83 = arith.constant 1.000000e+00 : f32
    %226 = vector.broadcast %cst_83 : f32 to vector<16x512xf32>
    %227 = arith.addf %226, %225 : vector<16x512xf32>
    %cst_84 = arith.constant 5.000000e-01 : f32
    %228 = vector.broadcast %cst_84 : f32 to vector<16x512xf32>
    %229 = arith.mulf %228, %227 : vector<16x512xf32>
    %230 = arith.mulf %217, %229 : vector<16x512xf32>
    %c0_85 = arith.constant 0 : index
    %c0_86 = arith.constant 0 : index
    %c0_87 = arith.constant 0 : index
    %231 = vector.load %arg12[%c0_85, %c0_86, %c0_87] : memref<2x512x128xf32, #tpu.memory_space<vmem>>, vector<1x512x128xf32>
    %232 = vector.shape_cast %231 : vector<1x512x128xf32> to vector<512x128xf32>
    %cst_88 = arith.constant dense<0.000000e+00> : vector<16x128xf32>
    %233 = tpu.matmul %230, %232, %cst_88 {dimension_numbers = #tpu.dot_dimension_numbers<[1], [0], [0], [1], [0, 0, 1, 1], [], []>} : vector<16x512xf32>, vector<512x128xf32>, vector<16x128xf32> -> vector<16x128xf32>
    %c0_89 = arith.constant 0 : index
    %c0_90 = arith.constant 0 : index
    %c0_91 = arith.constant 0 : index
    %234 = vector.load %arg13[%c0_89, %c0_90, %c0_91] : memref<2x1x128xf32, #tpu.memory_space<vmem>>, vector<1x1x128xf32>
    %235 = vector.shape_cast %234 : vector<1x1x128xf32> to vector<1x128xf32>
    %236 = vector.broadcast %235 : vector<1x128xf32> to vector<16x128xf32>
    %237 = arith.addf %233, %236 : vector<16x128xf32>
    %238 = arith.addf %210, %237 : vector<16x128xf32>
    %c0_92 = arith.constant 0 : index
    %c0_93 = arith.constant 0 : index
    %c0_94 = arith.constant 0 : index
    %239 = vector.load %arg14[%c0_92, %c0_93, %c0_94] : memref<2x1x128xf32, #tpu.memory_space<vmem>>, vector<1x1x128xf32>
    %240 = vector.shape_cast %239 : vector<1x1x128xf32> to vector<1x128xf32>
    %c0_95 = arith.constant 0 : index
    %c0_96 = arith.constant 0 : index
    %c0_97 = arith.constant 0 : index
    %241 = vector.load %arg15[%c0_95, %c0_96, %c0_97] : memref<2x1x128xf32, #tpu.memory_space<vmem>>, vector<1x1x128xf32>
    %242 = vector.shape_cast %241 : vector<1x1x128xf32> to vector<1x128xf32>
    %cst_98 = arith.constant dense<0.000000e+00> : vector<16xf32>
    %243 = vector.multi_reduction <add>, %238, %cst_98 [1] : vector<16x128xf32> to vector<16xf32>
    %244 = vector.shape_cast %243 : vector<16xf32> to vector<16x1xf32>
    %cst_99 = arith.constant 1.280000e+02 : f32
    %245 = vector.broadcast %cst_99 : f32 to vector<16x1xf32>
    %246 = arith.divf %244, %245 : vector<16x1xf32>
    %247 = vector.broadcast %246 : vector<16x1xf32> to vector<16x128xf32>
    %248 = arith.subf %238, %247 : vector<16x128xf32>
    %249 = arith.mulf %248, %248 : vector<16x128xf32>
    %cst_100 = arith.constant dense<0.000000e+00> : vector<16xf32>
    %250 = vector.multi_reduction <add>, %249, %cst_100 [1] : vector<16x128xf32> to vector<16xf32>
    %251 = vector.shape_cast %250 : vector<16xf32> to vector<16x1xf32>
    %cst_101 = arith.constant 1.280000e+02 : f32
    %252 = vector.broadcast %cst_101 : f32 to vector<16x1xf32>
    %253 = arith.divf %251, %252 : vector<16x1xf32>
    %cst_102 = arith.constant 9.99999996E-13 : f32
    %254 = vector.broadcast %cst_102 : f32 to vector<16x1xf32>
    %255 = arith.addf %253, %254 : vector<16x1xf32>
    %256 = math.rsqrt %255 : vector<16x1xf32>
    %257 = vector.broadcast %256 : vector<16x1xf32> to vector<16x128xf32>
    %258 = arith.mulf %248, %257 : vector<16x128xf32>
    %259 = vector.broadcast %240 : vector<1x128xf32> to vector<16x128xf32>
    %260 = arith.mulf %258, %259 : vector<16x128xf32>
    %261 = vector.broadcast %242 : vector<1x128xf32> to vector<16x128xf32>
    %262 = arith.addf %260, %261 : vector<16x128xf32>
    %c1 = arith.constant 1 : index
    %c0_103 = arith.constant 0 : index
    %c0_104 = arith.constant 0 : index
    %263 = vector.load %arg4[%c1, %c0_103, %c0_104] : memref<2x128x384xf32, #tpu.memory_space<vmem>>, vector<1x128x384xf32>
    %264 = vector.shape_cast %263 : vector<1x128x384xf32> to vector<128x384xf32>
    %cst_105 = arith.constant dense<0.000000e+00> : vector<16x384xf32>
    %265 = tpu.matmul %262, %264, %cst_105 {dimension_numbers = #tpu.dot_dimension_numbers<[1], [0], [0], [1], [0, 0, 1, 1], [], []>} : vector<16x128xf32>, vector<128x384xf32>, vector<16x384xf32> -> vector<16x384xf32>
    %c1_106 = arith.constant 1 : index
    %c0_107 = arith.constant 0 : index
    %c0_108 = arith.constant 0 : index
    %266 = vector.load %arg5[%c1_106, %c0_107, %c0_108] : memref<2x1x384xf32, #tpu.memory_space<vmem>>, vector<1x1x384xf32>
    %267 = vector.shape_cast %266 : vector<1x1x384xf32> to vector<1x384xf32>
    %268 = vector.broadcast %267 : vector<1x384xf32> to vector<16x384xf32>
    %269 = arith.addf %265, %268 : vector<16x384xf32>
    %270 = vector.extract_strided_slice %269 {offsets = [0, 0], sizes = [8, 384], strides = [1, 1]} : vector<16x384xf32> to vector<8x384xf32>
    %271 = vector.extract_strided_slice %270 {offsets = [0, 0], sizes = [8, 32], strides = [1, 1]} : vector<8x384xf32> to vector<8x32xf32>
    %272 = vector.extract_strided_slice %270 {offsets = [0, 128], sizes = [8, 32], strides = [1, 1]} : vector<8x384xf32> to vector<8x32xf32>
    %273 = vector.extract_strided_slice %270 {offsets = [0, 256], sizes = [8, 32], strides = [1, 1]} : vector<8x384xf32> to vector<8x32xf32>
    %274 = tpu.transpose %272, [1, 0] : vector<8x32xf32> -> vector<32x8xf32>
    %cst_109 = arith.constant dense<0.000000e+00> : vector<8x8xf32>
    %275 = tpu.matmul %271, %274, %cst_109 {dimension_numbers = #tpu.dot_dimension_numbers<[1], [0], [0], [1], [0, 0, 1, 1], [], []>} : vector<8x32xf32>, vector<32x8xf32>, vector<8x8xf32> -> vector<8x8xf32>
    %cst_110 = arith.constant 0.176776692 : f32
    %276 = vector.broadcast %cst_110 : f32 to vector<8x8xf32>
    %277 = arith.mulf %275, %276 : vector<8x8xf32>
    %cst_111 = arith.constant dense<0xFF800000> : vector<8xf32>
    %278 = vector.multi_reduction <maximumf>, %277, %cst_111 [1] : vector<8x8xf32> to vector<8xf32>
    %279 = vector.shape_cast %278 : vector<8xf32> to vector<8x1xf32>
    %280 = vector.broadcast %279 : vector<8x1xf32> to vector<8x8xf32>
    %281 = arith.subf %277, %280 : vector<8x8xf32>
    %282 = math.exp %281 : vector<8x8xf32>
    %cst_112 = arith.constant dense<0.000000e+00> : vector<8xf32>
    %283 = vector.multi_reduction <add>, %282, %cst_112 [1] : vector<8x8xf32> to vector<8xf32>
    %284 = vector.shape_cast %283 : vector<8xf32> to vector<8x1xf32>
    %285 = tpu.reciprocal %284 {approx = true} : vector<8x1xf32> -> vector<8x1xf32>
    %286 = vector.broadcast %285 : vector<8x1xf32> to vector<8x8xf32>
    %287 = arith.mulf %282, %286 : vector<8x8xf32>
    %cst_113 = arith.constant dense<0.000000e+00> : vector<8x32xf32>
    %288 = tpu.matmul %287, %273, %cst_113 {dimension_numbers = #tpu.dot_dimension_numbers<[1], [0], [0], [1], [0, 0, 1, 1], [], []>} : vector<8x8xf32>, vector<8x32xf32>, vector<8x32xf32> -> vector<8x32xf32>
    %289 = vector.extract_strided_slice %270 {offsets = [0, 32], sizes = [8, 32], strides = [1, 1]} : vector<8x384xf32> to vector<8x32xf32>
    %290 = vector.extract_strided_slice %270 {offsets = [0, 160], sizes = [8, 32], strides = [1, 1]} : vector<8x384xf32> to vector<8x32xf32>
    %291 = vector.extract_strided_slice %270 {offsets = [0, 288], sizes = [8, 32], strides = [1, 1]} : vector<8x384xf32> to vector<8x32xf32>
    %292 = tpu.transpose %290, [1, 0] : vector<8x32xf32> -> vector<32x8xf32>
    %cst_114 = arith.constant dense<0.000000e+00> : vector<8x8xf32>
    %293 = tpu.matmul %289, %292, %cst_114 {dimension_numbers = #tpu.dot_dimension_numbers<[1], [0], [0], [1], [0, 0, 1, 1], [], []>} : vector<8x32xf32>, vector<32x8xf32>, vector<8x8xf32> -> vector<8x8xf32>
    %cst_115 = arith.constant 0.176776692 : f32
    %294 = vector.broadcast %cst_115 : f32 to vector<8x8xf32>
    %295 = arith.mulf %293, %294 : vector<8x8xf32>
    %cst_116 = arith.constant dense<0xFF800000> : vector<8xf32>
    %296 = vector.multi_reduction <maximumf>, %295, %cst_116 [1] : vector<8x8xf32> to vector<8xf32>
    %297 = vector.shape_cast %296 : vector<8xf32> to vector<8x1xf32>
    %298 = vector.broadcast %297 : vector<8x1xf32> to vector<8x8xf32>
    %299 = arith.subf %295, %298 : vector<8x8xf32>
    %300 = math.exp %299 : vector<8x8xf32>
    %cst_117 = arith.constant dense<0.000000e+00> : vector<8xf32>
    %301 = vector.multi_reduction <add>, %300, %cst_117 [1] : vector<8x8xf32> to vector<8xf32>
    %302 = vector.shape_cast %301 : vector<8xf32> to vector<8x1xf32>
    %303 = tpu.reciprocal %302 {approx = true} : vector<8x1xf32> -> vector<8x1xf32>
    %304 = vector.broadcast %303 : vector<8x1xf32> to vector<8x8xf32>
    %305 = arith.mulf %300, %304 : vector<8x8xf32>
    %cst_118 = arith.constant dense<0.000000e+00> : vector<8x32xf32>
    %306 = tpu.matmul %305, %291, %cst_118 {dimension_numbers = #tpu.dot_dimension_numbers<[1], [0], [0], [1], [0, 0, 1, 1], [], []>} : vector<8x8xf32>, vector<8x32xf32>, vector<8x32xf32> -> vector<8x32xf32>
    %307 = vector.extract_strided_slice %270 {offsets = [0, 64], sizes = [8, 32], strides = [1, 1]} : vector<8x384xf32> to vector<8x32xf32>
    %308 = vector.extract_strided_slice %270 {offsets = [0, 192], sizes = [8, 32], strides = [1, 1]} : vector<8x384xf32> to vector<8x32xf32>
    %309 = vector.extract_strided_slice %270 {offsets = [0, 320], sizes = [8, 32], strides = [1, 1]} : vector<8x384xf32> to vector<8x32xf32>
    %310 = tpu.transpose %308, [1, 0] : vector<8x32xf32> -> vector<32x8xf32>
    %cst_119 = arith.constant dense<0.000000e+00> : vector<8x8xf32>
    %311 = tpu.matmul %307, %310, %cst_119 {dimension_numbers = #tpu.dot_dimension_numbers<[1], [0], [0], [1], [0, 0, 1, 1], [], []>} : vector<8x32xf32>, vector<32x8xf32>, vector<8x8xf32> -> vector<8x8xf32>
    %cst_120 = arith.constant 0.176776692 : f32
    %312 = vector.broadcast %cst_120 : f32 to vector<8x8xf32>
    %313 = arith.mulf %311, %312 : vector<8x8xf32>
    %cst_121 = arith.constant dense<0xFF800000> : vector<8xf32>
    %314 = vector.multi_reduction <maximumf>, %313, %cst_121 [1] : vector<8x8xf32> to vector<8xf32>
    %315 = vector.shape_cast %314 : vector<8xf32> to vector<8x1xf32>
    %316 = vector.broadcast %315 : vector<8x1xf32> to vector<8x8xf32>
    %317 = arith.subf %313, %316 : vector<8x8xf32>
    %318 = math.exp %317 : vector<8x8xf32>
    %cst_122 = arith.constant dense<0.000000e+00> : vector<8xf32>
    %319 = vector.multi_reduction <add>, %318, %cst_122 [1] : vector<8x8xf32> to vector<8xf32>
    %320 = vector.shape_cast %319 : vector<8xf32> to vector<8x1xf32>
    %321 = tpu.reciprocal %320 {approx = true} : vector<8x1xf32> -> vector<8x1xf32>
    %322 = vector.broadcast %321 : vector<8x1xf32> to vector<8x8xf32>
    %323 = arith.mulf %318, %322 : vector<8x8xf32>
    %cst_123 = arith.constant dense<0.000000e+00> : vector<8x32xf32>
    %324 = tpu.matmul %323, %309, %cst_123 {dimension_numbers = #tpu.dot_dimension_numbers<[1], [0], [0], [1], [0, 0, 1, 1], [], []>} : vector<8x8xf32>, vector<8x32xf32>, vector<8x32xf32> -> vector<8x32xf32>
    %325 = vector.extract_strided_slice %270 {offsets = [0, 96], sizes = [8, 32], strides = [1, 1]} : vector<8x384xf32> to vector<8x32xf32>
    %326 = vector.extract_strided_slice %270 {offsets = [0, 224], sizes = [8, 32], strides = [1, 1]} : vector<8x384xf32> to vector<8x32xf32>
    %327 = vector.extract_strided_slice %270 {offsets = [0, 352], sizes = [8, 32], strides = [1, 1]} : vector<8x384xf32> to vector<8x32xf32>
    %328 = tpu.transpose %326, [1, 0] : vector<8x32xf32> -> vector<32x8xf32>
    %cst_124 = arith.constant dense<0.000000e+00> : vector<8x8xf32>
    %329 = tpu.matmul %325, %328, %cst_124 {dimension_numbers = #tpu.dot_dimension_numbers<[1], [0], [0], [1], [0, 0, 1, 1], [], []>} : vector<8x32xf32>, vector<32x8xf32>, vector<8x8xf32> -> vector<8x8xf32>
    %cst_125 = arith.constant 0.176776692 : f32
    %330 = vector.broadcast %cst_125 : f32 to vector<8x8xf32>
    %331 = arith.mulf %329, %330 : vector<8x8xf32>
    %cst_126 = arith.constant dense<0xFF800000> : vector<8xf32>
    %332 = vector.multi_reduction <maximumf>, %331, %cst_126 [1] : vector<8x8xf32> to vector<8xf32>
    %333 = vector.shape_cast %332 : vector<8xf32> to vector<8x1xf32>
    %334 = vector.broadcast %333 : vector<8x1xf32> to vector<8x8xf32>
    %335 = arith.subf %331, %334 : vector<8x8xf32>
    %336 = math.exp %335 : vector<8x8xf32>
    %cst_127 = arith.constant dense<0.000000e+00> : vector<8xf32>
    %337 = vector.multi_reduction <add>, %336, %cst_127 [1] : vector<8x8xf32> to vector<8xf32>
    %338 = vector.shape_cast %337 : vector<8xf32> to vector<8x1xf32>
    %339 = tpu.reciprocal %338 {approx = true} : vector<8x1xf32> -> vector<8x1xf32>
    %340 = vector.broadcast %339 : vector<8x1xf32> to vector<8x8xf32>
    %341 = arith.mulf %336, %340 : vector<8x8xf32>
    %cst_128 = arith.constant dense<0.000000e+00> : vector<8x32xf32>
    %342 = tpu.matmul %341, %327, %cst_128 {dimension_numbers = #tpu.dot_dimension_numbers<[1], [0], [0], [1], [0, 0, 1, 1], [], []>} : vector<8x8xf32>, vector<8x32xf32>, vector<8x32xf32> -> vector<8x32xf32>
    %343 = tpu.concatenate %288, %306, %324, %342 in 1 : vector<8x32xf32>, vector<8x32xf32>, vector<8x32xf32>, vector<8x32xf32> -> vector<8x128xf32>
    %344 = vector.extract_strided_slice %269 {offsets = [8, 0], sizes = [8, 384], strides = [1, 1]} : vector<16x384xf32> to vector<8x384xf32>
    %345 = vector.extract_strided_slice %344 {offsets = [0, 0], sizes = [8, 32], strides = [1, 1]} : vector<8x384xf32> to vector<8x32xf32>
    %346 = vector.extract_strided_slice %344 {offsets = [0, 128], sizes = [8, 32], strides = [1, 1]} : vector<8x384xf32> to vector<8x32xf32>
    %347 = vector.extract_strided_slice %344 {offsets = [0, 256], sizes = [8, 32], strides = [1, 1]} : vector<8x384xf32> to vector<8x32xf32>
    %348 = tpu.transpose %346, [1, 0] : vector<8x32xf32> -> vector<32x8xf32>
    %cst_129 = arith.constant dense<0.000000e+00> : vector<8x8xf32>
    %349 = tpu.matmul %345, %348, %cst_129 {dimension_numbers = #tpu.dot_dimension_numbers<[1], [0], [0], [1], [0, 0, 1, 1], [], []>} : vector<8x32xf32>, vector<32x8xf32>, vector<8x8xf32> -> vector<8x8xf32>
    %cst_130 = arith.constant 0.176776692 : f32
    %350 = vector.broadcast %cst_130 : f32 to vector<8x8xf32>
    %351 = arith.mulf %349, %350 : vector<8x8xf32>
    %cst_131 = arith.constant dense<0xFF800000> : vector<8xf32>
    %352 = vector.multi_reduction <maximumf>, %351, %cst_131 [1] : vector<8x8xf32> to vector<8xf32>
    %353 = vector.shape_cast %352 : vector<8xf32> to vector<8x1xf32>
    %354 = vector.broadcast %353 : vector<8x1xf32> to vector<8x8xf32>
    %355 = arith.subf %351, %354 : vector<8x8xf32>
    %356 = math.exp %355 : vector<8x8xf32>
    %cst_132 = arith.constant dense<0.000000e+00> : vector<8xf32>
    %357 = vector.multi_reduction <add>, %356, %cst_132 [1] : vector<8x8xf32> to vector<8xf32>
    %358 = vector.shape_cast %357 : vector<8xf32> to vector<8x1xf32>
    %359 = tpu.reciprocal %358 {approx = true} : vector<8x1xf32> -> vector<8x1xf32>
    %360 = vector.broadcast %359 : vector<8x1xf32> to vector<8x8xf32>
    %361 = arith.mulf %356, %360 : vector<8x8xf32>
    %cst_133 = arith.constant dense<0.000000e+00> : vector<8x32xf32>
    %362 = tpu.matmul %361, %347, %cst_133 {dimension_numbers = #tpu.dot_dimension_numbers<[1], [0], [0], [1], [0, 0, 1, 1], [], []>} : vector<8x8xf32>, vector<8x32xf32>, vector<8x32xf32> -> vector<8x32xf32>
    %363 = vector.extract_strided_slice %344 {offsets = [0, 32], sizes = [8, 32], strides = [1, 1]} : vector<8x384xf32> to vector<8x32xf32>
    %364 = vector.extract_strided_slice %344 {offsets = [0, 160], sizes = [8, 32], strides = [1, 1]} : vector<8x384xf32> to vector<8x32xf32>
    %365 = vector.extract_strided_slice %344 {offsets = [0, 288], sizes = [8, 32], strides = [1, 1]} : vector<8x384xf32> to vector<8x32xf32>
    %366 = tpu.transpose %364, [1, 0] : vector<8x32xf32> -> vector<32x8xf32>
    %cst_134 = arith.constant dense<0.000000e+00> : vector<8x8xf32>
    %367 = tpu.matmul %363, %366, %cst_134 {dimension_numbers = #tpu.dot_dimension_numbers<[1], [0], [0], [1], [0, 0, 1, 1], [], []>} : vector<8x32xf32>, vector<32x8xf32>, vector<8x8xf32> -> vector<8x8xf32>
    %cst_135 = arith.constant 0.176776692 : f32
    %368 = vector.broadcast %cst_135 : f32 to vector<8x8xf32>
    %369 = arith.mulf %367, %368 : vector<8x8xf32>
    %cst_136 = arith.constant dense<0xFF800000> : vector<8xf32>
    %370 = vector.multi_reduction <maximumf>, %369, %cst_136 [1] : vector<8x8xf32> to vector<8xf32>
    %371 = vector.shape_cast %370 : vector<8xf32> to vector<8x1xf32>
    %372 = vector.broadcast %371 : vector<8x1xf32> to vector<8x8xf32>
    %373 = arith.subf %369, %372 : vector<8x8xf32>
    %374 = math.exp %373 : vector<8x8xf32>
    %cst_137 = arith.constant dense<0.000000e+00> : vector<8xf32>
    %375 = vector.multi_reduction <add>, %374, %cst_137 [1] : vector<8x8xf32> to vector<8xf32>
    %376 = vector.shape_cast %375 : vector<8xf32> to vector<8x1xf32>
    %377 = tpu.reciprocal %376 {approx = true} : vector<8x1xf32> -> vector<8x1xf32>
    %378 = vector.broadcast %377 : vector<8x1xf32> to vector<8x8xf32>
    %379 = arith.mulf %374, %378 : vector<8x8xf32>
    %cst_138 = arith.constant dense<0.000000e+00> : vector<8x32xf32>
    %380 = tpu.matmul %379, %365, %cst_138 {dimension_numbers = #tpu.dot_dimension_numbers<[1], [0], [0], [1], [0, 0, 1, 1], [], []>} : vector<8x8xf32>, vector<8x32xf32>, vector<8x32xf32> -> vector<8x32xf32>
    %381 = vector.extract_strided_slice %344 {offsets = [0, 64], sizes = [8, 32], strides = [1, 1]} : vector<8x384xf32> to vector<8x32xf32>
    %382 = vector.extract_strided_slice %344 {offsets = [0, 192], sizes = [8, 32], strides = [1, 1]} : vector<8x384xf32> to vector<8x32xf32>
    %383 = vector.extract_strided_slice %344 {offsets = [0, 320], sizes = [8, 32], strides = [1, 1]} : vector<8x384xf32> to vector<8x32xf32>
    %384 = tpu.transpose %382, [1, 0] : vector<8x32xf32> -> vector<32x8xf32>
    %cst_139 = arith.constant dense<0.000000e+00> : vector<8x8xf32>
    %385 = tpu.matmul %381, %384, %cst_139 {dimension_numbers = #tpu.dot_dimension_numbers<[1], [0], [0], [1], [0, 0, 1, 1], [], []>} : vector<8x32xf32>, vector<32x8xf32>, vector<8x8xf32> -> vector<8x8xf32>
    %cst_140 = arith.constant 0.176776692 : f32
    %386 = vector.broadcast %cst_140 : f32 to vector<8x8xf32>
    %387 = arith.mulf %385, %386 : vector<8x8xf32>
    %cst_141 = arith.constant dense<0xFF800000> : vector<8xf32>
    %388 = vector.multi_reduction <maximumf>, %387, %cst_141 [1] : vector<8x8xf32> to vector<8xf32>
    %389 = vector.shape_cast %388 : vector<8xf32> to vector<8x1xf32>
    %390 = vector.broadcast %389 : vector<8x1xf32> to vector<8x8xf32>
    %391 = arith.subf %387, %390 : vector<8x8xf32>
    %392 = math.exp %391 : vector<8x8xf32>
    %cst_142 = arith.constant dense<0.000000e+00> : vector<8xf32>
    %393 = vector.multi_reduction <add>, %392, %cst_142 [1] : vector<8x8xf32> to vector<8xf32>
    %394 = vector.shape_cast %393 : vector<8xf32> to vector<8x1xf32>
    %395 = tpu.reciprocal %394 {approx = true} : vector<8x1xf32> -> vector<8x1xf32>
    %396 = vector.broadcast %395 : vector<8x1xf32> to vector<8x8xf32>
    %397 = arith.mulf %392, %396 : vector<8x8xf32>
    %cst_143 = arith.constant dense<0.000000e+00> : vector<8x32xf32>
    %398 = tpu.matmul %397, %383, %cst_143 {dimension_numbers = #tpu.dot_dimension_numbers<[1], [0], [0], [1], [0, 0, 1, 1], [], []>} : vector<8x8xf32>, vector<8x32xf32>, vector<8x32xf32> -> vector<8x32xf32>
    %399 = vector.extract_strided_slice %344 {offsets = [0, 96], sizes = [8, 32], strides = [1, 1]} : vector<8x384xf32> to vector<8x32xf32>
    %400 = vector.extract_strided_slice %344 {offsets = [0, 224], sizes = [8, 32], strides = [1, 1]} : vector<8x384xf32> to vector<8x32xf32>
    %401 = vector.extract_strided_slice %344 {offsets = [0, 352], sizes = [8, 32], strides = [1, 1]} : vector<8x384xf32> to vector<8x32xf32>
    %402 = tpu.transpose %400, [1, 0] : vector<8x32xf32> -> vector<32x8xf32>
    %cst_144 = arith.constant dense<0.000000e+00> : vector<8x8xf32>
    %403 = tpu.matmul %399, %402, %cst_144 {dimension_numbers = #tpu.dot_dimension_numbers<[1], [0], [0], [1], [0, 0, 1, 1], [], []>} : vector<8x32xf32>, vector<32x8xf32>, vector<8x8xf32> -> vector<8x8xf32>
    %cst_145 = arith.constant 0.176776692 : f32
    %404 = vector.broadcast %cst_145 : f32 to vector<8x8xf32>
    %405 = arith.mulf %403, %404 : vector<8x8xf32>
    %cst_146 = arith.constant dense<0xFF800000> : vector<8xf32>
    %406 = vector.multi_reduction <maximumf>, %405, %cst_146 [1] : vector<8x8xf32> to vector<8xf32>
    %407 = vector.shape_cast %406 : vector<8xf32> to vector<8x1xf32>
    %408 = vector.broadcast %407 : vector<8x1xf32> to vector<8x8xf32>
    %409 = arith.subf %405, %408 : vector<8x8xf32>
    %410 = math.exp %409 : vector<8x8xf32>
    %cst_147 = arith.constant dense<0.000000e+00> : vector<8xf32>
    %411 = vector.multi_reduction <add>, %410, %cst_147 [1] : vector<8x8xf32> to vector<8xf32>
    %412 = vector.shape_cast %411 : vector<8xf32> to vector<8x1xf32>
    %413 = tpu.reciprocal %412 {approx = true} : vector<8x1xf32> -> vector<8x1xf32>
    %414 = vector.broadcast %413 : vector<8x1xf32> to vector<8x8xf32>
    %415 = arith.mulf %410, %414 : vector<8x8xf32>
    %cst_148 = arith.constant dense<0.000000e+00> : vector<8x32xf32>
    %416 = tpu.matmul %415, %401, %cst_148 {dimension_numbers = #tpu.dot_dimension_numbers<[1], [0], [0], [1], [0, 0, 1, 1], [], []>} : vector<8x8xf32>, vector<8x32xf32>, vector<8x32xf32> -> vector<8x32xf32>
    %417 = tpu.concatenate %362, %380, %398, %416 in 1 : vector<8x32xf32>, vector<8x32xf32>, vector<8x32xf32>, vector<8x32xf32> -> vector<8x128xf32>
    %418 = tpu.concatenate %343, %417 in 0 : vector<8x128xf32>, vector<8x128xf32> -> vector<16x128xf32>
    %c1_149 = arith.constant 1 : index
    %c0_150 = arith.constant 0 : index
    %c0_151 = arith.constant 0 : index
    %419 = vector.load %arg6[%c1_149, %c0_150, %c0_151] : memref<2x128x128xf32, #tpu.memory_space<vmem>>, vector<1x128x128xf32>
    %420 = vector.shape_cast %419 : vector<1x128x128xf32> to vector<128x128xf32>
    %cst_152 = arith.constant dense<0.000000e+00> : vector<16x128xf32>
    %421 = tpu.matmul %418, %420, %cst_152 {dimension_numbers = #tpu.dot_dimension_numbers<[1], [0], [0], [1], [0, 0, 1, 1], [], []>} : vector<16x128xf32>, vector<128x128xf32>, vector<16x128xf32> -> vector<16x128xf32>
    %c1_153 = arith.constant 1 : index
    %c0_154 = arith.constant 0 : index
    %c0_155 = arith.constant 0 : index
    %422 = vector.load %arg7[%c1_153, %c0_154, %c0_155] : memref<2x1x128xf32, #tpu.memory_space<vmem>>, vector<1x1x128xf32>
    %423 = vector.shape_cast %422 : vector<1x1x128xf32> to vector<1x128xf32>
    %424 = vector.broadcast %423 : vector<1x128xf32> to vector<16x128xf32>
    %425 = arith.addf %421, %424 : vector<16x128xf32>
    %426 = arith.addf %262, %425 : vector<16x128xf32>
    %c1_156 = arith.constant 1 : index
    %c0_157 = arith.constant 0 : index
    %c0_158 = arith.constant 0 : index
    %427 = vector.load %arg8[%c1_156, %c0_157, %c0_158] : memref<2x1x128xf32, #tpu.memory_space<vmem>>, vector<1x1x128xf32>
    %428 = vector.shape_cast %427 : vector<1x1x128xf32> to vector<1x128xf32>
    %c1_159 = arith.constant 1 : index
    %c0_160 = arith.constant 0 : index
    %c0_161 = arith.constant 0 : index
    %429 = vector.load %arg9[%c1_159, %c0_160, %c0_161] : memref<2x1x128xf32, #tpu.memory_space<vmem>>, vector<1x1x128xf32>
    %430 = vector.shape_cast %429 : vector<1x1x128xf32> to vector<1x128xf32>
    %cst_162 = arith.constant dense<0.000000e+00> : vector<16xf32>
    %431 = vector.multi_reduction <add>, %426, %cst_162 [1] : vector<16x128xf32> to vector<16xf32>
    %432 = vector.shape_cast %431 : vector<16xf32> to vector<16x1xf32>
    %cst_163 = arith.constant 1.280000e+02 : f32
    %433 = vector.broadcast %cst_163 : f32 to vector<16x1xf32>
    %434 = arith.divf %432, %433 : vector<16x1xf32>
    %435 = vector.broadcast %434 : vector<16x1xf32> to vector<16x128xf32>
    %436 = arith.subf %426, %435 : vector<16x128xf32>
    %437 = arith.mulf %436, %436 : vector<16x128xf32>
    %cst_164 = arith.constant dense<0.000000e+00> : vector<16xf32>
    %438 = vector.multi_reduction <add>, %437, %cst_164 [1] : vector<16x128xf32> to vector<16xf32>
    %439 = vector.shape_cast %438 : vector<16xf32> to vector<16x1xf32>
    %cst_165 = arith.constant 1.280000e+02 : f32
    %440 = vector.broadcast %cst_165 : f32 to vector<16x1xf32>
    %441 = arith.divf %439, %440 : vector<16x1xf32>
    %cst_166 = arith.constant 9.99999996E-13 : f32
    %442 = vector.broadcast %cst_166 : f32 to vector<16x1xf32>
    %443 = arith.addf %441, %442 : vector<16x1xf32>
    %444 = math.rsqrt %443 : vector<16x1xf32>
    %445 = vector.broadcast %444 : vector<16x1xf32> to vector<16x128xf32>
    %446 = arith.mulf %436, %445 : vector<16x128xf32>
    %447 = vector.broadcast %428 : vector<1x128xf32> to vector<16x128xf32>
    %448 = arith.mulf %446, %447 : vector<16x128xf32>
    %449 = vector.broadcast %430 : vector<1x128xf32> to vector<16x128xf32>
    %450 = arith.addf %448, %449 : vector<16x128xf32>
    %c1_167 = arith.constant 1 : index
    %c0_168 = arith.constant 0 : index
    %c0_169 = arith.constant 0 : index
    %451 = vector.load %arg10[%c1_167, %c0_168, %c0_169] : memref<2x128x512xf32, #tpu.memory_space<vmem>>, vector<1x128x512xf32>
    %452 = vector.shape_cast %451 : vector<1x128x512xf32> to vector<128x512xf32>
    %cst_170 = arith.constant dense<0.000000e+00> : vector<16x512xf32>
    %453 = tpu.matmul %450, %452, %cst_170 {dimension_numbers = #tpu.dot_dimension_numbers<[1], [0], [0], [1], [0, 0, 1, 1], [], []>} : vector<16x128xf32>, vector<128x512xf32>, vector<16x512xf32> -> vector<16x512xf32>
    %c1_171 = arith.constant 1 : index
    %c0_172 = arith.constant 0 : index
    %c0_173 = arith.constant 0 : index
    %454 = vector.load %arg11[%c1_171, %c0_172, %c0_173] : memref<2x1x512xf32, #tpu.memory_space<vmem>>, vector<1x1x512xf32>
    %455 = vector.shape_cast %454 : vector<1x1x512xf32> to vector<1x512xf32>
    %456 = vector.broadcast %455 : vector<1x512xf32> to vector<16x512xf32>
    %457 = arith.addf %453, %456 : vector<16x512xf32>
    %458 = arith.mulf %457, %457 : vector<16x512xf32>
    %459 = arith.mulf %457, %458 : vector<16x512xf32>
    %cst_174 = arith.constant 4.471500e-02 : f32
    %460 = vector.broadcast %cst_174 : f32 to vector<16x512xf32>
    %461 = arith.mulf %460, %459 : vector<16x512xf32>
    %462 = arith.addf %457, %461 : vector<16x512xf32>
    %cst_175 = arith.constant 0.797884583 : f32
    %463 = vector.broadcast %cst_175 : f32 to vector<16x512xf32>
    %464 = arith.mulf %463, %462 : vector<16x512xf32>
    %465 = math.tanh %464 : vector<16x512xf32>
    %cst_176 = arith.constant 1.000000e+00 : f32
    %466 = vector.broadcast %cst_176 : f32 to vector<16x512xf32>
    %467 = arith.addf %466, %465 : vector<16x512xf32>
    %cst_177 = arith.constant 5.000000e-01 : f32
    %468 = vector.broadcast %cst_177 : f32 to vector<16x512xf32>
    %469 = arith.mulf %468, %467 : vector<16x512xf32>
    %470 = arith.mulf %457, %469 : vector<16x512xf32>
    %c1_178 = arith.constant 1 : index
    %c0_179 = arith.constant 0 : index
    %c0_180 = arith.constant 0 : index
    %471 = vector.load %arg12[%c1_178, %c0_179, %c0_180] : memref<2x512x128xf32, #tpu.memory_space<vmem>>, vector<1x512x128xf32>
    %472 = vector.shape_cast %471 : vector<1x512x128xf32> to vector<512x128xf32>
    %cst_181 = arith.constant dense<0.000000e+00> : vector<16x128xf32>
    %473 = tpu.matmul %470, %472, %cst_181 {dimension_numbers = #tpu.dot_dimension_numbers<[1], [0], [0], [1], [0, 0, 1, 1], [], []>} : vector<16x512xf32>, vector<512x128xf32>, vector<16x128xf32> -> vector<16x128xf32>
    %c1_182 = arith.constant 1 : index
    %c0_183 = arith.constant 0 : index
    %c0_184 = arith.constant 0 : index
    %474 = vector.load %arg13[%c1_182, %c0_183, %c0_184] : memref<2x1x128xf32, #tpu.memory_space<vmem>>, vector<1x1x128xf32>
    %475 = vector.shape_cast %474 : vector<1x1x128xf32> to vector<1x128xf32>
    %476 = vector.broadcast %475 : vector<1x128xf32> to vector<16x128xf32>
    %477 = arith.addf %473, %476 : vector<16x128xf32>
    %478 = arith.addf %450, %477 : vector<16x128xf32>
    %c1_185 = arith.constant 1 : index
    %c0_186 = arith.constant 0 : index
    %c0_187 = arith.constant 0 : index
    %479 = vector.load %arg14[%c1_185, %c0_186, %c0_187] : memref<2x1x128xf32, #tpu.memory_space<vmem>>, vector<1x1x128xf32>
    %480 = vector.shape_cast %479 : vector<1x1x128xf32> to vector<1x128xf32>
    %c1_188 = arith.constant 1 : index
    %c0_189 = arith.constant 0 : index
    %c0_190 = arith.constant 0 : index
    %481 = vector.load %arg15[%c1_188, %c0_189, %c0_190] : memref<2x1x128xf32, #tpu.memory_space<vmem>>, vector<1x1x128xf32>
    %482 = vector.shape_cast %481 : vector<1x1x128xf32> to vector<1x128xf32>
    %cst_191 = arith.constant dense<0.000000e+00> : vector<16xf32>
    %483 = vector.multi_reduction <add>, %478, %cst_191 [1] : vector<16x128xf32> to vector<16xf32>
    %484 = vector.shape_cast %483 : vector<16xf32> to vector<16x1xf32>
    %cst_192 = arith.constant 1.280000e+02 : f32
    %485 = vector.broadcast %cst_192 : f32 to vector<16x1xf32>
    %486 = arith.divf %484, %485 : vector<16x1xf32>
    %487 = vector.broadcast %486 : vector<16x1xf32> to vector<16x128xf32>
    %488 = arith.subf %478, %487 : vector<16x128xf32>
    %489 = arith.mulf %488, %488 : vector<16x128xf32>
    %cst_193 = arith.constant dense<0.000000e+00> : vector<16xf32>
    %490 = vector.multi_reduction <add>, %489, %cst_193 [1] : vector<16x128xf32> to vector<16xf32>
    %491 = vector.shape_cast %490 : vector<16xf32> to vector<16x1xf32>
    %cst_194 = arith.constant 1.280000e+02 : f32
    %492 = vector.broadcast %cst_194 : f32 to vector<16x1xf32>
    %493 = arith.divf %491, %492 : vector<16x1xf32>
    %cst_195 = arith.constant 9.99999996E-13 : f32
    %494 = vector.broadcast %cst_195 : f32 to vector<16x1xf32>
    %495 = arith.addf %493, %494 : vector<16x1xf32>
    %496 = math.rsqrt %495 : vector<16x1xf32>
    %497 = vector.broadcast %496 : vector<16x1xf32> to vector<16x128xf32>
    %498 = arith.mulf %488, %497 : vector<16x128xf32>
    %499 = vector.broadcast %480 : vector<1x128xf32> to vector<16x128xf32>
    %500 = arith.mulf %498, %499 : vector<16x128xf32>
    %501 = vector.broadcast %482 : vector<1x128xf32> to vector<16x128xf32>
    %502 = arith.addf %500, %501 : vector<16x128xf32>
    %503 = vector.extract_strided_slice %502 {offsets = [0, 0], sizes = [1, 128], strides = [1, 1]} : vector<16x128xf32> to vector<1x128xf32>
    %504 = vector.extract_strided_slice %502 {offsets = [8, 0], sizes = [1, 128], strides = [1, 1]} : vector<16x128xf32> to vector<1x128xf32>
    %505 = tpu.concatenate %503, %504 in 0 : vector<1x128xf32>, vector<1x128xf32> -> vector<2x128xf32>
    %c0_196 = arith.constant 0 : index
    %c0_197 = arith.constant 0 : index
    %506 = vector.load %arg16[%c0_196, %c0_197] : memref<128x128xf32, #tpu.memory_space<vmem>>, vector<128x128xf32>
    %cst_198 = arith.constant dense<0.000000e+00> : vector<2x128xf32>
    %507 = tpu.matmul %505, %506, %cst_198 {dimension_numbers = #tpu.dot_dimension_numbers<[1], [0], [0], [1], [0, 0, 1, 1], [], []>} : vector<2x128xf32>, vector<128x128xf32>, vector<2x128xf32> -> vector<2x128xf32>
    %c0_199 = arith.constant 0 : index
    %c0_200 = arith.constant 0 : index
    %508 = vector.load %arg17[%c0_199, %c0_200] : memref<1x128xf32, #tpu.memory_space<vmem>>, vector<1x128xf32>
    %509 = vector.broadcast %508 : vector<1x128xf32> to vector<2x128xf32>
    %510 = arith.addf %507, %509 : vector<2x128xf32>
    %511 = math.tanh %510 : vector<2x128xf32>
    %c0_201 = arith.constant 0 : index
    %c0_202 = arith.constant 0 : index
    %512 = vector.load %arg18[%c0_201, %c0_202] : memref<128x128xf32, #tpu.memory_space<vmem>>, vector<128x128xf32>
    %cst_203 = arith.constant dense<0.000000e+00> : vector<2x128xf32>
    %513 = tpu.matmul %511, %512, %cst_203 {dimension_numbers = #tpu.dot_dimension_numbers<[1], [0], [0], [1], [0, 0, 1, 1], [], []>} : vector<2x128xf32>, vector<128x128xf32>, vector<2x128xf32> -> vector<2x128xf32>
    %c0_204 = arith.constant 0 : index
    %c0_205 = arith.constant 0 : index
    %514 = vector.load %arg19[%c0_204, %c0_205] : memref<1x128xf32, #tpu.memory_space<vmem>>, vector<1x128xf32>
    %515 = vector.broadcast %514 : vector<1x128xf32> to vector<2x128xf32>
    %516 = arith.addf %513, %515 : vector<2x128xf32>
    %c0_206 = arith.constant 0 : index
    %c0_207 = arith.constant 0 : index
    %517 = vector.load %arg20[%c0_206, %c0_207] : memref<2x128xf32, #tpu.memory_space<vmem>>, vector<2x128xf32>
    tpu.vector_store %arg20[%c0_206, %c0_207], %516 {strides = array<i32>} : memref<2x128xf32, #tpu.memory_space<vmem>>, vector<2x128xf32>,
    %cst_208 = arith.constant dense<0xFF800000> : vector<2xf32>
    %518 = vector.multi_reduction <maximumf>, %516, %cst_208 [1] : vector<2x128xf32> to vector<2xf32>
    %519 = vector.shape_cast %518 : vector<2xf32> to vector<2x1xf32>
    %520 = vector.broadcast %519 : vector<2x1xf32> to vector<2x128xf32>
    %521 = arith.subf %516, %520 : vector<2x128xf32>
    %522 = math.exp %521 : vector<2x128xf32>
    %cst_209 = arith.constant dense<0.000000e+00> : vector<2xf32>
    %523 = vector.multi_reduction <add>, %522, %cst_209 [1] : vector<2x128xf32> to vector<2xf32>
    %524 = vector.shape_cast %523 : vector<2xf32> to vector<2x1xf32>
    %525 = math.log %524 : vector<2x1xf32>
    %526 = arith.addf %519, %525 : vector<2x1xf32>
    %527 = tpu.iota {dimensions = array<i32: 0>} : vector<2x128xi32>
    %528 = tpu.iota {dimensions = array<i32: 1>} : vector<2x128xi32>
    %c0_i32 = arith.constant 0 : i32
    %529 = vector.broadcast %c0_i32 : i32 to vector<2x128xi32>
    %c0_i32_210 = arith.constant 0 : i32
    %530 = vector.broadcast %c0_i32_210 : i32 to vector<2x128xi32>
    %531 = arith.cmpi eq, %527, %530 : vector<2x128xi32>
    %c0_211 = arith.constant 0 : index
    %532 = memref.load %arg0[%c0_211] : memref<2xi32, #tpu.memory_space<smem>>
    %533 = vector.broadcast %532 : i32 to vector<2x128xi32>
    %534 = arith.select %531, %533, %529 : vector<2x128xi1>, vector<2x128xi32>
    %c1_i32 = arith.constant 1 : i32
    %535 = vector.broadcast %c1_i32 : i32 to vector<2x128xi32>
    %536 = arith.cmpi eq, %527, %535 : vector<2x128xi32>
    %c1_212 = arith.constant 1 : index
    %537 = memref.load %arg0[%c1_212] : memref<2xi32, #tpu.memory_space<smem>>
    %538 = vector.broadcast %537 : i32 to vector<2x128xi32>
    %539 = arith.select %536, %538, %534 : vector<2x128xi1>, vector<2x128xi32>
    %540 = arith.cmpi eq, %528, %539 : vector<2x128xi32>
    %541 = arith.extui %540 : vector<2x128xi1> to vector<2x128xi32>
    %542 = arith.sitofp %541 : vector<2x128xi32> to vector<2x128xf32>
    %543 = arith.mulf %516, %542 : vector<2x128xf32>
    %cst_213 = arith.constant dense<0.000000e+00> : vector<2xf32>
    %544 = vector.multi_reduction <add>, %543, %cst_213 [1] : vector<2x128xf32> to vector<2xf32>
    %545 = vector.shape_cast %544 : vector<2xf32> to vector<2x1xf32>
    %546 = arith.subf %526, %545 : vector<2x1xf32>
    %547 = vector.shape_cast %546 : vector<2x1xf32> to vector<1x2x1xf32>
    %cst_214 = arith.constant dense<0.000000e+00> : vector<1xf32>
    %548 = vector.multi_reduction <add>, %547, %cst_214 [1, 2] : vector<1x2x1xf32> to vector<1xf32>
    %549 = vector.shape_cast %548 : vector<1xf32> to vector<1x1x1xf32>
    %550 = vector.extract %549[0, 0, 0] : f32 from vector<1x1x1xf32>
    %cst_215 = arith.constant 2.000000e+00 : f32
    %551 = arith.divf %550, %cst_215 : f32
    %c0_216 = arith.constant 0 : index
    %c0_217 = arith.constant 0 : index
    %552 = memref.load %arg21[%c0_216, %c0_217] : memref<1x1xf32, #tpu.memory_space<smem>>
    memref.store %551, %arg21[%c0_216, %c0_217] : memref<1x1xf32, #tpu.memory_space<smem>>
    return
  }
}

</mosaic_0001>

<bundles_post_ra>
// kernel: google_bert_classifier_forward.1
= control target key start
LH: loop header
LB: loop body
LE: loop exit
PB: predicated region body
PF: predicated region fallthrough
CT: control target
= control target key end

     0   :  { %s7534_s0 = inlined_call_operand.vmem [shape: s32[2], index: 0, kind: input, shape index: {}]   ;;  %s7535_s1 = inlined_call_operand.vmem [shape: f32[16,128], index: 1, kind: input, shape index: {}]   ;;  %s7536_s2 = inlined_call_operand.vmem [shape: f32[1,128], index: 2, kind: input, shape index: {}]   ;;  %s7537_s3 = inlined_call_operand.vmem [shape: f32[1,128], index: 3, kind: input, shape index: {}]   ;;  %s7538_s4 = inlined_call_operand.hbm [shape: f32[2,128,384], index: 4, kind: input, shape index: {}]   ;;  %s7539_s5 = inlined_call_operand.vmem [shape: f32[2,1,384], index: 5, kind: input, shape index: {}]   ;;  %s7540_s6 = inlined_call_operand.hbm [shape: f32[2,128,128], index: 6, kind: input, shape index: {}]   ;;  %s7541_s7 = inlined_call_operand.vmem [shape: f32[2,1,128], index: 7, kind: input, shape index: {}]   ;;  %s7542_s8 = inlined_call_operand.vmem [shape: f32[2,1,128], index: 8, kind: input, shape index: {}]   ;;  %s7543_s9 = inlined_call_operand.vmem [shape: f32[2,1,128], index: 9, kind: input, shape index: {}]   ;;  %s7544_s10 = inlined_call_operand.hbm [shape: f32[2,128,512], index: 10, kind: input, shape index: {}]   ;;  %s7545_s11 = inlined_call_operand.vmem [shape: f32[2,1,512], index: 11, kind: input, shape index: {}]   ;;  %s7546_s12 = inlined_call_operand.hbm [shape: f32[2,512,128], index: 12, kind: input, shape index: {}]   ;;  %s7547_s13 = inlined_call_operand.vmem [shape: f32[2,1,128], index: 13, kind: input, shape index: {}]   ;;  %s7548_s14 = inlined_call_operand.vmem [shape: f32[2,1,128], index: 14, kind: input, shape index: {}]   ;;  %s7549_s15 = inlined_call_operand.vmem [shape: f32[2,1,128], index: 15, kind: input, shape index: {}]   ;;  %s7550_s16 = inlined_call_operand.vmem [shape: f32[128,128], index: 16, kind: input, shape index: {}]   ;;  %s7551_s17 = inlined_call_operand.vmem [shape: f32[1,128], index: 17, kind: input, shape index: {}]   ;;  %s7552_s18 = inlined_call_operand.hbm [shape: f32[128,128], index: 18, kind: input, shape index: {}]   ;;  %s7553_s19 = inlined_call_operand.vmem [shape: f32[1,128], index: 19, kind: input, shape index: {}]   ;;  %s7554_s20 = inlined_call_operand.hbm [shape: f32[2,128], index: 20, kind: output, shape index: {0}]   ;;  %s7555_s21 = inlined_call_operand.hbm [shape: f32[1,1], index: 21, kind: output, shape index: {1}]  }
   0x1   :  { %7561 = sst [smem:[#allocation22_spill]] %s7534_s0 }
   0x2   :  { %7562 = sst [smem:[#allocation23_spill]] %s7535_s1 }
   0x3   :  { %7563 = sst [smem:[#allocation24_spill]] %s7536_s2 }
   0x4   :  { %7564 = sst [smem:[#allocation25_spill]] %s7537_s3 }
   0x5   :  { %7565 = sst [smem:[#allocation26_spill]] %s7538_s4 }
   0x6   :  { %7566 = sst [smem:[#allocation27_spill]] %s7539_s5 }
   0x7   :  { %7567 = sst [smem:[#allocation28_spill]] %s7553_s19 }
   0x8   :  { %7568 = sst [smem:[#allocation29_spill]] %s7554_s20 }
   0x9   :  { %7569 = sst [smem:[#allocation30_spill]] %s7555_s21 }
   0xa   :  { %27 = vsyncpa [#allocation6], 0 }
   0xb   :  { %28 = vsyncpa [#allocation3], 0 }
   0xc   :  { %29 = vsyncpa [#allocation9], 0 }
   0xd   :  { %30 = vsyncpa [#allocation12], 0 }
   0xe   :  { %31 = vsyncpa [#allocation4], 0 }
   0xf   :  { %32 = vsyncpa [#allocation5], 0  ;;  %s6647_s2 = smov [#allocation8]   ;;  %s6481_s3 = scalar_lea.hbm %s7540_s6, 4096 }
  0x10   :  { %s68_s25 = sshll.u32 %s6647_s2, 4  ;;  %p6482_p0 = scmp.ne.s32.totalorder %s7540_s6, %s6481_s3  ;;  %s69_s25 = int_to_ptr.vmem [resolvable:$true] %s68_s25 }
  0x11   :  { %p6485_p1 = scmp.lt.u32.totalorder %s6481_s3, %s7540_s6 }
  0x13   :  { %p6487_p2 = pnand %p6485_p1, %p6482_p0 }
  0x15   :  { %6490 = shalt.err (!%p6487_p2)
}
  0x16   :  { %s6491_s30 = scalar_lea.vmem %s69_s25, 4096  ;;  %p6496_p4 = scmp.lt.s32.totalorder %s69_s25, %s69_s25 }
  0x17   :  { %p6492_p3 = scmp.ne.s32.totalorder %s69_s25, %s6491_s30  ;;  %p6497_p5 = scmp.lt.s32.totalorder %s6491_s30, %s6491_s30 }
  0x19   :  { %p6498_p6 = por %p6497_p5, %p6496_p4 }
  0x1b   :  { %p6499_p7 = pnand %p6498_p6, %p6492_p3 }
  0x1d   :  { %6502 = shalt.err (!%p6499_p7)
}
  0x1e   :  { %s6648_s5 = smov 128   ;;  %s6649_s22 = smov 8  }
  0x1f   :  { %74 = dma.hbm_to_vmem [thread:$0]  %s7540_s6, 4096, %s69_s25, [#allocation9], %s6648_s5, %s6648_s5, %s6649_s22  }
  0x20   :  { %s6650_s24 = smov [#allocation11]   ;;  %s7570_s3 = sld [smem:[#allocation22_spill]] }
  0x21   :  { %s100_s2 = sshll.u32 %s6650_s24, 4  ;;  %s6503_s4 = scalar_lea.hbm %s7546_s12, 16384  ;;  %s101_s2 = int_to_ptr.vmem [resolvable:$true] %s100_s2 }
  0x22   :  { %p6504_p8 = scmp.ne.s32.totalorder %s7546_s12, %s6503_s4  ;;  %p6507_p9 = scmp.lt.u32.totalorder %s6503_s4, %s7546_s12 }
  0x24   :  { %p6509_p10 = pnand %p6507_p9, %p6504_p8 }
  0x26   :  { %s39_s28 = sshll.u32 %s7570_s3, 4  ;;  %s40_s28 = int_to_ptr.vmem [resolvable:$true] %s39_s28 }
  0x27   :  { %6512 = shalt.err (!%p6509_p10)
}
  0x28   :  { %s6513_s6 = scalar_lea.vmem %s101_s2, 16384  ;;  %p6518_p12 = scmp.lt.s32.totalorder %s101_s2, %s101_s2 }
  0x29   :  { %p6514_p11 = scmp.ne.s32.totalorder %s101_s2, %s6513_s6  ;;  %p6519_p13 = scmp.lt.s32.totalorder %s6513_s6, %s6513_s6 }
  0x2b   :  { %p6520_p0 = por %p6519_p13, %p6518_p12 }
  0x2d   :  { %p6521_p1 = pnand %p6520_p0, %p6514_p11 }
  0x2f   :  { %6524 = shalt.err (!%p6521_p1)
}
  0x30   :  { %106 = dma.hbm_to_vmem [thread:$0]  %s7546_s12, 16384, %s101_s2, [#allocation12], %s6648_s5, %s6648_s5, %s6649_s22  }
  0x31   :  { %s6525_s21 = scalar_lea.vmem %s40_s28, 16  ;;  %p6530_p3 = scmp.lt.s32.totalorder %s40_s28, %s40_s28 }
  0x32   :  { %p6526_p2 = scmp.ne.s32.totalorder %s40_s28, %s6525_s21  ;;  %p6531_p4 = scmp.lt.s32.totalorder %s6525_s21, %s6525_s21 }
  0x34   :  { %p6532_p5 = por %p6531_p4, %p6530_p3 }
  0x36   :  { %p6533_p6 = pnand %p6532_p5, %p6526_p2 }
  0x38   :  { %6536 = shalt.err (!%p6533_p6)
}
  0x39   :  { %s6651_s19 = smov [#allocation2]   ;;  %s6652_s20 = smov [#allocation7]  }
  0x3a   :  { %42 = dma.vmem_to_smem %s40_s28, 16, %s6651_s19, [#allocation6]  }
  0x3b   :  { %s54_s1 = sshll.u32 %s6652_s20, 4  ;;  %s7571_s27 = sld [smem:[#allocation26_spill]]  ;;  %s55_s1 = int_to_ptr.vmem [resolvable:$true] %s54_s1 }
  0x41   :  { %s6537_s3 = scalar_lea.hbm %s7571_s27, 12288 }
  0x42   :  { %p6538_p7 = scmp.ne.s32.totalorder %s7571_s27, %s6537_s3  ;;  %p6541_p8 = scmp.lt.u32.totalorder %s6537_s3, %s7571_s27 }
  0x44   :  { %p6543_p9 = pnand %p6541_p8, %p6538_p7 }
  0x46   :  { %6546 = shalt.err (!%p6543_p9)
}
  0x47   :  { %s6547_s4 = scalar_lea.vmem %s55_s1, 12288  ;;  %p6552_p11 = scmp.lt.s32.totalorder %s55_s1, %s55_s1 }
  0x48   :  { %p6548_p10 = scmp.ne.s32.totalorder %s55_s1, %s6547_s4  ;;  %p6553_p12 = scmp.lt.s32.totalorder %s6547_s4, %s6547_s4 }
  0x4a   :  { %p6554_p13 = por %p6553_p12, %p6552_p11 }
  0x4c   :  { %p6555_p0 = pnand %p6554_p13, %p6548_p10 }
  0x4e   :  { %6558 = shalt.err (!%p6555_p0)
}
  0x4f   :  { %s6653_s28 = smov 384   ;;  %s6654_s30 = smov 24  }
  0x50   :  { %60 = dma.hbm_to_vmem [thread:$0]  %s7571_s27, 12288, %s55_s1, [#allocation3], %s6653_s28, %s6653_s28, %s6654_s30  }
  0x51   :  { %s6655_s23 = smov [#allocation10]   ;;  %s6559_s24 = scalar_lea.hbm %s7544_s10, 16384 }
  0x52   :  { %s86_s21 = sshll.u32 %s6655_s23, 4  ;;  %p6560_p1 = scmp.ne.s32.totalorder %s7544_s10, %s6559_s24  ;;  %s87_s21 = int_to_ptr.vmem [resolvable:$true] %s86_s21 }
  0x53   :  { %p6563_p2 = scmp.lt.u32.totalorder %s6559_s24, %s7544_s10 }
  0x55   :  { %p6565_p3 = pnand %p6563_p2, %p6560_p1 }
  0x57   :  { %6568 = shalt.err (!%p6565_p3)
}
  0x58   :  { %s6569_s12 = scalar_lea.vmem %s87_s21, 16384  ;;  %p6574_p5 = scmp.lt.s32.totalorder %s87_s21, %s87_s21 }
  0x59   :  { %p6570_p4 = scmp.ne.s32.totalorder %s87_s21, %s6569_s12  ;;  %p6575_p6 = scmp.lt.s32.totalorder %s6569_s12, %s6569_s12 }
  0x5b   :  { %p6576_p7 = por %p6575_p6, %p6574_p5 }
  0x5d   :  { %p6577_p8 = pnand %p6576_p7, %p6570_p4 }
  0x5f   :  { %6580 = shalt.err (!%p6577_p8)
}
  0x60   :  { %s6656_s1 = smov 512   ;;  %s6657_s27 = smov 32  }
  0x61   :  { %92 = dma.hbm_to_vmem [thread:$0]  %s7544_s10, 16384, %s87_s21, [#allocation9], %s6656_s1, %s6656_s1, %s6657_s27  }
  0x62   :  { %s6658_s28 = smov [#allocation13]   ;;  %s6581_s23 = scalar_lea.hbm %s7552_s18, 2048 }
  0x63   :  { %s122_s30 = sshll.u32 %s6658_s28, 4  ;;  %p6582_p9 = scmp.ne.s32.totalorder %s7552_s18, %s6581_s23  ;;  %s123_s30 = int_to_ptr.vmem [resolvable:$true] %s122_s30 }
  0x64   :  { %p6585_p10 = scmp.lt.u32.totalorder %s6581_s23, %s7552_s18 }
  0x66   :  { %p6587_p11 = pnand %p6585_p10, %p6582_p9 }
  0x68   :  { %6590 = shalt.err (!%p6587_p11)
}
  0x69   :  { %s6591_s3 = scalar_lea.vmem %s123_s30, 2048  ;;  %p6596_p13 = scmp.lt.s32.totalorder %s123_s30, %s123_s30 }
  0x6a   :  { %p6592_p12 = scmp.ne.s32.totalorder %s123_s30, %s6591_s3  ;;  %p6597_p0 = scmp.lt.s32.totalorder %s6591_s3, %s6591_s3 }
  0x6c   :  { %p6598_p1 = por %p6597_p0, %p6596_p13 }
  0x6e   :  { %p6599_p2 = pnand %p6598_p1, %p6592_p12 }
  0x70   :  { %6602 = shalt.err (!%p6599_p2)
}
  0x71   :  { %128 = dma.hbm_to_vmem [thread:$0]  %s7552_s18, 2048, %s123_s30, [#allocation12], %s6648_s5, %s6648_s5, %s6649_s22  }
  0x72   :  { %6635 = dma.done.wait [#allocation6], 16  }
  0x73   :  { %6636 = vsyncadd [#allocation6], 4294967280 }
  0x74   :  { %6637 = dma.done.wait [#allocation3], 12288  }
  0x75   :  { %6638 = vsyncadd [#allocation3], 4294955008 }
  0x76   :  { %6639 = dma.done.wait [#allocation9], 20480  }
  0x77   :  { %6640 = vsyncadd [#allocation9], 4294946816 }
  0x78   :  { %6641 = dma.done.wait [#allocation12], 18432  }
  0x79   :  { %6642 = vsyncadd [#allocation12], 4294948864 }
  0x7a   :  { %149 = sfence }
  0x7b   :  { %s7572_s12 = sld [smem:[#allocation23_spill]]  ;;  %v194_v2 = vld [vmem:[#allocation7 + $0x8] sm:$0xff]  ;;  %v197_v3 = vld [vmem:[#allocation7 + $0x20] sm:$0xff]  ;;  %v196_v6 = vld [vmem:[#allocation7 + $0x18] sm:$0xff]  ;;  %v6659_v47 = vmov 0.0   ;;  %s7573_s22 = sld [smem:[#allocation24_spill]] }
  0x7c   :  { %v193_v4 = vld [vmem:[#allocation7] sm:$0xff]  ;;  %v5812_v5 = vpack.c.bf16 %v197_v3, %v194_v2  ;;  %v200_v7 = vld [vmem:[#allocation7 + $0x38] sm:$0xff]  ;;  %v203_v8 = vld [vmem:[#allocation7 + $0x50] sm:$0xff]  ;;  %322 = vmatprep.mubr.f32.mxu0 %v6659_v47  ;;  %s7574_s30 = sld [smem:[#allocation25_spill]]  ;;  %vm6660_vm0 = vmmov 0   ;;  %s7575_s23 = sld [smem:[#allocation27_spill]] }
  0x7d   :  { %v5814_v9 = vpack.c.bf16 %v196_v6, %v193_v4  ;;  %v5816_v10 = vpack.c.bf16 %v203_v8, %v200_v7  ;;  %v199_v11 = vld [vmem:[#allocation7 + $0x30] sm:$0xff]  ;;  %v202_v12 = vld [vmem:[#allocation7 + $0x48] sm:$0xff]  ;;  %v209_v14 = vld [vmem:[#allocation7 + $0x80] sm:$0xff]  ;;  %vm410_vm1 = vcmask 261120   ;;  %vm488_vm2 = vcmask 64512   ;;  %s6661_s19 = smov 96  }
  0x7e   :  { %v206_v13 = vld [vmem:[#allocation7 + $0x68] sm:$0xff]  ;;  %5813 = vmatprep.subr.bf16.mxu0 %v5812_v5  ;;  %v5818_v15 = vpack.c.bf16 %v202_v12, %v199_v11  ;;  %v205_v17 = vld [vmem:[#allocation7 + $0x60] sm:$0xff]  ;;  %v208_v18 = vld [vmem:[#allocation7 + $0x78] sm:$0xff]  ;;  %s6662_s20 = smov 64   ;;  %vm1085_vm3 = vcmask 523264   ;;  %vm1087_vm4 = vcmask 785408  }
  0x7f   :  { %5815 = vmatpush1.bf16.msra.mxu0 %v5814_v9  ;;  %v5820_v16 = vpack.c.bf16 %v209_v14, %v206_v13  ;;  %v5822_v19 = vpack.c.bf16 %v208_v18, %v205_v17  ;;  %v212_v28 = vld [vmem:[#allocation7 + $0x98] sm:$0xff]  ;;  %v215_v29 = vld [vmem:[#allocation7 + $0xb0] sm:$0xff]  ;;  %v214_v32 = vld [vmem:[#allocation7 + $0xa8] sm:$0xff]  ;;  %vm4776_vm5 = vcmask 1040384   ;;  %s5118_s1 = sld [smem:[#allocation2 + $0x1]]  ;;  %s7576_s18 = sld [smem:[#allocation28_spill]] }
  0x80   :  { %5817 = vmatprep.subr.bf16.mxu0 %v5816_v10  ;;  %v5824_v30 = vpack.c.bf16 %v215_v29, %v212_v28  ;;  %v211_v31 = vld [vmem:[#allocation7 + $0x90] sm:$0xff]  ;;  %v218_v34 = vld [vmem:[#allocation7 + $0xc8] sm:$0xff]  ;;  %v221_v35 = vld [vmem:[#allocation7 + $0xe0] sm:$0xff]  ;;  %vm4966_vm9 = vcmask 1041408   ;;  %vm4999_vm10 = vcmask 1024   ;;  %s6664_s5 = smov [#allocation14]  }
  0x81   :  { %v150_v0 = vld [vmem:[%s7572_s12] sm:$0xff]  ;;  %v151_v1 = vld [vmem:[%s7572_s12 + $0x8] sm:$0xff]  ;;  %v5826_v33 = vpack.c.bf16 %v214_v32, %v211_v31  ;;  %v5828_v36 = vpack.c.bf16 %v221_v35, %v218_v34  ;;  %v220_v38 = vld [vmem:[#allocation7 + $0xd8] sm:$0xff]  ;;  %s4984_s12 = sld [smem:[#allocation2]] }
  0x82   :  { %154 = vadd.xlane.f32.xlu0 %v150_v0  ;;  %156 = vadd.xlane.f32.xlu1 %v151_v1  ;;  %v217_v37 = vld [vmem:[#allocation7 + $0xc0] sm:$0xff]  ;;  %v224_v40 = vld [vmem:[#allocation7 + $0xf8] sm:$0xff]  ;;  %v227_v41 = vld [vmem:[#allocation7 + $0x110] sm:$0xff] }
  0x83   :  { %5819 = vmatpush1.bf16.msra.mxu0 %v5818_v15  ;;  %v5830_v39 = vpack.c.bf16 %v220_v38, %v217_v37  ;;  %v223_v42 = vld [vmem:[#allocation7 + $0xf0] sm:$0xff]  ;;  %v5832_v43 = vpack.c.bf16 %v227_v41, %v224_v40  ;;  %v226_v44 = vld [vmem:[#allocation7 + $0x108] sm:$0xff]  ;;  %v233_v46 = vld [vmem:[#allocation7 + $0x140] sm:$0xff] }
  0x84   :  { %5821 = vmatprep.subr.bf16.mxu0 %v5820_v16  ;;  %v230_v45 = vld [vmem:[#allocation7 + $0x128] sm:$0xff]  ;;  %v5834_v48 = vpack.c.bf16 %v226_v44, %v223_v42  ;;  %v229_v50 = vld [vmem:[#allocation7 + $0x120] sm:$0xff]  ;;  %v232_v51 = vld [vmem:[#allocation7 + $0x138] sm:$0xff] }
  0x85   :  { %v5836_v49 = vpack.c.bf16 %v233_v46, %v230_v45  ;;  %v236_v52 = vld [vmem:[#allocation7 + $0x158] sm:$0xff]  ;;  %v239_v53 = vld [vmem:[#allocation7 + $0x170] sm:$0xff]  ;;  %v5838_v54 = vpack.c.bf16 %v232_v51, %v229_v50  ;;  %v238_v57 = vld [vmem:[#allocation7 + $0x168] sm:$0xff] }
  0x86   :  { %v5840_v55 = vpack.c.bf16 %v239_v53, %v236_v52  ;;  %v235_v56 = vld [vmem:[#allocation7 + $0x150] sm:$0xff]  ;;  %v198_v60 = vld [vmem:[#allocation7 + $0x28] sm:$0xff]  ;;  %v201_v61 = vld [vmem:[#allocation7 + $0x40] sm:$0xff] }
  0x87   :  { %5823 = vmatpush1.bf16.msra.mxu0 %v5822_v19  ;;  %v5842_v58 = vpack.c.bf16 %v238_v57, %v235_v56  ;;  %v195_v59 = vld [vmem:[#allocation7 + $0x10] sm:$0xff]  ;;  %v204_v63 = vld [vmem:[#allocation7 + $0x58] sm:$0xff]  ;;  %v210_v2 = vld [vmem:[#allocation7 + $0x88] sm:$0xff] }
  0x88   :  { %5825 = vmatprep.subr.bf16.mxu0 %v5824_v30  ;;  %v5844_v62 = vpack.c.bf16 %v198_v60, %v195_v59  ;;  %v213_v4 = vld [vmem:[#allocation7 + $0xa0] sm:$0xff]  ;;  %v216_v5 = vld [vmem:[#allocation7 + $0xb8] sm:$0xff]  ;;  %v219_v7 = vld [vmem:[#allocation7 + $0xd0] sm:$0xff] }
  0x89   :  { %v5856_v6 = vpack.c.bf16 %v216_v5, %v213_v4  ;;  %v222_v8 = vld [vmem:[#allocation7 + $0xe8] sm:$0xff]  ;;  %v225_v10 = vld [vmem:[#allocation7 + $0x100] sm:$0xff]  ;;  %v228_v11 = vld [vmem:[#allocation7 + $0x118] sm:$0xff] }
  0x8a   :  { %5845 = vmatprep.subr.bf16.mxu1 %v5844_v62  ;;  %v5860_v9 = vpack.c.bf16 %v222_v8, %v219_v7  ;;  %v5864_v12 = vpack.c.bf16 %v228_v11, %v225_v10  ;;  %v231_v13 = vld [vmem:[#allocation7 + $0x130] sm:$0xff]  ;;  %v234_v14 = vld [vmem:[#allocation7 + $0x148] sm:$0xff]  ;;  %v237_v16 = vld [vmem:[#allocation7 + $0x160] sm:$0xff] }
  0x8b   :  { %5827 = vmatpush1.bf16.msra.mxu0 %v5826_v33  ;;  %5847 = vmatpush3.bf16.msra.mxu1 %v5844_v62  ;;  %v5868_v15 = vpack.c.bf16 %v234_v14, %v231_v13  ;;  %v240_v17 = vld [vmem:[#allocation7 + $0x178] sm:$0xff]  ;;  %v5046_v28 = vld [vmem:[%s7573_s22] ss:$0 sm:$0xff]  ;;  %s5021_s22 = sshll.u32 %s6664_s5, 4  ;;  %s5022_s22 = int_to_ptr.vmem [resolvable:$true] %s5021_s22 }
  0x8c   :  { %5829 = vmatprep.subr.bf16.mxu0 %v5828_v36  ;;  %v5872_v18 = vpack.c.bf16 %v240_v17, %v237_v16  ;;  %v5047_v31 = vld [vmem:[%s7574_s30] ss:$0 sm:$0xff]  ;;  %s6603_s4 = scalar_lea.vmem %s5022_s22, 32  ;;  %p6608_p4 = scmp.lt.s32.totalorder %s5022_s22, %s5022_s22 }
  0x8d   :  { %p6604_p3 = scmp.ne.s32.totalorder %s5022_s22, %s6603_s4  ;;  %p6609_p5 = scmp.lt.s32.totalorder %s6603_s4, %s6603_s4 }
  0x8f   :  { %5831 = vmatpush1.bf16.msra.mxu0 %v5830_v39  ;;  %v241_v39 = vld [vmem:[%s7575_s23] sm:$0x7]  ;;  %p6610_p6 = por %p6609_p5, %p6608_p4 }
  0x90   :  { %5833 = vmatprep.subr.bf16.mxu0 %v5832_v43 }
  0x91   :  { %p6611_p7 = pnand %p6610_p6, %p6604_p3 }
  0x93   :  { %5835 = vmatpush1.bf16.msra.mxu0 %v5834_v48 }
  0x94   :  { %5837 = vmatprep.subr.bf16.mxu0 %v5836_v49 }
  0x97   :  { %5839 = vmatpush1.bf16.msra.mxu0 %v5838_v54 }
  0x98   :  { %5841 = vmatprep.subr.bf16.mxu0 %v5840_v55 }
  0x9b   :  { %5843 = vmatpush1.bf16.msra.mxu0 %v5842_v58 }
  0x9c   :  { %5522 = vmatprep.subr.mxu0 %v6659_v47 }
 0x10f   :  { %v155_v20 = vpop.xlane.xlu0 %154  ;;  %v157_v21 = vpop.xlane.xlu1 %156 }
 0x110   :  { %v159_v22 = vmul.f32 0.0078125, %v155_v20  ;;  %v160_v23 = vmul.f32 0.0078125, %v157_v21 }
 0x112   :  { %v6855_v24 = vsub.f32 %v150_v0, %v159_v22  ;;  %v6857_v25 = vsub.f32 %v151_v1, %v160_v23  ;;  %v5848_v0 = vpack.c.bf16 %v204_v63, %v201_v61  ;;  %v207_v1 = vld [vmem:[#allocation7 + $0x70] sm:$0xff] }
 0x113   :  { %v5852_v3 = vpack.c.bf16 %v210_v2, %v207_v1 }
 0x114   :  { %v163_v26 = vmul.f32 %v6855_v24, %v6855_v24  ;;  %v164_v27 = vmul.f32 %v6857_v25, %v6857_v25  ;;  %5849 = vmatprep.subr.bf16.mxu1 %v5848_v0 }
 0x115   :  { %5851 = vmatpush3.bf16.msra.mxu1 %v5848_v0 }
 0x116   :  { %165 = vadd.xlane.f32.xlu0 %v163_v26  ;;  %167 = vadd.xlane.f32.xlu1 %v164_v27 }
 0x117   :  { %5853 = vmatprep.subr.bf16.mxu1 %v5852_v3 }
 0x119   :  { %5855 = vmatpush3.bf16.msra.mxu1 %v5852_v3 }
 0x11a   :  { %5857 = vmatprep.subr.bf16.mxu1 %v5856_v6 }
 0x11d   :  { %5859 = vmatpush3.bf16.msra.mxu1 %v5856_v6 }
 0x11e   :  { %5861 = vmatprep.subr.bf16.mxu1 %v5860_v9 }
 0x121   :  { %5863 = vmatpush3.bf16.msra.mxu1 %v5860_v9 }
 0x122   :  { %5865 = vmatprep.subr.bf16.mxu1 %v5864_v12 }
 0x125   :  { %5867 = vmatpush3.bf16.msra.mxu1 %v5864_v12 }
 0x126   :  { %5869 = vmatprep.subr.bf16.mxu1 %v5868_v15 }
 0x129   :  { %5871 = vmatpush3.bf16.msra.mxu1 %v5868_v15 }
 0x12a   :  { %5873 = vmatprep.subr.bf16.mxu1 %v5872_v18 }
 0x12d   :  { %5875 = vmatpush3.bf16.msra.mxu1 %v5872_v18 }
 0x12e   :  { %5477 = vmatprep.subr.mxu1 %v6659_v47 }
 0x1a3   :  { %v166_v19 = vpop.xlane.xlu0 %165  ;;  %v168_v20 = vpop.xlane.xlu1 %167 }
 0x1a4   :  { %v169_v21 = vmul.f32 0.0078125, %v166_v19  ;;  %v170_v22 = vmul.f32 0.0078125, %v168_v20 }
 0x1a6   :  { %v171_v23 = vadd.f32 1e-12, %v169_v21  ;;  %v172_v26 = vadd.f32 1e-12, %v170_v22 }
 0x1a8   :  { %6359 = vrsqrt.f32 %v171_v23 }
 0x1a9   :  { %6361 = vrsqrt.f32 %v172_v26 }
 0x1b2   :  { %v6360_v27 = vpop.eup %6359 }
 0x1b3   :  { %v6362_v29 = vpop.eup %6361  ;;  %v175_v30 = vmul.f32 %v6360_v27, %v6855_v24  ;;  %v243_v24 = vlaneseq }
 0x1b4   :  { %v176_v32 = vmul.f32 %v6362_v29, %v6857_v25 }
 0x1b5   :  { %v183_v33 = vmul.f32 %v5046_v28, %v175_v30  ;;  %v6888_v25 = vshrl.u32 %v243_v24, 7 }
 0x1b6   :  { %v184_v34 = vmul.f32 %v5046_v28, %v176_v32 }
 0x1b7   :  { %v6874_v35 = vadd.f32 %v5047_v31, %v183_v33  ;;  %v6891_v37 = vsub.s32 1, %v6888_v25  ;;  %v6894_v38 = vsub.s32 2, %v6888_v25  ;;  %v6900_v40 = vsub.s32 0, %v6888_v25 }
 0x1b8   :  { %v6876_v36 = vadd.f32 %v5047_v31, %v184_v34  ;;  %vm4983_vm6 = vcmp.eq.s32.totalorder %v6888_v25, 0  ;;  %vm4987_vm7 = vcmp.eq.s32.totalorder %v6888_v25, 1 }
 0x1b9   :  { %323 = vmatmul.mubr.f32.vlgmr.msra.gmra.mrb[0].mxu0 %v6874_v35  ;;  %5474 = vmatprep.mubr.f32.mxu1 %v6874_v35  ;;  %v250_v41 = vrot.slane %v241_v39, %v6891_v37  ;;  %v254_v42 = vrot.slane %v241_v39, %v6894_v38  ;;  %v246_v44 = vrot.slane %v241_v39, %v6900_v40 }
 0x1ba   :  { %328 = vmatprep.mubr.f32.mxu0 %v6659_v47  ;;  %5475 = vmatmul.mubr.f32.vlgmr.msra.gmra.mrb[0].mxu1 %v6876_v36 }
 0x1bb   :  { %5479 = vmatprep.mubr.msk.f32.mxu1 %vm6660_vm0, %v6659_v47 }
 0x1bd   :  { %329 = vmatmul.mubr.f32.gmra.mrb[2].mxu0 %v6876_v36 }
 0x1be   :  { %5524 = vmatprep.mubr.msk.f32.mxu0 %vm6660_vm0, %v6659_v47 }
 0x28c   :  { %v324_v43 = vpop.f32.mrb[0].mxu0 }
 0x28d   :  { %v326_v45 = vpop.f32.mrb[1].mxu0  ;;  %v5476_v46 = vpop.f32.mrb[0].mxu1  ;;  %v6914_v53 = vadd.f32 %v324_v43, %v246_v44 }
 0x28e   :  { %v6905_v48 = vadd.f32 %v326_v45, %v250_v41  ;;  %v6907_v49 = vadd.f32 %v5476_v46, %v254_v42  ;;  %v401_v50 = vpop.f32.mrb[1].mxu1 }
 0x28f   :  { %v6911_v52 = vadd.f32 %v401_v50, %v254_v42 }
 0x290   :  { %5478 = vmatpush3.xpose.msk.msra.mxu1 %vm410_vm1, %v6905_v48  ;;  %v330_v51 = vpop.f32.mrb[2].mxu0  ;;  %5523 = vmatpush3.msra.mxu0 %v6907_v49 }
 0x291   :  { %v6916_v54 = vadd.f32 %v330_v51, %v246_v44  ;;  %v332_v55 = vpop.f32.mrb[3].mxu0  ;;  %5482 = vmatprep.subr.mxu1 %v6659_v47  ;;  %5532 = vmatprep.subr.mxu0 %v6659_v47 }
 0x292   :  { %v6920_v56 = vadd.f32 %v332_v55, %v250_v41 }
 0x293   :  { %5480 = vmatmul.mubr.msk.f32.vlgmr.msra.gmra.mrb[2].mxu1 %vm410_vm1, %v6914_v53 }
 0x294   :  { %5483 = vmatpush3.msra.mxu1 %v6911_v52  ;;  %5484 = vmatprep.mubr.msk.f32.mxu1 %vm6660_vm0, %v6659_v47 }
 0x295   :  { %5487 = vmatprep.subr.mxu1 %v6659_v47 }
 0x366   :  { %v483_v57 = vpop.f32.mrb[2].mxu1 }
 0x367   :  { %v487_v58 = vmul.f32 0.17677669, %v483_v57  ;;  %v5481_v59 = vpop.f32.mrb[3].mxu1 }
 0x369   :  { %v489_v60 = vsel %vm488_vm2, %v487_v58, -inf }
 0x36a   :  { %490 = vmax.xlane.f32.xlu0 %v489_v60 }
 0x380   :  { %575 = vrot.lane.b32.xlu0 %v6905_v48, %s6661_s19 }
 0x3f7   :  { %v491_v61 = vpop.xlane.xlu0 %490 }
 0x3f8   :  { %v492_v62 = vsub.f32 %v487_v58, %v491_v61 }
 0x3fa   :  { %v493_v63 = vmul.f32 1.442695, %v492_v62 }
 0x3fb   :  { %v576_v5 = vpop.permute.xlu0 %575 }
 0x3fc   :  { %6363 = vpow2.f32 %v493_v63 }
 0x406   :  { %v6364_v0 = vpop.eup %6363 }
 0x407   :  { %v495_v1 = vsel %vm488_vm2, %v6364_v0, 0.0 }
 0x408   :  { %496 = vadd.xlane.f32.xlu1 %v495_v1 }
 0x419   :  { %573 = vrot.lane.b32.xlu1 %v6914_v53, %s6661_s19 }
 0x495   :  { %v497_v2 = vpop.xlane.xlu1 %496 }
 0x496   :  { %6365 = vrcp.f32 %v497_v2 }
 0x499   :  { %v574_v6 = vpop.permute.xlu1 %573 }
 0x4a0   :  { %v6366_v3 = vpop.eup %6365 }
 0x4a1   :  { %v499_v4 = vmul.f32 %v6366_v3, %v6364_v0 }
 0x4a3   :  { %5485 = vmatmul.mubr.msk.f32.vlgmr.msra.gmra.mrb[4].mxu1 %vm488_vm2, %v499_v4 }
 0x4a4   :  { %5488 = vmatpush3.xpose.msk.msra.mxu1 %vm410_vm1, %v576_v5  ;;  %5489 = vmatprep.mubr.msk.f32.mxu1 %vm6660_vm0, %v6659_v47 }
 0x4a5   :  { %5492 = vmatprep.subr.mxu1 %v6659_v47 }
 0x4a7   :  { %5490 = vmatmul.mubr.msk.f32.vlgmr.msra.gmra.mrb[6].mxu1 %vm410_vm1, %v574_v6 }
 0x4a8   :  { %5494 = vmatprep.mubr.msk.f32.mxu1 %vm6660_vm0, %v6659_v47 }
 0x576   :  { %v6942_v7 = vpop.f32.mrb[4].mxu1 }
 0x577   :  { %v5486_v8 = vpop.f32.mrb[5].mxu1 }
 0x57a   :  { %v647_v9 = vpop.f32.mrb[6].mxu1 }
 0x57b   :  { %v651_v10 = vmul.f32 0.17677669, %v647_v9  ;;  %v5491_v11 = vpop.f32.mrb[7].mxu1 }
 0x57d   :  { %v652_v12 = vsel %vm488_vm2, %v651_v10, -inf }
 0x57e   :  { %653 = vmax.xlane.f32.xlu1 %v652_v12 }
 0x58f   :  { %742 = vrot.lane.b32.xlu1 %v6905_v48, %s6662_s20 }
 0x593   :  { %740 = vrot.lane.b32.xlu1 %v6914_v53, %s6662_s20 }
 0x60b   :  { %v654_v13 = vpop.xlane.xlu1 %653 }
 0x60c   :  { %v655_v14 = vsub.f32 %v651_v10, %v654_v13 }
 0x60e   :  { %v656_v15 = vmul.f32 1.442695, %v655_v14 }
 0x60f   :  { %v743_v21 = vpop.permute.xlu1 %742 }
 0x610   :  { %6367 = vpow2.f32 %v656_v15 }
 0x613   :  { %v741_v23 = vpop.permute.xlu1 %740 }
 0x61a   :  { %v6368_v16 = vpop.eup %6367 }
 0x61b   :  { %v658_v17 = vsel %vm488_vm2, %v6368_v16, 0.0 }
 0x61c   :  { %659 = vadd.xlane.f32.xlu0 %v658_v17 }
 0x632   :  { %664 = vrot.lane.b32.xlu0 %v6911_v52, %s6661_s19 }
 0x6a9   :  { %v660_v18 = vpop.xlane.xlu0 %659 }
 0x6aa   :  { %6369 = vrcp.f32 %v660_v18 }
 0x6ad   :  { %v665_v19 = vpop.permute.xlu0 %664 }
 0x6ae   :  { %5493 = vmatpush3.msra.mxu1 %v665_v19 }
 0x6af   :  { %5497 = vmatprep.subr.mxu1 %v6659_v47 }
 0x6b4   :  { %v6370_v20 = vpop.eup %6369 }
 0x6b5   :  { %v662_v22 = vmul.f32 %v6370_v20, %v6368_v16 }
 0x6b7   :  { %5495 = vmatmul.mubr.msk.f32.vlgmr.msra.gmra.mrb[8].mxu1 %vm488_vm2, %v662_v22 }
 0x6b8   :  { %5498 = vmatpush3.xpose.msk.msra.mxu1 %vm410_vm1, %v743_v21  ;;  %5499 = vmatprep.mubr.msk.f32.mxu1 %vm6660_vm0, %v6659_v47 }
 0x6b9   :  { %5502 = vmatprep.subr.mxu1 %v6659_v47 }
 0x6bb   :  { %5500 = vmatmul.mubr.msk.f32.vlgmr.msra.gmra.mrb[10].mxu1 %vm410_vm1, %v741_v23 }
 0x6bc   :  { %5504 = vmatprep.mubr.msk.f32.mxu1 %vm6660_vm0, %v6659_v47 }
 0x78a   :  { %v6961_v26 = vpop.f32.mrb[8].mxu1 }
 0x78b   :  { %v5496_v27 = vpop.f32.mrb[9].mxu1 }
 0x78e   :  { %v814_v28 = vpop.f32.mrb[10].mxu1 }
 0x78f   :  { %v818_v29 = vmul.f32 0.17677669, %v814_v28  ;;  %v5501_v30 = vpop.f32.mrb[11].mxu1 }
 0x791   :  { %v819_v31 = vsel %vm488_vm2, %v818_v29, -inf }
 0x792   :  { %820 = vmax.xlane.f32.xlu1 %v819_v31 }
 0x7a3   :  { %908 = vrot.lane.b32.xlu1 %v6905_v48, %s6657_s27 }
 0x7a7   :  { %906 = vrot.lane.b32.xlu1 %v6914_v53, %s6657_s27 }
 0x7ab   :  { %1252 = vrot.lane.b32.xlu1 %v6920_v56, %s6661_s19 }
 0x81f   :  { %v821_v32 = vpop.xlane.xlu1 %820 }
 0x820   :  { %v822_v33 = vsub.f32 %v818_v29, %v821_v32 }
 0x822   :  { %v823_v34 = vmul.f32 1.442695, %v822_v33 }
 0x823   :  { %v909_v45 = vpop.permute.xlu1 %908 }
 0x824   :  { %6371 = vpow2.f32 %v823_v34 }
 0x827   :  { %v907_v48 = vpop.permute.xlu1 %906 }
 0x82b   :  { %v1253_v0 = vpop.permute.xlu1 %1252 }
 0x82e   :  { %v6372_v39 = vpop.eup %6371 }
 0x82f   :  { %v825_v41 = vsel %vm488_vm2, %v6372_v39, 0.0 }
 0x830   :  { %826 = vadd.xlane.f32.xlu0 %v825_v41 }
 0x846   :  { %830 = vrot.lane.b32.xlu0 %v6911_v52, %s6662_s20 }
 0x8bd   :  { %v827_v42 = vpop.xlane.xlu0 %826 }
 0x8be   :  { %6373 = vrcp.f32 %v827_v42 }
 0x8c1   :  { %v831_v43 = vpop.permute.xlu0 %830 }
 0x8c2   :  { %5503 = vmatpush3.msra.mxu1 %v831_v43 }
 0x8c3   :  { %5507 = vmatprep.subr.mxu1 %v6659_v47 }
 0x8c8   :  { %v6374_v44 = vpop.eup %6373 }
 0x8c9   :  { %v829_v46 = vmul.f32 %v6374_v44, %v6372_v39 }
 0x8cb   :  { %5505 = vmatmul.mubr.msk.f32.vlgmr.msra.gmra.mrb[12].mxu1 %vm488_vm2, %v829_v46 }
 0x8cc   :  { %5508 = vmatpush3.xpose.msk.msra.mxu1 %vm410_vm1, %v909_v45  ;;  %5509 = vmatprep.mubr.msk.f32.mxu1 %vm6660_vm0, %v6659_v47 }
 0x8cd   :  { %5512 = vmatprep.subr.mxu1 %v6659_v47 }
 0x8cf   :  { %5510 = vmatmul.mubr.msk.f32.vlgmr.msra.gmra.mrb[14].mxu1 %vm410_vm1, %v907_v48 }
 0x8d0   :  { %5514 = vmatprep.mubr.msk.f32.mxu1 %vm6660_vm0, %v6659_v47 }
 0x99e   :  { %v6982_v50 = vpop.f32.mrb[12].mxu1 }
 0x99f   :  { %v5506_v51 = vpop.f32.mrb[13].mxu1 }
 0x9a2   :  { %v980_v53 = vpop.f32.mrb[14].mxu1 }
 0x9a3   :  { %v984_v55 = vmul.f32 0.17677669, %v980_v53  ;;  %v5511_v57 = vpop.f32.mrb[15].mxu1 }
 0x9a5   :  { %v985_v58 = vsel %vm488_vm2, %v984_v55, -inf }
 0x9a6   :  { %986 = vmax.xlane.f32.xlu0 %v985_v58 }
 0x9bc   :  { %996 = vrot.lane.b32.xlu0 %v6911_v52, %s6657_s27 }
 0x9c0   :  { %1250 = vrot.lane.b32.xlu0 %v6916_v54, %s6661_s19 }
 0x9c4   :  { %1417 = vrot.lane.b32.xlu0 %v6916_v54, %s6662_s20 }
 0x9c8   :  { %1583 = vrot.lane.b32.xlu0 %v6916_v54, %s6657_s27 }
 0xa33   :  { %v987_v59 = vpop.xlane.xlu0 %986 }
 0xa34   :  { %v988_v60 = vsub.f32 %v984_v55, %v987_v59 }
 0xa36   :  { %v989_v61 = vmul.f32 1.442695, %v988_v60 }
 0xa37   :  { %v997_v62 = vpop.permute.xlu0 %996 }
 0xa38   :  { %6375 = vpow2.f32 %v989_v61  ;;  %5513 = vmatpush3.msra.mxu1 %v997_v62 }
 0xa39   :  { %5517 = vmatprep.subr.mxu1 %v6659_v47 }
 0xa3b   :  { %v1251_v4 = vpop.permute.xlu0 %1250 }
 0xa42   :  { %v6376_v63 = vpop.eup %6375 }
 0xa43   :  { %v991_v52 = vsel %vm488_vm2, %v6376_v63, 0.0 }
 0xa44   :  { %992 = vadd.xlane.f32.xlu1 %v991_v52 }
 0xa55   :  { %1419 = vrot.lane.b32.xlu1 %v6920_v56, %s6662_s20 }
 0xa59   :  { %1585 = vrot.lane.b32.xlu1 %v6920_v56, %s6657_s27 }
 0xad1   :  { %v993_v1 = vpop.xlane.xlu1 %992 }
 0xad2   :  { %6377 = vrcp.f32 %v993_v1 }
 0xad5   :  { %v1420_v5 = vpop.permute.xlu1 %1419 }
 0xad9   :  { %v1586_v6 = vpop.permute.xlu1 %1585 }
 0xadc   :  { %v6378_v2 = vpop.eup %6377 }
 0xadd   :  { %v995_v3 = vmul.f32 %v6378_v2, %v6376_v63 }
 0xadf   :  { %5515 = vmatmul.mubr.msk.f32.vlgmr.msra.gmra.mrb[16].mxu1 %vm488_vm2, %v995_v3 }
 0xae0   :  { %5518 = vmatpush3.xpose.msk.msra.mxu1 %vm410_vm1, %v6920_v56  ;;  %5519 = vmatprep.mubr.msk.f32.mxu1 %vm6660_vm0, %v6659_v47  ;;  %v1418_v56 = vpop.permute.xlu0 %1417 }
 0xae1   :  { %5527 = vmatprep.subr.mxu1 %v6659_v47 }
 0xae3   :  { %5520 = vmatmul.mubr.msk.f32.vlgmr.msra.gmra.mrb[18].mxu1 %vm410_vm1, %v6916_v54 }
 0xae4   :  { %5528 = vmatpush3.xpose.msk.msra.mxu1 %vm410_vm1, %v1253_v0  ;;  %5529 = vmatprep.mubr.msk.f32.mxu1 %vm6660_vm0, %v6659_v47  ;;  %v1584_v54 = vpop.permute.xlu0 %1583 }
 0xae5   :  { %5537 = vmatprep.subr.mxu1 %v6659_v47 }
 0xae7   :  { %5530 = vmatmul.mubr.msk.f32.vlgmr.msra.gmra.mrb[20].mxu1 %vm410_vm1, %v1251_v4 }
 0xae8   :  { %5538 = vmatpush3.xpose.msk.msra.mxu1 %vm410_vm1, %v1420_v5  ;;  %5539 = vmatprep.mubr.msk.f32.mxu1 %vm6660_vm0, %v6659_v47 }
 0xae9   :  { %5547 = vmatprep.subr.mxu1 %v6659_v47 }
 0xaeb   :  { %5540 = vmatmul.mubr.msk.f32.vlgmr.msra.gmra.mrb[22].mxu1 %vm410_vm1, %v1418_v56 }
 0xaec   :  { %5548 = vmatpush3.xpose.msk.msra.mxu1 %vm410_vm1, %v1586_v6  ;;  %5549 = vmatprep.mubr.msk.f32.mxu1 %vm6660_vm0, %v6659_v47 }
 0xaef   :  { %5550 = vmatmul.mubr.msk.f32.vlgmr.msra.gmra.mrb[24].mxu1 %vm410_vm1, %v1584_v54 }
 0xbb2   :  { %v7021_v8 = vpop.f32.mrb[16].mxu1 }
 0xbb3   :  { %v5516_v9 = vpop.f32.mrb[17].mxu1 }
 0xbb4   :  { %v1764_v9 = vld [vmem:[#allocation8] sm:$0xff] }
 0xbb6   :  { %v1161_v10 = vpop.f32.mrb[18].mxu1 }
 0xbb7   :  { %v1165_v11 = vmul.f32 0.17677669, %v1161_v10  ;;  %v5521_v12 = vpop.f32.mrb[19].mxu1  ;;  %v1765_v10 = vld [vmem:[#allocation8 + $0x8] sm:$0xff] }
 0xbb8   :  { %v5876_v12 = vpack.c.bf16 %v1765_v10, %v1764_v9  ;;  %v1905_v9 = vld [vmem:[#allocation10 + $0x8] sm:$0xff] }
 0xbb9   :  { %v1166_v13 = vsel %vm488_vm2, %v1165_v11, -inf  ;;  %v1909_v10 = vld [vmem:[#allocation10 + $0x28] sm:$0xff] }
 0xbba   :  { %1167 = vmax.xlane.f32.xlu1 %v1166_v13  ;;  %v1324_v14 = vpop.f32.mrb[20].mxu1  ;;  %v1767_v13 = vld [vmem:[#allocation8 + $0x18] sm:$0xff]  ;;  %5877 = vmatprep.subr.bf16.mxu1 %v5876_v12 }
 0xbbb   :  { %v1328_v15 = vmul.f32 0.17677669, %v1324_v14  ;;  %v5531_v16 = vpop.f32.mrb[21].mxu1  ;;  %5879 = vmatpush3.bf16.msra.mxu1 %v5876_v12  ;;  %v5908_v12 = vpack.c.bf16 %v1909_v10, %v1905_v9  ;;  %v1936_v9 = vld [vmem:[#allocation10 + $0x100] sm:$0xff] }
 0xbbc   :  { %v1769_v16 = vld [vmem:[#allocation8 + $0x28] sm:$0xff]  ;;  %v1940_v10 = vld [vmem:[#allocation10 + $0x120] sm:$0xff] }
 0xbbd   :  { %v1329_v17 = vsel %vm488_vm2, %v1328_v15, -inf }
 0xbbe   :  { %1330 = vmax.xlane.f32.xlu0 %v1329_v17  ;;  %v1491_v18 = vpop.f32.mrb[22].mxu1 }
 0xbbf   :  { %v1495_v19 = vmul.f32 0.17677669, %v1491_v18  ;;  %v5541_v20 = vpop.f32.mrb[23].mxu1  ;;  %v1770_v18 = vld [vmem:[#allocation8 + $0x30] sm:$0xff] }
 0xbc1   :  { %v1496_v21 = vsel %vm488_vm2, %v1495_v19, -inf }
 0xbc2   :  { %1497 = vmax.xlane.f32.xlu0 %v1496_v21  ;;  %v1657_v22 = vpop.f32.mrb[24].mxu1  ;;  %v1772_v21 = vld [vmem:[#allocation8 + $0x40] sm:$0xff] }
 0xbc3   :  { %v1661_v23 = vmul.f32 0.17677669, %v1657_v22  ;;  %v5551_v27 = vpop.f32.mrb[25].mxu1  ;;  %v1773_v22 = vld [vmem:[#allocation8 + $0x48] sm:$0xff] }
 0xbc4   :  { %v1774_v27 = vld [vmem:[#allocation8 + $0x50] sm:$0xff] }
 0xbc5   :  { %v1662_v28 = vsel %vm488_vm2, %v1661_v23, -inf }
 0xbc6   :  { %1663 = vmax.xlane.f32.xlu0 %v1662_v28  ;;  %v1775_v28 = vld [vmem:[#allocation8 + $0x58] sm:$0xff] }
 0xbcb   :  { %1341 = vrot.lane.b32.xlu1 %v6907_v49, %s6661_s19 }
 0xc47   :  { %v1168_v29 = vpop.xlane.xlu1 %1167 }
 0xc48   :  { %v1169_v30 = vsub.f32 %v1165_v11, %v1168_v29  ;;  %v1766_v11 = vld [vmem:[#allocation8 + $0x10] sm:$0xff]  ;;  %v5896_v29 = vpack.c.bf16 %v1775_v28, %v1774_v27  ;;  %v1919_v27 = vld [vmem:[#allocation10 + $0x78] sm:$0xff] }
 0xc49   :  { %v5880_v14 = vpack.c.bf16 %v1767_v13, %v1766_v11  ;;  %v1907_v11 = vld [vmem:[#allocation10 + $0x18] sm:$0xff] }
 0xc4a   :  { %v1170_v31 = vmul.f32 1.442695, %v1169_v30  ;;  %v1776_v30 = vld [vmem:[#allocation8 + $0x60] sm:$0xff]  ;;  %v1911_v13 = vld [vmem:[#allocation10 + $0x38] sm:$0xff] }
 0xc4b   :  { %v1331_v32 = vpop.xlane.xlu0 %1330  ;;  %v1342_v60 = vpop.permute.xlu1 %1341  ;;  %5881 = vmatprep.subr.bf16.mxu1 %v5880_v14 }
 0xc4c   :  { %6379 = vpow2.f32 %v1170_v31  ;;  %v1332_v33 = vsub.f32 %v1328_v15, %v1331_v32  ;;  %v1768_v15 = vld [vmem:[#allocation8 + $0x20] sm:$0xff]  ;;  %5883 = vmatpush3.bf16.msra.mxu1 %v5880_v14  ;;  %v1777_v31 = vld [vmem:[#allocation8 + $0x68] sm:$0xff] }
 0xc4d   :  { %v5884_v17 = vpack.c.bf16 %v1769_v16, %v1768_v15  ;;  %v5900_v32 = vpack.c.bf16 %v1777_v31, %v1776_v30  ;;  %v1904_v14 = vld [vmem:[#allocation10] sm:$0xff]  ;;  %v5940_v16 = vpack.c.bf16 %v1911_v13, %v1907_v11  ;;  %v1914_v31 = vld [vmem:[#allocation10 + $0x50] sm:$0xff] }
 0xc4e   :  { %v1333_v34 = vmul.f32 1.442695, %v1332_v33  ;;  %v1908_v15 = vld [vmem:[#allocation10 + $0x20] sm:$0xff]  ;;  %v1938_v13 = vld [vmem:[#allocation10 + $0x110] sm:$0xff] }
 0xc4f   :  { %v1498_v39 = vpop.xlane.xlu0 %1497  ;;  %5885 = vmatprep.subr.bf16.mxu1 %v5884_v17  ;;  %v1916_v30 = vld [vmem:[#allocation10 + $0x60] sm:$0xff] }
 0xc50   :  { %6381 = vpow2.f32 %v1333_v34  ;;  %v1499_v41 = vsub.f32 %v1495_v19, %v1498_v39  ;;  %v1771_v19 = vld [vmem:[#allocation8 + $0x38] sm:$0xff]  ;;  %5887 = vmatpush3.bf16.msra.mxu1 %v5884_v17  ;;  %v1778_v34 = vld [vmem:[#allocation8 + $0x70] sm:$0xff]  ;;  %v5910_v17 = vpack.c.bf16 %v1908_v15, %v1904_v14 }
 0xc51   :  { %v5888_v20 = vpack.c.bf16 %v1771_v19, %v1770_v18  ;;  %v1779_v39 = vld [vmem:[#allocation8 + $0x78] sm:$0xff]  ;;  %v1906_v18 = vld [vmem:[#allocation10 + $0x10] sm:$0xff] }
 0xc52   :  { %v1500_v42 = vmul.f32 1.442695, %v1499_v41  ;;  %v1910_v19 = vld [vmem:[#allocation10 + $0x30] sm:$0xff] }
 0xc53   :  { %v1664_v43 = vpop.xlane.xlu0 %1663  ;;  %5889 = vmatprep.subr.bf16.mxu1 %v5888_v20  ;;  %v1942_v14 = vld [vmem:[#allocation10 + $0x130] sm:$0xff] }
 0xc54   :  { %6383 = vpow2.f32 %v1500_v42  ;;  %v1665_v44 = vsub.f32 %v1661_v23, %v1664_v43  ;;  %v5892_v23 = vpack.c.bf16 %v1773_v22, %v1772_v21  ;;  %5891 = vmatpush3.bf16.msra.mxu1 %v5888_v20  ;;  %v5904_v42 = vpack.c.bf16 %v1779_v39, %v1778_v34  ;;  %v1913_v20 = vld [vmem:[#allocation10 + $0x48] sm:$0xff] }
 0xc55   :  { %v5942_v21 = vpack.c.bf16 %v1910_v19, %v1906_v18  ;;  %v1917_v22 = vld [vmem:[#allocation10 + $0x68] sm:$0xff]  ;;  %v5958_v15 = vpack.c.bf16 %v1942_v14, %v1938_v13  ;;  %v1947_v18 = vld [vmem:[#allocation10 + $0x158] sm:$0xff] }
 0xc56   :  { %v6380_v45 = vpop.eup %6379  ;;  %v1666_v46 = vmul.f32 1.442695, %v1665_v44  ;;  %5893 = vmatprep.subr.bf16.mxu1 %v5892_v23  ;;  %v1921_v34 = vld [vmem:[#allocation10 + $0x88] sm:$0xff] }
 0xc57   :  { %v1172_v48 = vsel %vm488_vm2, %v6380_v45, 0.0  ;;  %v1925_v39 = vld [vmem:[#allocation10 + $0xa8] sm:$0xff] }
 0xc58   :  { %6385 = vpow2.f32 %v1666_v46  ;;  %1173 = vadd.xlane.f32.xlu1 %v1172_v48  ;;  %5895 = vmatpush3.bf16.msra.mxu1 %v5892_v23  ;;  %v1915_v23 = vld [vmem:[#allocation10 + $0x58] sm:$0xff]  ;;  %v2217_v13 = vld [vmem:[#allocation11 + $0x8] sm:$0xff] }
 0xc59   :  { %5897 = vmatprep.subr.bf16.mxu1 %v5896_v29  ;;  %v5944_v28 = vpack.c.bf16 %v1919_v27, %v1915_v23 }
 0xc5a   :  { %v6382_v51 = vpop.eup %6381 }
 0xc5b   :  { %v1335_v53 = vsel %vm488_vm2, %v6382_v51, 0.0 }
 0xc5c   :  { %1336 = vadd.xlane.f32.xlu0 %v1335_v53  ;;  %5899 = vmatpush3.bf16.msra.mxu1 %v5896_v29  ;;  %v1912_v29 = vld [vmem:[#allocation10 + $0x40] sm:$0xff] }
 0xc5d   :  { %5901 = vmatprep.subr.bf16.mxu1 %v5900_v32 }
 0xc5e   :  { %v6384_v55 = vpop.eup %6383 }
 0xc5f   :  { %v1502_v57 = vsel %vm488_vm2, %v6384_v55, 0.0 }
 0xc60   :  { %1503 = vadd.xlane.f32.xlu1 %v1502_v57  ;;  %5903 = vmatpush3.bf16.msra.mxu1 %v5900_v32  ;;  %v5914_v32 = vpack.c.bf16 %v1916_v30, %v1912_v29  ;;  %v1953_v30 = vld [vmem:[#allocation10 + $0x188] sm:$0xff] }
 0xc61   :  { %5905 = vmatprep.subr.bf16.mxu1 %v5904_v42 }
 0xc62   :  { %v6386_v58 = vpop.eup %6385 }
 0xc63   :  { %v1668_v59 = vsel %vm488_vm2, %v6386_v58, 0.0 }
 0xc64   :  { %1669 = vadd.xlane.f32.xlu0 %v1668_v59  ;;  %5907 = vmatpush3.bf16.msra.mxu1 %v5904_v42  ;;  %v5916_v42 = vpack.c.bf16 %v1925_v39, %v1921_v34  ;;  %v1959_v34 = vld [vmem:[#allocation10 + $0x1b8] sm:$0xff]  ;;  %v1952_v39 = vld [vmem:[#allocation10 + $0x180] sm:$0xff] }
 0xc65   :  { %5941 = vmatprep.subr.bf16.mxu1 %v5940_v16  ;;  %v1945_v16 = vld [vmem:[#allocation10 + $0x148] sm:$0xff] }
 0xc71   :  { %1673 = vrot.lane.b32.xlu1 %v6907_v49, %s6657_s27 }
 0xc7a   :  { %1507 = vrot.lane.b32.xlu0 %v6907_v49, %s6662_s20 }
 0xce5   :  { %v1174_v61 = vpop.xlane.xlu1 %1173 }
 0xce6   :  { %6387 = vrcp.f32 %v1174_v61 }
 0xce9   :  { %v1337_v62 = vpop.xlane.xlu0 %1336 }
 0xcea   :  { %6389 = vrcp.f32 %v1337_v62 }
 0xced   :  { %v1504_v63 = vpop.xlane.xlu1 %1503 }
 0xcee   :  { %6391 = vrcp.f32 %v1504_v63 }
 0xcf0   :  { %v6388_v52 = vpop.eup %6387 }
 0xcf1   :  { %v1176_v0 = vmul.f32 %v6388_v52, %v6380_v45  ;;  %v1670_v1 = vpop.xlane.xlu0 %1669  ;;  %v1674_v56 = vpop.permute.xlu1 %1673 }
 0xcf2   :  { %6393 = vrcp.f32 %v1670_v1 }
 0xcf3   :  { %5525 = vmatmul.mubr.msk.f32.vlgmr.msra.gmra.mrb[4].mxu0 %vm488_vm2, %v1176_v0 }
 0xcf4   :  { %v6390_v2 = vpop.eup %6389  ;;  %5533 = vmatpush3.msra.mxu0 %v1342_v60  ;;  %5534 = vmatprep.mubr.msk.f32.mxu0 %vm6660_vm0, %v6659_v47 }
 0xcf5   :  { %v1339_v3 = vmul.f32 %v6390_v2, %v6382_v51  ;;  %v1508_v49 = vpop.permute.xlu0 %1507  ;;  %5542 = vmatprep.subr.mxu0 %v6659_v47 }
 0xcf7   :  { %5535 = vmatmul.mubr.msk.f32.vlgmr.msra.gmra.mrb[6].mxu0 %vm488_vm2, %v1339_v3 }
 0xcf8   :  { %v6392_v4 = vpop.eup %6391  ;;  %5543 = vmatpush3.msra.mxu0 %v1508_v49  ;;  %5544 = vmatprep.mubr.msk.f32.mxu0 %vm6660_vm0, %v6659_v47 }
 0xcf9   :  { %v1506_v5 = vmul.f32 %v6392_v4, %v6384_v55  ;;  %5552 = vmatprep.subr.mxu0 %v6659_v47  ;;  %v5072_v4 = vld [vmem:[%s7541_s7] ss:$0 sm:$0xff] }
 0xcfb   :  { %5545 = vmatmul.mubr.msk.f32.vlgmr.msra.gmra.mrb[8].mxu0 %vm488_vm2, %v1506_v5 }
 0xcfc   :  { %v6394_v6 = vpop.eup %6393  ;;  %5553 = vmatpush3.msra.mxu0 %v1674_v56  ;;  %5554 = vmatprep.mubr.msk.f32.mxu0 %vm6660_vm0, %v6659_v47 }
 0xcfd   :  { %v1672_v54 = vmul.f32 %v6394_v6, %v6386_v58  ;;  %5909 = vmatprep.subr.bf16.mxu0 %v5908_v12  ;;  %v5926_v12 = vpack.c.bf16 %v1940_v10, %v1936_v9  ;;  %v2264_v9 = vld [vmem:[#allocation11 + $0x180] sm:$0xff] }
 0xcff   :  { %5555 = vmatmul.mubr.msk.f32.vlgmr.msra.gmra.mrb[10].mxu0 %vm488_vm2, %v1672_v54 }
 0xd00   :  { %2054 = vmatprep.mubr.f32.mxu0 %v6659_v47  ;;  %5911 = vmatpush1.bf16.msra.mxu0 %v5910_v17  ;;  %v1949_v17 = vld [vmem:[#allocation10 + $0x168] sm:$0xff] }
 0xd01   :  { %v5928_v19 = vpack.c.bf16 %v1949_v17, %v1945_v16  ;;  %v2248_v16 = vld [vmem:[#allocation11 + $0x100] sm:$0xff]  ;;  %v2249_v17 = vld [vmem:[#allocation11 + $0x108] sm:$0xff] }
 0xdc6   :  { %v1246_v33 = vpop.f32.mrb[4].mxu0 }
 0xdc7   :  { %v5526_v41 = vpop.f32.mrb[5].mxu0 }
 0xdca   :  { %v1413_v43 = vpop.f32.mrb[6].mxu0 }
 0xdcb   :  { %v6329_v44 = vpack.i.bf16 %v1413_v43, %v6961_v26  ;;  %v5536_v45 = vpop.f32.mrb[7].mxu0  ;;  %v1923_v43 = vld [vmem:[#allocation10 + $0x98] sm:$0xff] }
 0xdcc   :  { %v1920_v45 = vld [vmem:[#allocation10 + $0x80] sm:$0xff] }
 0xdcd   :  { %6330 = vrot.lane.b32.xlu1 %v6329_v44, %s6657_s27  ;;  %v1927_v44 = vld [vmem:[#allocation10 + $0xb8] sm:$0xff] }
 0xdce   :  { %v1579_v46 = vpop.f32.mrb[8].mxu0 }
 0xdcf   :  { %v6334_v48 = vpack.i.bf16 %v1579_v46, %v6982_v50  ;;  %v5546_v51 = vpop.f32.mrb[9].mxu0  ;;  %v5948_v46 = vpack.c.bf16 %v1927_v44, %v1923_v43  ;;  %v1954_v44 = vld [vmem:[#allocation10 + $0x190] sm:$0xff] }
 0xdd0   :  { %v1922_v51 = vld [vmem:[#allocation10 + $0x90] sm:$0xff] }
 0xdd1   :  { %6335 = vrot.lane.b32.xlu1 %v6334_v48, %s6662_s20  ;;  %v1924_v48 = vld [vmem:[#allocation10 + $0xa0] sm:$0xff] }
 0xdd2   :  { %v1745_v53 = vpop.f32.mrb[10].mxu0 }
 0xdd3   :  { %v6339_v55 = vpack.i.bf16 %v1745_v53, %v7021_v8  ;;  %v5556_v57 = vpop.f32.mrb[11].mxu0  ;;  %v1926_v53 = vld [vmem:[#allocation10 + $0xb0] sm:$0xff] }
 0xdd4   :  { %v5950_v57 = vpack.c.bf16 %v1926_v53, %v1922_v51  ;;  %v1965_v51 = vld [vmem:[#allocation10 + $0x1e8] sm:$0xff]  ;;  %v1963_v53 = vld [vmem:[#allocation10 + $0x1d8] sm:$0xff] }
 0xdd5   :  { %6340 = vrot.lane.b32.xlu0 %v6339_v55, %s6661_s19  ;;  %v5918_v55 = vpack.c.bf16 %v1924_v48, %v1920_v45  ;;  %v1958_v45 = vld [vmem:[#allocation10 + $0x1b0] sm:$0xff] }
 0xdd6   :  { %v5966_v48 = vpack.c.bf16 %v1958_v45, %v1954_v44  ;;  %v2221_v44 = vld [vmem:[#allocation11 + $0x28] sm:$0xff] }
 0xe3f   :  { %v6331_v58 = vpop.permute.xlu1 %6330 }
 0xe40   :  { %v6333_v60 = vunpack.i.h.bf16 %v6331_v58  ;;  %v6332_v61 = vunpack.i.l.bf16 %v6331_v58 }
 0xe42   :  { %v1761_v50 = vsel %vm410_vm1, %v1246_v33, %v6333_v60  ;;  %v1084_v1 = vsel %vm410_vm1, %v6942_v7, %v6332_v61  ;;  %v1918_v33 = vld [vmem:[#allocation10 + $0x70] sm:$0xff] }
 0xe43   :  { %v6336_v59 = vpop.permute.xlu1 %6335  ;;  %v5946_v41 = vpack.c.bf16 %v1918_v33, %v1914_v31  ;;  %v1957_v31 = vld [vmem:[#allocation10 + $0x1a8] sm:$0xff] }
 0xe44   :  { %v6338_v26 = vunpack.i.h.bf16 %v6336_v59  ;;  %v6337_v62 = vunpack.i.l.bf16 %v6336_v59  ;;  %v5932_v33 = vpack.c.bf16 %v1957_v31, %v1953_v30  ;;  %v2250_v30 = vld [vmem:[#allocation11 + $0x110] sm:$0xff]  ;;  %v2251_v31 = vld [vmem:[#allocation11 + $0x118] sm:$0xff] }
 0xe46   :  { %v1086_v8 = vsel %vm1085_vm3, %v1084_v1, %v6337_v62  ;;  %v1762_v2 = vsel %vm1085_vm3, %v1761_v50, %v6338_v26  ;;  %v1929_v62 = vld [vmem:[#allocation10 + $0xc8] sm:$0xff]  ;;  %v1931_v50 = vld [vmem:[#allocation10 + $0xd8] sm:$0xff]  ;;  %v1928_v1 = vld [vmem:[#allocation10 + $0xc0] sm:$0xff] }
 0xe47   :  { %v6341_v63 = vpop.permute.xlu0 %6340 }
 0xe48   :  { %v6343_v52 = vunpack.i.h.bf16 %v6341_v63  ;;  %v6342_v0 = vunpack.i.l.bf16 %v6341_v63  ;;  %v1933_v63 = vld [vmem:[#allocation10 + $0xe8] sm:$0xff] }
 0xe4a   :  { %v1088_v3 = vsel %vm1087_vm4, %v1086_v8, %v6342_v0  ;;  %v1763_v49 = vsel %vm1087_vm4, %v1762_v2, %v6343_v52  ;;  %v5920_v52 = vpack.c.bf16 %v1933_v63, %v1929_v62  ;;  %v1935_v0 = vld [vmem:[#allocation10 + $0xf8] sm:$0xff]  ;;  %v1932_v8 = vld [vmem:[#allocation10 + $0xe0] sm:$0xff]  ;;  %v1962_v62 = vld [vmem:[#allocation10 + $0x1d0] sm:$0xff] }
 0xe4b   :  { %5589 = vmatprep.mubr.f32.mxu1 %v1088_v3  ;;  %v5952_v2 = vpack.c.bf16 %v1935_v0, %v1931_v50  ;;  %v5922_v3 = vpack.c.bf16 %v1932_v8, %v1928_v1  ;;  %v1966_v50 = vld [vmem:[#allocation10 + $0x1f0] sm:$0xff] }
 0xe4c   :  { %5590 = vmatmul.mubr.f32.vlgmr.msra.gmra.mrb[26].mxu1 %v1763_v49  ;;  %v1930_v49 = vld [vmem:[#allocation10 + $0xd0] sm:$0xff] }
 0xe4d   :  { %2131 = vmatprep.mubr.f32.mxu1 %v6659_v47  ;;  %5943 = vmatpush1.bf16.msra.mxu1 %v5942_v21  ;;  %v1944_v21 = vld [vmem:[#allocation10 + $0x140] sm:$0xff] }
 0xe4e   :  { %5945 = vmatprep.subr.bf16.mxu1 %v5944_v28  ;;  %v1950_v28 = vld [vmem:[#allocation10 + $0x170] sm:$0xff] }
 0xe51   :  { %5947 = vmatpush1.bf16.msra.mxu1 %v5946_v41  ;;  %v1956_v41 = vld [vmem:[#allocation10 + $0x1a0] sm:$0xff] }
 0xe52   :  { %5949 = vmatprep.subr.bf16.mxu1 %v5948_v46  ;;  %v5934_v43 = vpack.c.bf16 %v1956_v41, %v1952_v39  ;;  %v1961_v46 = vld [vmem:[#allocation10 + $0x1c8] sm:$0xff]  ;;  %v2268_v39 = vld [vmem:[#allocation11 + $0x1a0] sm:$0xff] }
 0xe55   :  { %5951 = vmatpush1.bf16.msra.mxu1 %v5950_v57  ;;  %v5936_v57 = vpack.c.bf16 %v1965_v51, %v1961_v46  ;;  %v2253_v51 = vld [vmem:[#allocation11 + $0x128] sm:$0xff] }
 0xe56   :  { %5953 = vmatprep.subr.bf16.mxu1 %v5952_v2 }
 0xf1f   :  { %v5591_v5 = vpop.f32.mrb[26].mxu1 }
 0xf20   :  { %v1859_v56 = vadd.f32 %v5591_v5, %v5072_v4  ;;  %v1853_v6 = vpop.f32.mrb[27].mxu1 }
 0xf21   :  { %v1854_v7 = vadd.f32 %v5072_v4, %v1853_v6  ;;  %v1934_v4 = vld [vmem:[#allocation10 + $0xf0] sm:$0xff]  ;;  %v1937_v6 = vld [vmem:[#allocation10 + $0x108] sm:$0xff] }
 0xf22   :  { %v7073_v26 = vadd.f32 %v1859_v56, %v6876_v36  ;;  %v5954_v5 = vpack.c.bf16 %v1934_v4, %v1930_v49  ;;  %v1941_v36 = vld [vmem:[#allocation10 + $0x128] sm:$0xff]  ;;  %v1939_v56 = vld [vmem:[#allocation10 + $0x118] sm:$0xff] }
 0xf23   :  { %v1862_v54 = vadd.f32 %v1854_v7, %v6874_v35  ;;  %v5912_v35 = vpack.c.bf16 %v1917_v22, %v1913_v20  ;;  %v5924_v7 = vpack.c.bf16 %v1941_v36, %v1937_v6  ;;  %v1951_v20 = vld [vmem:[#allocation10 + $0x178] sm:$0xff]  ;;  %v1948_v22 = vld [vmem:[#allocation10 + $0x160] sm:$0xff] }
 0xf24   :  { %5955 = vmatpush1.bf16.msra.mxu1 %v5954_v5  ;;  %v5960_v23 = vpack.c.bf16 %v1951_v20, %v1947_v18  ;;  %v5930_v27 = vpack.c.bf16 %v1948_v22, %v1944_v21  ;;  %v7084_v6 = vld [vmem:[%s7542_s8] ss:$0 sm:$0xff]  ;;  %v6006_v18 = vpack.c.bf16 %v2249_v17, %v2248_v16  ;;  %v2235_v20 = vld [vmem:[#allocation11 + $0x98] sm:$0xff]  ;;  %v2266_v21 = vld [vmem:[#allocation11 + $0x190] sm:$0xff] }
 0xf25   :  { %1866 = vadd.xlane.f32.xlu1 %v1862_v54  ;;  %5913 = vmatprep.subr.bf16.mxu0 %v5912_v35  ;;  %v1946_v35 = vld [vmem:[#allocation10 + $0x150] sm:$0xff]  ;;  %v2275_v17 = vld [vmem:[#allocation11 + $0x1d8] sm:$0xff] }
 0xf26   :  { %5915 = vmatpush1.bf16.msra.mxu0 %v5914_v32  ;;  %v5962_v29 = vpack.c.bf16 %v1950_v28, %v1946_v35  ;;  %v1955_v32 = vld [vmem:[#allocation10 + $0x198] sm:$0xff] }
 0xf27   :  { %5917 = vmatprep.subr.bf16.mxu0 %v5916_v42  ;;  %v5964_v42 = vpack.c.bf16 %v1959_v34, %v1955_v32  ;;  %v2219_v35 = vld [vmem:[#allocation11 + $0x18] sm:$0xff]  ;;  %v6010_v32 = vpack.c.bf16 %v2251_v31, %v2250_v30  ;;  %v2237_v34 = vld [vmem:[#allocation11 + $0xa8] sm:$0xff] }
 0xf28   :  { %v2277_v31 = vld [vmem:[#allocation11 + $0x1e8] sm:$0xff] }
 0xf2a   :  { %5919 = vmatpush1.bf16.msra.mxu0 %v5918_v55  ;;  %v1967_v55 = vld [vmem:[#allocation10 + $0x1f8] sm:$0xff] }
 0xf2b   :  { %5921 = vmatprep.subr.bf16.mxu0 %v5920_v52  ;;  %v5970_v52 = vpack.c.bf16 %v1966_v50, %v1962_v62  ;;  %v2222_v62 = vld [vmem:[#allocation11 + $0x30] sm:$0xff] }
 0xf2e   :  { %5923 = vmatpush1.bf16.msra.mxu0 %v5922_v3 }
 0xf2f   :  { %5925 = vmatprep.subr.bf16.mxu0 %v5924_v7 }
 0xf32   :  { %5927 = vmatpush1.bf16.msra.mxu0 %v5926_v12  ;;  %v2216_v12 = vld [vmem:[#allocation11] sm:$0xff] }
 0xf33   :  { %5929 = vmatprep.subr.bf16.mxu0 %v5928_v19  ;;  %v2234_v19 = vld [vmem:[#allocation11 + $0x90] sm:$0xff] }
 0xf34   :  { %v5976_v22 = vpack.c.bf16 %v2235_v20, %v2234_v19  ;;  %v2227_v19 = vld [vmem:[#allocation11 + $0x58] sm:$0xff] }
 0xf36   :  { %5931 = vmatpush1.bf16.msra.mxu0 %v5930_v27  ;;  %v2218_v27 = vld [vmem:[#allocation11 + $0x10] sm:$0xff] }
 0xf37   :  { %5933 = vmatprep.subr.bf16.mxu0 %v5932_v33  ;;  %v2236_v33 = vld [vmem:[#allocation11 + $0xa0] sm:$0xff] }
 0xf38   :  { %v5980_v41 = vpack.c.bf16 %v2237_v34, %v2236_v33  ;;  %v2229_v33 = vld [vmem:[#allocation11 + $0x68] sm:$0xff] }
 0xf3a   :  { %5935 = vmatpush1.bf16.msra.mxu0 %v5934_v43  ;;  %v2220_v43 = vld [vmem:[#allocation11 + $0x20] sm:$0xff] }
 0xf3b   :  { %5937 = vmatprep.subr.bf16.mxu0 %v5936_v57  ;;  %v5982_v46 = vpack.c.bf16 %v2221_v44, %v2220_v43  ;;  %v2239_v57 = vld [vmem:[#allocation11 + $0xb8] sm:$0xff]  ;;  %v2246_v44 = vld [vmem:[#allocation11 + $0xf0] sm:$0xff] }
 0xfb2   :  { %v1867_v58 = vpop.xlane.xlu1 %1866 }
 0xfb3   :  { %v1870_v59 = vmul.f32 0.0078125, %v1867_v58  ;;  %v5968_v58 = vpack.c.bf16 %v1967_v55, %v1963_v53  ;;  %v2238_v55 = vld [vmem:[#allocation11 + $0xb0] sm:$0xff] }
 0xfb5   :  { %v7068_v60 = vsub.f32 %v1862_v54, %v1870_v59  ;;  %v1943_v54 = vld [vmem:[#allocation10 + $0x138] sm:$0xff]  ;;  %v1960_v59 = vld [vmem:[#allocation10 + $0x1c0] sm:$0xff] }
 0xfb6   :  { %v5956_v11 = vpack.c.bf16 %v1943_v54, %v1939_v56  ;;  %v7090_v56 = vld [vmem:[%s7543_s9] ss:$0 sm:$0xff] }
 0xfb7   :  { %v1874_v61 = vmul.f32 %v7068_v60, %v7068_v60  ;;  %v2232_v54 = vld [vmem:[#allocation11 + $0x80] sm:$0xff] }
 0xfb8   :  { %5957 = vmatprep.subr.bf16.mxu1 %v5956_v11  ;;  %v2265_v11 = vld [vmem:[#allocation11 + $0x188] sm:$0xff] }
 0xfb9   :  { %1876 = vadd.xlane.f32.xlu0 %v1874_v61  ;;  %5959 = vmatpush1.bf16.msra.mxu1 %v5958_v15  ;;  %v1964_v61 = vld [vmem:[#allocation10 + $0x1e0] sm:$0xff]  ;;  %v6004_v14 = vpack.c.bf16 %v2265_v11, %v2264_v9  ;;  %v5974_v15 = vpack.c.bf16 %v2217_v13, %v2216_v12  ;;  %v2257_v11 = vld [vmem:[#allocation11 + $0x148] sm:$0xff]  ;;  %v2242_v13 = vld [vmem:[#allocation11 + $0xd0] sm:$0xff] }
 0xfba   :  { %5961 = vmatprep.subr.bf16.mxu1 %v5960_v23  ;;  %v5938_v63 = vpack.c.bf16 %v1964_v61, %v1960_v59  ;;  %v2267_v23 = vld [vmem:[#allocation11 + $0x198] sm:$0xff]  ;;  %v5984_v59 = vpack.c.bf16 %v2239_v57, %v2238_v55 }
 0xfbb   :  { %v6008_v28 = vpack.c.bf16 %v2267_v23, %v2266_v21  ;;  %v2271_v61 = vld [vmem:[#allocation11 + $0x1b8] sm:$0xff] }
 0xfbc   :  { %5939 = vmatpush1.bf16.msra.mxu0 %v5938_v63  ;;  %v2223_v63 = vld [vmem:[#allocation11 + $0x38] sm:$0xff] }
 0xfbd   :  { %1868 = vadd.xlane.f32.xlu0 %v7073_v26  ;;  %5963 = vmatpush1.bf16.msra.mxu1 %v5962_v29  ;;  %v5978_v29 = vpack.c.bf16 %v2219_v35, %v2218_v27  ;;  %v2259_v23 = vld [vmem:[#allocation11 + $0x158] sm:$0xff]  ;;  %v2244_v35 = vld [vmem:[#allocation11 + $0xe0] sm:$0xff] }
 0xfbe   :  { %5965 = vmatprep.subr.bf16.mxu1 %v5964_v42  ;;  %v2269_v42 = vld [vmem:[#allocation11 + $0x1a8] sm:$0xff]  ;;  %v2231_v55 = vld [vmem:[#allocation11 + $0x78] sm:$0xff] }
 0xfbf   :  { %v6012_v45 = vpack.c.bf16 %v2269_v42, %v2268_v39  ;;  %v2261_v42 = vld [vmem:[#allocation11 + $0x168] sm:$0xff] }
 0xfc1   :  { %5967 = vmatpush1.bf16.msra.mxu1 %v5966_v48  ;;  %v2252_v48 = vld [vmem:[#allocation11 + $0x120] sm:$0xff] }
 0xfc2   :  { %5969 = vmatprep.subr.bf16.mxu1 %v5968_v58  ;;  %v6014_v53 = vpack.c.bf16 %v2253_v51, %v2252_v48  ;;  %v2270_v58 = vld [vmem:[#allocation11 + $0x1b0] sm:$0xff]  ;;  %v2279_v51 = vld [vmem:[#allocation11 + $0x1f8] sm:$0xff] }
 0xfc3   :  { %v6016_v50 = vpack.c.bf16 %v2271_v61, %v2270_v58  ;;  %v2263_v61 = vld [vmem:[#allocation11 + $0x178] sm:$0xff] }
 0xfc5   :  { %5971 = vmatpush1.bf16.msra.mxu1 %v5970_v52  ;;  %v5986_v52 = vpack.c.bf16 %v2223_v63, %v2222_v62 }
 0xfc6   :  { %6005 = vmatprep.subr.bf16.mxu1 %v6004_v14  ;;  %v2243_v14 = vld [vmem:[#allocation11 + $0xd8] sm:$0xff] }
 0xfc7   :  { %v5992_v16 = vpack.c.bf16 %v2243_v14, %v2242_v13 }
0x1046   :  { %v1877_v0 = vpop.xlane.xlu0 %1876 }
0x1047   :  { %v1880_v1 = vmul.f32 0.0078125, %v1877_v0  ;;  %v2254_v0 = vld [vmem:[#allocation11 + $0x130] sm:$0xff] }
0x1049   :  { %v1882_v8 = vadd.f32 1e-12, %v1880_v1  ;;  %v2255_v1 = vld [vmem:[#allocation11 + $0x138] sm:$0xff] }
0x104a   :  { %v1869_v2 = vpop.xlane.xlu0 %1868 }
0x104b   :  { %6395 = vrsqrt.f32 %v1882_v8  ;;  %v1871_v3 = vmul.f32 0.0078125, %v1869_v2  ;;  %v6018_v8 = vpack.c.bf16 %v2255_v1, %v2254_v0  ;;  %v2240_v2 = vld [vmem:[#allocation11 + $0xc0] sm:$0xff] }
0x104d   :  { %v7077_v49 = vsub.f32 %v7073_v26, %v1871_v3  ;;  %v2241_v3 = vld [vmem:[#allocation11 + $0xc8] sm:$0xff] }
0x104f   :  { %v1875_v4 = vmul.f32 %v7077_v49, %v7077_v49 }
0x1051   :  { %1878 = vadd.xlane.f32.xlu0 %v1875_v4  ;;  %v2272_v4 = vld [vmem:[#allocation11 + $0x1c0] sm:$0xff] }
0x1055   :  { %v6396_v5 = vpop.eup %6395 }
0x1056   :  { %v1886_v36 = vmul.f32 %v6396_v5, %v7068_v60  ;;  %v2233_v60 = vld [vmem:[#allocation11 + $0x88] sm:$0xff]  ;;  %v5988_v5 = vpack.c.bf16 %v2241_v3, %v2240_v2  ;;  %v1968_v3 = vld [vmem:[%s7545_s11] sm:$0xf] }
0x1057   :  { %v5972_v10 = vpack.c.bf16 %v2233_v60, %v2232_v54  ;;  %v2225_v54 = vld [vmem:[#allocation11 + $0x48] sm:$0xff] }
0x1058   :  { %v1894_v26 = vmul.f32 %v7084_v6, %v1886_v36  ;;  %v2273_v36 = vld [vmem:[#allocation11 + $0x1c8] sm:$0xff] }
0x1059   :  { %5973 = vmatprep.subr.bf16.mxu0 %v5972_v10  ;;  %v6020_v60 = vpack.c.bf16 %v2273_v36, %v2272_v4  ;;  %v2256_v10 = vld [vmem:[#allocation11 + $0x140] sm:$0xff]  ;;  %v1984_v4 = vsub.s32 3, %v6888_v25  ;;  %v1981_v36 = vrot.slane %v1968_v3, %v6894_v38 }
0x105a   :  { %v7094_v7 = vadd.f32 %v7090_v56, %v1894_v26  ;;  %v2224_v26 = vld [vmem:[#allocation11 + $0x40] sm:$0xff]  ;;  %v6022_v12 = vpack.c.bf16 %v2257_v11, %v2256_v10 }
0x105b   :  { %v5990_v9 = vpack.c.bf16 %v2225_v54, %v2224_v26 }
0x105c   :  { %2055 = vmatmul.mubr.f32.vlgmr.msra.gmra.mrb[12].mxu0 %v7094_v7  ;;  %2132 = vmatmul.mubr.f32.vlgmr.msra.gmra.mrb[28].mxu1 %v7094_v7 }
0x105d   :  { %2060 = vmatprep.mubr.f32.mxu0 %v6659_v47  ;;  %2137 = vmatprep.mubr.f32.mxu1 %v6659_v47 }
0x105e   :  { %5975 = vmatpush3.bf16.msra.mxu0 %v5974_v15  ;;  %6007 = vmatpush3.bf16.msra.mxu1 %v6006_v18  ;;  %v2274_v15 = vld [vmem:[#allocation11 + $0x1d0] sm:$0xff] }
0x105f   :  { %5977 = vmatprep.subr.bf16.mxu0 %v5976_v22  ;;  %6009 = vmatprep.subr.bf16.mxu1 %v6008_v28  ;;  %v2226_v18 = vld [vmem:[#allocation11 + $0x50] sm:$0xff]  ;;  %v6024_v20 = vpack.c.bf16 %v2275_v17, %v2274_v15  ;;  %v2245_v28 = vld [vmem:[#allocation11 + $0xe8] sm:$0xff] }
0x1060   :  { %v5994_v21 = vpack.c.bf16 %v2227_v19, %v2226_v18  ;;  %v2258_v22 = vld [vmem:[#allocation11 + $0x150] sm:$0xff]  ;;  %v5996_v30 = vpack.c.bf16 %v2245_v28, %v2244_v35 }
0x1061   :  { %v6026_v27 = vpack.c.bf16 %v2259_v23, %v2258_v22 }
0x1062   :  { %5979 = vmatpush3.bf16.msra.mxu0 %v5978_v29  ;;  %6011 = vmatpush3.bf16.msra.mxu1 %v6010_v32  ;;  %v2276_v29 = vld [vmem:[#allocation11 + $0x1e0] sm:$0xff] }
0x1063   :  { %5981 = vmatprep.subr.bf16.mxu0 %v5980_v41  ;;  %6013 = vmatprep.subr.bf16.mxu1 %v6012_v45  ;;  %v2228_v32 = vld [vmem:[#allocation11 + $0x60] sm:$0xff]  ;;  %v6028_v34 = vpack.c.bf16 %v2277_v31, %v2276_v29  ;;  %v2247_v45 = vld [vmem:[#allocation11 + $0xf8] sm:$0xff] }
0x1064   :  { %v5998_v39 = vpack.c.bf16 %v2229_v33, %v2228_v32  ;;  %v2260_v41 = vld [vmem:[#allocation11 + $0x160] sm:$0xff]  ;;  %v6000_v48 = vpack.c.bf16 %v2247_v45, %v2246_v44 }
0x1065   :  { %v6030_v43 = vpack.c.bf16 %v2261_v42, %v2260_v41 }
0x1066   :  { %5983 = vmatpush3.bf16.msra.mxu0 %v5982_v46  ;;  %6015 = vmatpush3.bf16.msra.mxu1 %v6014_v53  ;;  %v2278_v46 = vld [vmem:[#allocation11 + $0x1f0] sm:$0xff] }
0x1067   :  { %5985 = vmatprep.subr.bf16.mxu0 %v5984_v59  ;;  %6017 = vmatprep.subr.bf16.mxu1 %v6016_v50  ;;  %v2230_v53 = vld [vmem:[#allocation11 + $0x70] sm:$0xff]  ;;  %v6032_v57 = vpack.c.bf16 %v2279_v51, %v2278_v46 }
0x1068   :  { %v6002_v58 = vpack.c.bf16 %v2231_v55, %v2230_v53  ;;  %v2262_v59 = vld [vmem:[#allocation11 + $0x170] sm:$0xff] }
0x1069   :  { %v6034_v62 = vpack.c.bf16 %v2263_v61, %v2262_v59 }
0x106a   :  { %5987 = vmatpush3.bf16.msra.mxu0 %v5986_v52  ;;  %6019 = vmatpush3.bf16.msra.mxu1 %v6018_v8 }
0x106b   :  { %5989 = vmatprep.subr.bf16.mxu0 %v5988_v5  ;;  %6021 = vmatprep.subr.bf16.mxu1 %v6020_v60  ;;  %v1973_v5 = vrot.slane %v1968_v3, %v6900_v40 }
0x106e   :  { %5991 = vmatpush3.bf16.msra.mxu0 %v5990_v9  ;;  %6023 = vmatpush3.bf16.msra.mxu1 %v6022_v12 }
0x106f   :  { %5993 = vmatprep.subr.bf16.mxu0 %v5992_v16  ;;  %6025 = vmatprep.subr.bf16.mxu1 %v6024_v20 }
0x1072   :  { %5995 = vmatpush3.bf16.msra.mxu0 %v5994_v21  ;;  %6027 = vmatpush3.bf16.msra.mxu1 %v6026_v27 }
0x1073   :  { %5997 = vmatprep.subr.bf16.mxu0 %v5996_v30  ;;  %6029 = vmatprep.subr.bf16.mxu1 %v6028_v34 }
0x1076   :  { %5999 = vmatpush3.bf16.msra.mxu0 %v5998_v39  ;;  %6031 = vmatpush3.bf16.msra.mxu1 %v6030_v43 }
0x1077   :  { %6001 = vmatprep.subr.bf16.mxu0 %v6000_v48  ;;  %6033 = vmatprep.subr.bf16.mxu1 %v6032_v57 }
0x107a   :  { %6003 = vmatpush3.bf16.msra.mxu0 %v6002_v58  ;;  %6035 = vmatpush3.bf16.msra.mxu1 %v6034_v62 }
0x10de   :  { %v1879_v63 = vpop.xlane.xlu0 %1878 }
0x10df   :  { %v1881_v50 = vmul.f32 0.0078125, %v1879_v63 }
0x10e1   :  { %v1883_v52 = vadd.f32 1e-12, %v1881_v50 }
0x10e3   :  { %6397 = vrsqrt.f32 %v1883_v52 }
0x10ed   :  { %v6398_v0 = vpop.eup %6397 }
0x10ee   :  { %v1887_v1 = vmul.f32 %v6398_v0, %v7077_v49  ;;  %v1977_v49 = vrot.slane %v1968_v3, %v6891_v37 }
0x10f0   :  { %v1895_v8 = vmul.f32 %v7084_v6, %v1887_v1  ;;  %v1985_v6 = vrot.slane %v1968_v3, %v1984_v4 }
0x10f2   :  { %v7103_v2 = vadd.f32 %v7090_v56, %v1895_v8 }
0x10f4   :  { %2061 = vmatmul.mubr.f32.gmra.mrb[14].mxu0 %v7103_v2  ;;  %2138 = vmatmul.mubr.f32.gmra.mrb[30].mxu1 %v7103_v2 }
0x112f   :  { %v2056_v56 = vpop.f32.mrb[12].mxu0  ;;  %v2133_v26 = vpop.f32.mrb[28].mxu1 }
0x1130   :  { %v2057_v54 = vadd.f32 %v2056_v56, %v1973_v5  ;;  %v2134_v60 = vadd.f32 %v2133_v26, %v1981_v36  ;;  %v2058_v9 = vpop.f32.mrb[13].mxu0  ;;  %v2135_v10 = vpop.f32.mrb[29].mxu1 }
0x1131   :  { %v2059_v11 = vadd.f32 %v2058_v9, %v1977_v49  ;;  %v2136_v12 = vadd.f32 %v2135_v10, %v1985_v6 }
0x1132   :  { %v2144_v13 = vmul.f32 %v2057_v54, %v2057_v54  ;;  %v2146_v14 = vmul.f32 %v2134_v60, %v2134_v60 }
0x1133   :  { %v2145_v15 = vmul.f32 %v2059_v11, %v2059_v11  ;;  %v2147_v16 = vmul.f32 %v2136_v12, %v2136_v12 }
0x1134   :  { %v2152_v17 = vmul.f32 %v2144_v13, %v2057_v54  ;;  %v2154_v18 = vmul.f32 %v2146_v14, %v2134_v60 }
0x1135   :  { %v2153_v19 = vmul.f32 %v2145_v15, %v2059_v11  ;;  %v2155_v20 = vmul.f32 %v2147_v16, %v2136_v12 }
0x1136   :  { %v2160_v21 = vmul.f32 0.044715, %v2152_v17  ;;  %v2162_v22 = vmul.f32 0.044715, %v2154_v18 }
0x1137   :  { %v2161_v23 = vmul.f32 0.044715, %v2153_v19  ;;  %v2163_v27 = vmul.f32 0.044715, %v2155_v20 }
0x1138   :  { %v2168_v35 = vadd.f32 %v2160_v21, %v2057_v54  ;;  %v2170_v28 = vadd.f32 %v2162_v22, %v2134_v60 }
0x1139   :  { %v2169_v29 = vadd.f32 %v2161_v23, %v2059_v11  ;;  %v2171_v30 = vadd.f32 %v2163_v27, %v2136_v12 }
0x113a   :  { %v2176_v31 = vmul.f32 0.7978846, %v2168_v35  ;;  %v2178_v32 = vmul.f32 0.7978846, %v2170_v28 }
0x113b   :  { %v2177_v33 = vmul.f32 0.7978846, %v2169_v29  ;;  %v2179_v34 = vmul.f32 0.7978846, %v2171_v30 }
0x113c   :  { %6399 = vtanh.f32 %v2176_v31 }
0x113d   :  { %6401 = vtanh.f32 %v2178_v32 }
0x113e   :  { %6403 = vtanh.f32 %v2177_v33 }
0x113f   :  { %6405 = vtanh.f32 %v2179_v34 }
0x1146   :  { %v6400_v39 = vpop.eup %6399 }
0x1147   :  { %v6402_v41 = vpop.eup %6401  ;;  %v2192_v42 = vadd.f32 1.0, %v6400_v39 }
0x1148   :  { %v6404_v43 = vpop.eup %6403  ;;  %v2194_v44 = vadd.f32 1.0, %v6402_v41 }
0x1149   :  { %v6406_v45 = vpop.eup %6405  ;;  %v2193_v46 = vadd.f32 1.0, %v6404_v43  ;;  %v2200_v48 = vmul.f32 0.5, %v2192_v42 }
0x114a   :  { %v2195_v51 = vadd.f32 1.0, %v6406_v45  ;;  %v2202_v53 = vmul.f32 0.5, %v2194_v44 }
0x114b   :  { %v2201_v55 = vmul.f32 0.5, %v2193_v46  ;;  %v2208_v59 = vmul.f32 %v2200_v48, %v2057_v54  ;;  %v5075_v48 = vld [vmem:[%s7547_s13] ss:$0 sm:$0xff] }
0x114c   :  { %v2203_v57 = vmul.f32 0.5, %v2195_v51  ;;  %v2210_v62 = vmul.f32 %v2202_v53, %v2134_v60 }
0x114d   :  { %v2209_v58 = vmul.f32 %v2201_v55, %v2059_v11 }
0x114e   :  { %v2211_v61 = vmul.f32 %v2203_v57, %v2136_v12 }
0x114f   :  { %2351 = vmatprep.mubr.f32.mxu0 %v2209_v58 }
0x1150   :  { %2426 = vmatprep.mubr.f32.mxu1 %v2211_v61  ;;  %2352 = vmatmul.mubr.f32.vlgmr.msra.gmra.mrb[16].mxu0 %v2208_v59 }
0x1151   :  { %2427 = vmatmul.mubr.f32.vlgmr.msra.gmra.mrb[32].mxu1 %v2210_v62  ;;  %v2481_v62 = vld [vmem:[#allocation7 + $0x188] sm:$0xff] }
0x11c7   :  { %v2062_v63 = vpop.f32.mrb[14].mxu0  ;;  %v2139_v50 = vpop.f32.mrb[30].mxu1 }
0x11c8   :  { %v2063_v52 = vadd.f32 %v2062_v63, %v1973_v5  ;;  %v2140_v0 = vadd.f32 %v2139_v50, %v1981_v36  ;;  %v2064_v1 = vpop.f32.mrb[15].mxu0  ;;  %v2141_v8 = vpop.f32.mrb[31].mxu1  ;;  %v2484_v63 = vld [vmem:[#allocation7 + $0x1a0] sm:$0xff] }
0x11c9   :  { %v2065_v3 = vadd.f32 %v2064_v1, %v1977_v49  ;;  %v2142_v56 = vadd.f32 %v2141_v8, %v1985_v6  ;;  %v2480_v50 = vld [vmem:[#allocation7 + $0x180] sm:$0xff]  ;;  %v2487_v1 = vld [vmem:[#allocation7 + $0x1b8] sm:$0xff]  ;;  %v2490_v8 = vld [vmem:[#allocation7 + $0x1d0] sm:$0xff] }
0x11ca   :  { %v2148_v26 = vmul.f32 %v2063_v52, %v2063_v52  ;;  %v2150_v9 = vmul.f32 %v2140_v0, %v2140_v0 }
0x11cb   :  { %v2149_v10 = vmul.f32 %v2065_v3, %v2065_v3  ;;  %v2151_v13 = vmul.f32 %v2142_v56, %v2142_v56 }
0x11cc   :  { %v2156_v11 = vmul.f32 %v2148_v26, %v2063_v52  ;;  %v2158_v54 = vmul.f32 %v2150_v9, %v2140_v0  ;;  %v2486_v26 = vld [vmem:[#allocation7 + $0x1b0] sm:$0xff]  ;;  %v2489_v9 = vld [vmem:[#allocation7 + $0x1c8] sm:$0xff] }
0x11cd   :  { %v2157_v12 = vmul.f32 %v2149_v10, %v2065_v3  ;;  %v2159_v60 = vmul.f32 %v2151_v13, %v2142_v56  ;;  %v2493_v10 = vld [vmem:[#allocation7 + $0x1e8] sm:$0xff]  ;;  %v2496_v13 = vld [vmem:[#allocation7 + $0x200] sm:$0xff] }
0x11ce   :  { %v2164_v14 = vmul.f32 0.044715, %v2156_v11  ;;  %v2166_v15 = vmul.f32 0.044715, %v2158_v54  ;;  %v6042_v11 = vpack.c.bf16 %v2489_v9, %v2486_v26  ;;  %v6044_v54 = vpack.c.bf16 %v2496_v13, %v2493_v10  ;;  %v2494_v9 = vld [vmem:[#allocation7 + $0x1f0] sm:$0xff]  ;;  %v2497_v10 = vld [vmem:[#allocation7 + $0x208] sm:$0xff] }
0x11cf   :  { %v2165_v16 = vmul.f32 0.044715, %v2157_v12  ;;  %v2167_v17 = vmul.f32 0.044715, %v2159_v60  ;;  %v2495_v12 = vld [vmem:[#allocation7 + $0x1f8] sm:$0xff]  ;;  %v6076_v13 = vpack.c.bf16 %v2497_v10, %v2494_v9 }
0x11d0   :  { %v2172_v18 = vadd.f32 %v2164_v14, %v2063_v52  ;;  %v2174_v19 = vadd.f32 %v2166_v15, %v2140_v0 }
0x11d1   :  { %v2173_v5 = vadd.f32 %v2165_v16, %v2065_v3  ;;  %v2175_v36 = vadd.f32 %v2167_v17, %v2142_v56 }
0x11d2   :  { %v2180_v20 = vmul.f32 0.7978846, %v2172_v18  ;;  %v2182_v21 = vmul.f32 0.7978846, %v2174_v19 }
0x11d3   :  { %v2181_v49 = vmul.f32 0.7978846, %v2173_v5  ;;  %v2183_v6 = vmul.f32 0.7978846, %v2175_v36 }
0x11d4   :  { %6407 = vtanh.f32 %v2180_v20 }
0x11d5   :  { %6409 = vtanh.f32 %v2181_v49 }
0x11d6   :  { %6411 = vtanh.f32 %v2183_v6 }
0x11d7   :  { %6413 = vtanh.f32 %v2182_v21 }
0x11de   :  { %v6408_v22 = vpop.eup %6407 }
0x11df   :  { %v6410_v23 = vpop.eup %6409  ;;  %v2196_v27 = vadd.f32 1.0, %v6408_v22 }
0x11e0   :  { %v6412_v35 = vpop.eup %6411  ;;  %v2197_v28 = vadd.f32 1.0, %v6410_v23  ;;  %v2499_v23 = vld [vmem:[#allocation7 + $0x218] sm:$0xff] }
0x11e1   :  { %v6414_v29 = vpop.eup %6413  ;;  %v2199_v30 = vadd.f32 1.0, %v6412_v35  ;;  %v2204_v31 = vmul.f32 0.5, %v2196_v27  ;;  %v2502_v27 = vld [vmem:[#allocation7 + $0x230] sm:$0xff] }
0x11e2   :  { %v2205_v32 = vmul.f32 0.5, %v2197_v28  ;;  %v2198_v33 = vadd.f32 1.0, %v6414_v29  ;;  %v6048_v35 = vpack.c.bf16 %v2502_v27, %v2499_v23  ;;  %v2498_v28 = vld [vmem:[#allocation7 + $0x210] sm:$0xff]  ;;  %v2501_v29 = vld [vmem:[#allocation7 + $0x228] sm:$0xff] }
0x11e3   :  { %v2207_v34 = vmul.f32 0.5, %v2199_v30  ;;  %v2212_v43 = vmul.f32 %v2204_v31, %v2063_v52  ;;  %v6036_v52 = vpack.c.bf16 %v2484_v63, %v2481_v62  ;;  %v6050_v30 = vpack.c.bf16 %v2501_v29, %v2498_v28  ;;  %v2505_v31 = vld [vmem:[#allocation7 + $0x248] sm:$0xff]  ;;  %v2522_v62 = vld [vmem:[#allocation7 + $0x2d0] sm:$0xff] }
0x11e4   :  { %v2213_v39 = vmul.f32 %v2205_v32, %v2065_v3  ;;  %v2206_v41 = vmul.f32 0.5, %v2198_v33  ;;  %v2508_v32 = vld [vmem:[#allocation7 + $0x260] sm:$0xff]  ;;  %v2509_v23 = vld [vmem:[#allocation7 + $0x268] sm:$0xff]  ;;  %v2518_v29 = vld [vmem:[#allocation7 + $0x2b0] sm:$0xff] }
0x11e5   :  { %v2215_v42 = vmul.f32 %v2207_v34, %v2142_v56  ;;  %v6040_v56 = vpack.c.bf16 %v2490_v8, %v2487_v1  ;;  %6037 = vmatprep.subr.bf16.mxu0 %v6036_v52  ;;  %v6052_v33 = vpack.c.bf16 %v2508_v32, %v2505_v31  ;;  %v2504_v34 = vld [vmem:[#allocation7 + $0x240] sm:$0xff]  ;;  %v2485_v1 = vld [vmem:[#allocation7 + $0x1a8] sm:$0xff] }
0x11e6   :  { %2356 = vmatprep.mubr.f32.mxu0 %v2213_v39  ;;  %v2214_v44 = vmul.f32 %v2206_v41, %v2140_v0  ;;  %v2483_v0 = vld [vmem:[#allocation7 + $0x198] sm:$0xff]  ;;  %v2488_v8 = vld [vmem:[#allocation7 + $0x1c0] sm:$0xff] }
0x11e7   :  { %2431 = vmatprep.mubr.f32.mxu1 %v2215_v42  ;;  %2357 = vmatmul.mubr.f32.gmra.mrb[18].mxu0 %v2212_v43  ;;  %v6038_v3 = vpack.c.bf16 %v2483_v0, %v2480_v50  ;;  %v2507_v39 = vld [vmem:[#allocation7 + $0x258] sm:$0xff]  ;;  %v2514_v42 = vld [vmem:[#allocation7 + $0x290] sm:$0xff]  ;;  %v2525_v50 = vld [vmem:[#allocation7 + $0x2e8] sm:$0xff] }
0x11e8   :  { %2432 = vmatmul.mubr.f32.gmra.mrb[34].mxu1 %v2214_v44  ;;  %2610 = vmatprep.mubr.f32.mxu0 %v6659_v47  ;;  %v6054_v41 = vpack.c.bf16 %v2507_v39, %v2504_v34  ;;  %v2510_v44 = vld [vmem:[#allocation7 + $0x270] sm:$0xff]  ;;  %v6066_v52 = vpack.c.bf16 %v2525_v50, %v2522_v62  ;;  %v2524_v32 = vld [vmem:[#allocation7 + $0x2e0] sm:$0xff] }
0x11e9   :  { %6039 = vmatpush1.bf16.msra.mxu0 %v6038_v3  ;;  %v2482_v0 = vld [vmem:[#allocation7 + $0x190] sm:$0xff] }
0x11ea   :  { %6041 = vmatprep.subr.bf16.mxu0 %v6040_v56  ;;  %v6068_v3 = vpack.c.bf16 %v2485_v1, %v2482_v0  ;;  %v2491_v56 = vld [vmem:[#allocation7 + $0x1d8] sm:$0xff] }
0x11eb   :  { %v6072_v26 = vpack.c.bf16 %v2491_v56, %v2488_v8 }
0x11ec   :  { %6069 = vmatprep.subr.bf16.mxu1 %v6068_v3 }
0x11ed   :  { %6043 = vmatpush1.bf16.msra.mxu0 %v6042_v11  ;;  %6071 = vmatpush3.bf16.msra.mxu1 %v6068_v3 }
0x11ee   :  { %6045 = vmatprep.subr.bf16.mxu0 %v6044_v54  ;;  %6073 = vmatprep.subr.bf16.mxu1 %v6072_v26 }
0x11f1   :  { %6075 = vmatpush3.bf16.msra.mxu1 %v6072_v26 }
0x11f2   :  { %6077 = vmatprep.subr.bf16.mxu1 %v6076_v13 }
0x11f5   :  { %6079 = vmatpush3.bf16.msra.mxu1 %v6076_v13 }
0x1223   :  { %v5220_v45 = vpop.f32.mrb[16].mxu0 }
0x1224   :  { %v5258_v46 = vpop.f32.mrb[32].mxu1  ;;  %v5221_v51 = vpop.f32.mrb[17].mxu0 }
0x1225   :  { %v5222_v53 = vadd.f32 %v5221_v51, %v5220_v45  ;;  %v5259_v55 = vpop.f32.mrb[33].mxu1  ;;  %v2513_v45 = vld [vmem:[#allocation7 + $0x288] sm:$0xff]  ;;  %v2520_v51 = vld [vmem:[#allocation7 + $0x2c0] sm:$0xff] }
0x1226   :  { %v5260_v57 = vadd.f32 %v5259_v55, %v5258_v46  ;;  %v6058_v46 = vpack.c.bf16 %v2513_v45, %v2510_v44  ;;  %v2516_v55 = vld [vmem:[#allocation7 + $0x2a0] sm:$0xff] }
0x1227   :  { %v2354_v58 = vadd.f32 %v5222_v53, %v5075_v48 }
0x1229   :  { %v2429_v59 = vadd.f32 %v5260_v57, %v2354_v58  ;;  %v2519_v57 = vld [vmem:[#allocation7 + $0x2b8] sm:$0xff] }
0x122a   :  { %v6062_v58 = vpack.c.bf16 %v2519_v57, %v2516_v55 }
0x122b   :  { %v2437_v61 = vadd.f32 %v2429_v59, %v7094_v7  ;;  %v2492_v7 = vld [vmem:[#allocation7 + $0x1e0] sm:$0xff]  ;;  %v2523_v59 = vld [vmem:[#allocation7 + $0x2d8] sm:$0xff] }
0x122c   :  { %v6046_v60 = vpack.c.bf16 %v2495_v12, %v2492_v7 }
0x122d   :  { %2441 = vadd.xlane.f32.xlu1 %v2437_v61 }
0x122e   :  { %6047 = vmatpush1.bf16.msra.mxu0 %v6046_v60 }
0x122f   :  { %6049 = vmatprep.subr.bf16.mxu0 %v6048_v35  ;;  %v2515_v35 = vld [vmem:[#allocation7 + $0x298] sm:$0xff] }
0x1232   :  { %6051 = vmatpush1.bf16.msra.mxu0 %v6050_v30  ;;  %v2521_v30 = vld [vmem:[#allocation7 + $0x2c8] sm:$0xff] }
0x1233   :  { %6053 = vmatprep.subr.bf16.mxu0 %v6052_v33  ;;  %v6092_v31 = vpack.c.bf16 %v2521_v30, %v2518_v29  ;;  %v2527_v33 = vld [vmem:[#allocation7 + $0x2f8] sm:$0xff] }
0x1234   :  { %v6096_v34 = vpack.c.bf16 %v2527_v33, %v2524_v32 }
0x1236   :  { %6055 = vmatpush1.bf16.msra.mxu0 %v6054_v41 }
0x12ba   :  { %v2442_v14 = vpop.xlane.xlu1 %2441  ;;  %v5223_v15 = vpop.f32.mrb[18].mxu0 }
0x12bb   :  { %v2445_v16 = vmul.f32 0.0078125, %v2442_v14  ;;  %v5261_v17 = vpop.f32.mrb[34].mxu1  ;;  %v5224_v18 = vpop.f32.mrb[19].mxu0 }
0x12bc   :  { %v5225_v19 = vadd.f32 %v5224_v18, %v5223_v15  ;;  %v5262_v5 = vpop.f32.mrb[35].mxu1 }
0x12bd   :  { %v7121_v36 = vsub.f32 %v2437_v61, %v2445_v16  ;;  %v5263_v20 = vadd.f32 %v5262_v5, %v5261_v17  ;;  %v2526_v61 = vld [vmem:[#allocation7 + $0x2f0] sm:$0xff]  ;;  %v5076_v17 = vld [vmem:[%s7548_s14] ss:$0 sm:$0xff] }
0x12be   :  { %v2359_v21 = vadd.f32 %v5225_v19, %v5075_v48  ;;  %v2517_v48 = vld [vmem:[#allocation7 + $0x2a8] sm:$0xff]  ;;  %v6064_v63 = vpack.c.bf16 %v2526_v61, %v2523_v59  ;;  %v5077_v19 = vld [vmem:[%s7549_s15] ss:$0 sm:$0xff] }
0x12bf   :  { %v2449_v49 = vmul.f32 %v7121_v36, %v7121_v36  ;;  %v6060_v53 = vpack.c.bf16 %v2520_v51, %v2517_v48 }
0x12c0   :  { %v2434_v6 = vadd.f32 %v5263_v20, %v2359_v21  ;;  %v2500_v21 = vld [vmem:[#allocation7 + $0x220] sm:$0xff] }
0x12c1   :  { %2451 = vadd.xlane.f32.xlu0 %v2449_v49  ;;  %v2503_v49 = vld [vmem:[#allocation7 + $0x238] sm:$0xff] }
0x12c2   :  { %v7126_v22 = vadd.f32 %v2434_v6, %v7103_v2  ;;  %v2511_v2 = vld [vmem:[#allocation7 + $0x278] sm:$0xff]  ;;  %v6080_v6 = vpack.c.bf16 %v2503_v49, %v2500_v21 }
0x12c3   :  { %v6056_v43 = vpack.c.bf16 %v2514_v42, %v2511_v2 }
0x12c4   :  { %2443 = vadd.xlane.f32.xlu1 %v7126_v22  ;;  %6081 = vmatprep.subr.bf16.mxu1 %v6080_v6 }
0x12c5   :  { %6057 = vmatprep.subr.bf16.mxu0 %v6056_v43  ;;  %6083 = vmatpush3.bf16.msra.mxu1 %v6080_v6 }
0x12c6   :  { %6059 = vmatpush1.bf16.msra.mxu0 %v6058_v46  ;;  %v5078_v46 = vld [vmem:[%s7575_s23 + $0x3] sm:$0x7] }
0x12c7   :  { %6061 = vmatprep.subr.bf16.mxu0 %v6060_v53  ;;  %v7156_v48 = vrot.slane %v5078_v46, %v6891_v37  ;;  %v7159_v53 = vrot.slane %v5078_v46, %v6900_v40  ;;  %v2542_v59 = vrot.slane %v5078_v46, %v6894_v38 }
0x12ca   :  { %6063 = vmatpush1.bf16.msra.mxu0 %v6062_v58 }
0x12cb   :  { %6065 = vmatprep.subr.bf16.mxu0 %v6064_v63 }
0x12ce   :  { %6067 = vmatpush1.bf16.msra.mxu0 %v6066_v52 }
0x12cf   :  { %5627 = vmatprep.subr.mxu0 %v6659_v47 }
0x134e   :  { %v2452_v11 = vpop.xlane.xlu0 %2451 }
0x134f   :  { %v2455_v54 = vmul.f32 0.0078125, %v2452_v11 }
0x1351   :  { %v2457_v7 = vadd.f32 1e-12, %v2455_v54  ;;  %v2444_v12 = vpop.xlane.xlu1 %2443 }
0x1352   :  { %v2446_v60 = vmul.f32 0.0078125, %v2444_v12 }
0x1353   :  { %6415 = vrsqrt.f32 %v2457_v7 }
0x1354   :  { %v2448_v14 = vsub.f32 %v7126_v22, %v2446_v60  ;;  %v2506_v22 = vld [vmem:[#allocation7 + $0x250] sm:$0xff] }
0x1355   :  { %v6084_v27 = vpack.c.bf16 %v2509_v23, %v2506_v22 }
0x1356   :  { %v2450_v15 = vmul.f32 %v2448_v14, %v2448_v14 }
0x1357   :  { %6085 = vmatprep.subr.bf16.mxu1 %v6084_v27 }
0x1358   :  { %2453 = vadd.xlane.f32.xlu0 %v2450_v15  ;;  %6087 = vmatpush3.bf16.msra.mxu1 %v6084_v27 }
0x135d   :  { %v6416_v16 = vpop.eup %6415 }
0x135e   :  { %v2461_v18 = vmul.f32 %v6416_v16, %v7121_v36  ;;  %v2512_v36 = vld [vmem:[#allocation7 + $0x280] sm:$0xff] }
0x135f   :  { %v6088_v28 = vpack.c.bf16 %v2515_v35, %v2512_v36 }
0x1360   :  { %v2469_v5 = vmul.f32 %v5076_v17, %v2461_v18 }
0x1361   :  { %6089 = vmatprep.subr.bf16.mxu1 %v6088_v28 }
0x1362   :  { %v7138_v20 = vadd.f32 %v5077_v19, %v2469_v5  ;;  %6091 = vmatpush3.bf16.msra.mxu1 %v6088_v28 }
0x1363   :  { %6093 = vmatprep.subr.bf16.mxu1 %v6092_v31 }
0x1364   :  { %2611 = vmatmul.mubr.f32.vlgmr.msra.gmra.mrb[20].mxu0 %v7138_v20  ;;  %5624 = vmatprep.mubr.f32.mxu1 %v7138_v20 }
0x1365   :  { %2616 = vmatprep.mubr.f32.mxu0 %v6659_v47 }
0x1366   :  { %6095 = vmatpush3.bf16.msra.mxu1 %v6092_v31 }
0x1367   :  { %6097 = vmatprep.subr.bf16.mxu1 %v6096_v34 }
0x136a   :  { %6099 = vmatpush3.bf16.msra.mxu1 %v6096_v34 }
0x136b   :  { %5662 = vmatprep.subr.mxu1 %v6659_v47 }
0x13e5   :  { %v2454_v39 = vpop.xlane.xlu0 %2453 }
0x13e6   :  { %v2456_v41 = vmul.f32 0.0078125, %v2454_v39 }
0x13e8   :  { %v2458_v2 = vadd.f32 1e-12, %v2456_v41 }
0x13ea   :  { %6417 = vrsqrt.f32 %v2458_v2 }
0x13f4   :  { %v6418_v42 = vpop.eup %6417 }
0x13f5   :  { %v2462_v43 = vmul.f32 %v6418_v42, %v2448_v14 }
0x13f7   :  { %v2470_v44 = vmul.f32 %v5076_v17, %v2462_v43 }
0x13f9   :  { %v7144_v45 = vadd.f32 %v5077_v19, %v2470_v44 }
0x13fb   :  { %2617 = vmatmul.mubr.f32.gmra.mrb[22].mxu0 %v7144_v45  ;;  %5625 = vmatmul.mubr.f32.vlgmr.msra.gmra.mrb[36].mxu1 %v7144_v45 }
0x13fc   :  { %5629 = vmatprep.mubr.msk.f32.mxu0 %vm6660_vm0, %v6659_v47  ;;  %5664 = vmatprep.mubr.msk.f32.mxu1 %vm6660_vm0, %v6659_v47 }
0x1437   :  { %v2612_v51 = vpop.f32.mrb[20].mxu0 }
0x1438   :  { %v2614_v55 = vpop.f32.mrb[21].mxu0  ;;  %v7167_v58 = vadd.f32 %v2612_v51, %v7159_v53 }
0x1439   :  { %v7162_v57 = vadd.f32 %v2614_v55, %v7156_v48 }
0x143b   :  { %5628 = vmatpush3.xpose.msk.msra.mxu0 %vm410_vm1, %v7162_v57 }
0x143c   :  { %5632 = vmatprep.subr.mxu0 %v6659_v47 }
0x143e   :  { %5630 = vmatmul.mubr.msk.f32.vlgmr.msra.gmra.mrb[24].mxu0 %vm410_vm1, %v7167_v58 }
0x143f   :  { %5634 = vmatprep.mubr.msk.f32.mxu0 %vm6660_vm0, %v6659_v47 }
0x14ce   :  { %v7175_v61 = vpop.f32.mrb[22].mxu0  ;;  %v5626_v62 = vpop.f32.mrb[36].mxu1 }
0x14cf   :  { %v7177_v63 = vadd.f32 %v5626_v62, %v2542_v59  ;;  %v7179_v50 = vpop.f32.mrb[23].mxu0  ;;  %v2689_v52 = vpop.f32.mrb[37].mxu1 }
0x14d0   :  { %v7181_v0 = vadd.f32 %v2689_v52, %v2542_v59  ;;  %v2621_v2 = vadd.f32 %v7179_v50, %v7156_v48  ;;  %v2619_v48 = vadd.f32 %v7175_v61, %v7159_v53 }
0x14d2   :  { %5633 = vmatpush3.msra.mxu0 %v7181_v0 }
0x14d3   :  { %5637 = vmatprep.subr.mxu0 %v6659_v47 }
0x1511   :  { %v2770_v1 = vpop.f32.mrb[24].mxu0 }
0x1512   :  { %v2774_v8 = vmul.f32 0.17677669, %v2770_v1  ;;  %v5631_v3 = vpop.f32.mrb[25].mxu0 }
0x1514   :  { %v2775_v56 = vsel %vm488_vm2, %v2774_v8, -inf }
0x1515   :  { %2776 = vmax.xlane.f32.xlu1 %v2775_v56 }
0x1526   :  { %2861 = vrot.lane.b32.xlu1 %v7162_v57, %s6661_s19 }
0x15a2   :  { %v2777_v26 = vpop.xlane.xlu1 %2776 }
0x15a3   :  { %v2778_v9 = vsub.f32 %v2774_v8, %v2777_v26 }
0x15a5   :  { %v2779_v10 = vmul.f32 1.442695, %v2778_v9 }
0x15a6   :  { %v2862_v60 = vpop.permute.xlu1 %2861 }
0x15a7   :  { %6419 = vpow2.f32 %v2779_v10 }
0x15b1   :  { %v6420_v13 = vpop.eup %6419 }
0x15b2   :  { %v2781_v11 = vsel %vm488_vm2, %v6420_v13, 0.0 }
0x15b3   :  { %2782 = vadd.xlane.f32.xlu0 %v2781_v11 }
0x15c9   :  { %2859 = vrot.lane.b32.xlu0 %v7167_v58, %s6661_s19 }
0x1640   :  { %v2783_v54 = vpop.xlane.xlu0 %2782 }
0x1641   :  { %6421 = vrcp.f32 %v2783_v54 }
0x1644   :  { %v2860_v14 = vpop.permute.xlu0 %2859 }
0x164b   :  { %v6422_v7 = vpop.eup %6421 }
0x164c   :  { %v2785_v12 = vmul.f32 %v6422_v7, %v6420_v13 }
0x164e   :  { %5635 = vmatmul.mubr.msk.f32.vlgmr.msra.gmra.mrb[26].mxu0 %vm488_vm2, %v2785_v12 }
0x164f   :  { %5638 = vmatpush3.xpose.msk.msra.mxu0 %vm410_vm1, %v2862_v60  ;;  %5639 = vmatprep.mubr.msk.f32.mxu0 %vm6660_vm0, %v6659_v47 }
0x1650   :  { %5642 = vmatprep.subr.mxu0 %v6659_v47 }
0x1652   :  { %5640 = vmatmul.mubr.msk.f32.vlgmr.msra.gmra.mrb[28].mxu0 %vm410_vm1, %v2860_v14 }
0x1653   :  { %5644 = vmatprep.mubr.msk.f32.mxu0 %vm6660_vm0, %v6659_v47 }
0x1721   :  { %v7199_v15 = vpop.f32.mrb[26].mxu0 }
0x1722   :  { %v5636_v16 = vpop.f32.mrb[27].mxu0 }
0x1725   :  { %v2933_v17 = vpop.f32.mrb[28].mxu0 }
0x1726   :  { %v2937_v18 = vmul.f32 0.17677669, %v2933_v17  ;;  %v5641_v19 = vpop.f32.mrb[29].mxu0 }
0x1728   :  { %v2938_v5 = vsel %vm488_vm2, %v2937_v18, -inf }
0x1729   :  { %2939 = vmax.xlane.f32.xlu1 %v2938_v5 }
0x173a   :  { %2950 = vrot.lane.b32.xlu1 %v7181_v0, %s6661_s19 }
0x173e   :  { %3026 = vrot.lane.b32.xlu1 %v7167_v58, %s6662_s20 }
0x17b6   :  { %v2940_v21 = vpop.xlane.xlu1 %2939 }
0x17b7   :  { %v2941_v49 = vsub.f32 %v2937_v18, %v2940_v21 }
0x17b9   :  { %v2942_v6 = vmul.f32 1.442695, %v2941_v49 }
0x17ba   :  { %v2951_v22 = vpop.permute.xlu1 %2950 }
0x17bb   :  { %6423 = vpow2.f32 %v2942_v6  ;;  %5643 = vmatpush3.msra.mxu0 %v2951_v22 }
0x17bc   :  { %5647 = vmatprep.subr.mxu0 %v6659_v47 }
0x17be   :  { %v3027_v30 = vpop.permute.xlu1 %3026 }
0x17c5   :  { %v6424_v23 = vpop.eup %6423 }
0x17c6   :  { %v2944_v36 = vsel %vm488_vm2, %v6424_v23, 0.0 }
0x17c7   :  { %2945 = vadd.xlane.f32.xlu0 %v2944_v36 }
0x17dd   :  { %3028 = vrot.lane.b32.xlu0 %v7162_v57, %s6662_s20 }
0x1854   :  { %v2946_v27 = vpop.xlane.xlu0 %2945 }
0x1855   :  { %6425 = vrcp.f32 %v2946_v27 }
0x1858   :  { %v3029_v29 = vpop.permute.xlu0 %3028 }
0x185f   :  { %v6426_v35 = vpop.eup %6425 }
0x1860   :  { %v2948_v28 = vmul.f32 %v6426_v35, %v6424_v23 }
0x1862   :  { %5645 = vmatmul.mubr.msk.f32.vlgmr.msra.gmra.mrb[30].mxu0 %vm488_vm2, %v2948_v28 }
0x1863   :  { %5648 = vmatpush3.xpose.msk.msra.mxu0 %vm410_vm1, %v3029_v29  ;;  %5649 = vmatprep.mubr.msk.f32.mxu0 %vm6660_vm0, %v6659_v47 }
0x1864   :  { %5652 = vmatprep.subr.mxu0 %v6659_v47 }
0x1866   :  { %5650 = vmatmul.mubr.msk.f32.vlgmr.msra.gmra.mrb[32].mxu0 %vm410_vm1, %v3027_v30 }
0x1867   :  { %5654 = vmatprep.mubr.msk.f32.mxu0 %vm6660_vm0, %v6659_v47 }
0x1935   :  { %v7218_v31 = vpop.f32.mrb[30].mxu0 }
0x1936   :  { %v5646_v32 = vpop.f32.mrb[31].mxu0 }
0x1939   :  { %v3100_v33 = vpop.f32.mrb[32].mxu0 }
0x193a   :  { %v3104_v34 = vmul.f32 0.17677669, %v3100_v33  ;;  %v5651_v39 = vpop.f32.mrb[33].mxu0 }
0x193c   :  { %v3105_v41 = vsel %vm488_vm2, %v3104_v34, -inf }
0x193d   :  { %3106 = vmax.xlane.f32.xlu1 %v3105_v41 }
0x194e   :  { %3194 = vrot.lane.b32.xlu1 %v7162_v57, %s6657_s27 }
0x1952   :  { %3192 = vrot.lane.b32.xlu1 %v7167_v58, %s6657_s27 }
0x1956   :  { %3536 = vrot.lane.b32.xlu1 %v2621_v2, %s6661_s19 }
0x195a   :  { %3703 = vrot.lane.b32.xlu1 %v2621_v2, %s6662_s20 }
0x195e   :  { %3869 = vrot.lane.b32.xlu1 %v2621_v2, %s6657_s27 }
0x19ca   :  { %v3107_v42 = vpop.xlane.xlu1 %3106 }
0x19cb   :  { %v3108_v43 = vsub.f32 %v3104_v34, %v3107_v42 }
0x19cd   :  { %v3109_v44 = vmul.f32 1.442695, %v3108_v43 }
0x19ce   :  { %v3195_v58 = vpop.permute.xlu1 %3194 }
0x19cf   :  { %6427 = vpow2.f32 %v3109_v44 }
0x19d2   :  { %v3193_v62 = vpop.permute.xlu1 %3192 }
0x19d6   :  { %v3537_v53 = vpop.permute.xlu1 %3536 }
0x19d9   :  { %v6428_v46 = vpop.eup %6427 }
0x19da   :  { %v3111_v51 = vsel %vm488_vm2, %v6428_v46, 0.0  ;;  %v3704_v52 = vpop.permute.xlu1 %3703 }
0x19db   :  { %3112 = vadd.xlane.f32.xlu0 %v3111_v51 }
0x19de   :  { %v3870_v8 = vpop.permute.xlu1 %3869 }
0x19f1   :  { %3116 = vrot.lane.b32.xlu0 %v7181_v0, %s6662_s20 }
0x19f5   :  { %3534 = vrot.lane.b32.xlu0 %v2619_v48, %s6661_s19 }
0x19f9   :  { %3701 = vrot.lane.b32.xlu0 %v2619_v48, %s6662_s20 }
0x19fd   :  { %3867 = vrot.lane.b32.xlu0 %v2619_v48, %s6657_s27 }
0x1a68   :  { %v3113_v55 = vpop.xlane.xlu0 %3112 }
0x1a69   :  { %6429 = vrcp.f32 %v3113_v55 }
0x1a6c   :  { %v3117_v57 = vpop.permute.xlu0 %3116 }
0x1a6d   :  { %5653 = vmatpush3.msra.mxu0 %v3117_v57 }
0x1a6e   :  { %5657 = vmatprep.subr.mxu0 %v6659_v47 }
0x1a70   :  { %v3535_v61 = vpop.permute.xlu0 %3534 }
0x1a73   :  { %v6430_v59 = vpop.eup %6429 }
0x1a74   :  { %v3115_v50 = vmul.f32 %v6430_v59, %v6428_v46  ;;  %v3702_v1 = vpop.permute.xlu0 %3701 }
0x1a76   :  { %5655 = vmatmul.mubr.msk.f32.vlgmr.msra.gmra.mrb[34].mxu0 %vm488_vm2, %v3115_v50 }
0x1a77   :  { %5658 = vmatpush3.xpose.msk.msra.mxu0 %vm410_vm1, %v3195_v58  ;;  %5659 = vmatprep.mubr.msk.f32.mxu0 %vm6660_vm0, %v6659_v47 }
0x1a78   :  { %5667 = vmatprep.subr.mxu0 %v6659_v47  ;;  %v3868_v3 = vpop.permute.xlu0 %3867 }
0x1a7a   :  { %5660 = vmatmul.mubr.msk.f32.vlgmr.msra.gmra.mrb[36].mxu0 %vm410_vm1, %v3193_v62 }
0x1a7b   :  { %5668 = vmatpush3.xpose.msk.msra.mxu0 %vm410_vm1, %v2621_v2  ;;  %5669 = vmatprep.mubr.msk.f32.mxu0 %vm6660_vm0, %v6659_v47 }
0x1a7c   :  { %5677 = vmatprep.subr.mxu0 %v6659_v47 }
0x1a7e   :  { %5670 = vmatmul.mubr.msk.f32.vlgmr.msra.gmra.mrb[38].mxu0 %vm410_vm1, %v2619_v48 }
0x1a7f   :  { %5678 = vmatpush3.xpose.msk.msra.mxu0 %vm410_vm1, %v3537_v53  ;;  %5679 = vmatprep.mubr.msk.f32.mxu0 %vm6660_vm0, %v6659_v47 }
0x1a80   :  { %5687 = vmatprep.subr.mxu0 %v6659_v47 }
0x1a82   :  { %5680 = vmatmul.mubr.msk.f32.vlgmr.msra.gmra.mrb[40].mxu0 %vm410_vm1, %v3535_v61 }
0x1a83   :  { %5688 = vmatpush3.xpose.msk.msra.mxu0 %vm410_vm1, %v3704_v52  ;;  %5689 = vmatprep.mubr.msk.f32.mxu0 %vm6660_vm0, %v6659_v47 }
0x1a84   :  { %5697 = vmatprep.subr.mxu0 %v6659_v47 }
0x1a86   :  { %5690 = vmatmul.mubr.msk.f32.vlgmr.msra.gmra.mrb[42].mxu0 %vm410_vm1, %v3702_v1 }
0x1a87   :  { %5698 = vmatpush3.xpose.msk.msra.mxu0 %vm410_vm1, %v3870_v8  ;;  %5699 = vmatprep.mubr.msk.f32.mxu0 %vm6660_vm0, %v6659_v47 }
0x1a8a   :  { %5700 = vmatmul.mubr.msk.f32.vlgmr.msra.gmra.mrb[44].mxu0 %vm410_vm1, %v3868_v3 }
0x1b49   :  { %v7264_v56 = vpop.f32.mrb[34].mxu0 }
0x1b4a   :  { %v5656_v26 = vpop.f32.mrb[35].mxu0 }
0x1b4d   :  { %v3266_v9 = vpop.f32.mrb[36].mxu0 }
0x1b4e   :  { %v3270_v10 = vmul.f32 0.17677669, %v3266_v9  ;;  %v5661_v13 = vpop.f32.mrb[37].mxu0 }
0x1b50   :  { %v3271_v11 = vsel %vm488_vm2, %v3270_v10, -inf }
0x1b51   :  { %3272 = vmax.xlane.f32.xlu1 %v3271_v11  ;;  %v3445_v54 = vpop.f32.mrb[38].mxu0 }
0x1b52   :  { %v3449_v7 = vmul.f32 0.17677669, %v3445_v54  ;;  %v5671_v12 = vpop.f32.mrb[39].mxu0 }
0x1b54   :  { %v3450_v60 = vsel %vm488_vm2, %v3449_v7, -inf }
0x1b55   :  { %3451 = vmax.xlane.f32.xlu0 %v3450_v60  ;;  %v3608_v14 = vpop.f32.mrb[40].mxu0 }
0x1b56   :  { %v3612_v16 = vmul.f32 0.17677669, %v3608_v14  ;;  %v5681_v17 = vpop.f32.mrb[41].mxu0 }
0x1b58   :  { %v3613_v18 = vsel %vm488_vm2, %v3612_v16, -inf }
0x1b59   :  { %3614 = vmax.xlane.f32.xlu0 %v3613_v18  ;;  %v3775_v19 = vpop.f32.mrb[42].mxu0 }
0x1b5a   :  { %v3779_v5 = vmul.f32 0.17677669, %v3775_v19  ;;  %v5691_v21 = vpop.f32.mrb[43].mxu0  ;;  %v4049_v19 = vld [vmem:[#allocation8 + $0x80] sm:$0xff] }
0x1b5b   :  { %v4051_v21 = vld [vmem:[#allocation8 + $0x90] sm:$0xff] }
0x1b5c   :  { %v3780_v49 = vsel %vm488_vm2, %v3779_v5, -inf }
0x1b5d   :  { %3781 = vmax.xlane.f32.xlu0 %v3780_v49  ;;  %v3941_v6 = vpop.f32.mrb[44].mxu0 }
0x1b5e   :  { %v3945_v22 = vmul.f32 0.17677669, %v3941_v6  ;;  %v5701_v23 = vpop.f32.mrb[45].mxu0  ;;  %v4052_v6 = vld [vmem:[#allocation8 + $0x98] sm:$0xff] }
0x1b5f   :  { %v4053_v23 = vld [vmem:[#allocation8 + $0xa0] sm:$0xff] }
0x1b60   :  { %v3946_v36 = vsel %vm488_vm2, %v3945_v22, -inf }
0x1b61   :  { %3947 = vmax.xlane.f32.xlu1 %v3946_v36  ;;  %v4054_v36 = vld [vmem:[#allocation8 + $0xa8] sm:$0xff] }
0x1b72   :  { %3282 = vrot.lane.b32.xlu1 %v7181_v0, %s6657_s27 }
0x1bde   :  { %v3273_v27 = vpop.xlane.xlu1 %3272 }
0x1bdf   :  { %v3274_v35 = vsub.f32 %v3270_v10, %v3273_v27  ;;  %v6108_v27 = vpack.c.bf16 %v4054_v36, %v4053_v23  ;;  %v4196_v23 = vld [vmem:[#allocation10 + $0x218] sm:$0xff] }
0x1be1   :  { %v3275_v28 = vmul.f32 1.442695, %v3274_v35  ;;  %v4055_v35 = vld [vmem:[#allocation8 + $0xb0] sm:$0xff] }
0x1be2   :  { %v3452_v29 = vpop.xlane.xlu0 %3451 }
0x1be3   :  { %6431 = vpow2.f32 %v3275_v28  ;;  %v3453_v30 = vsub.f32 %v3449_v7, %v3452_v29  ;;  %v4056_v28 = vld [vmem:[#allocation8 + $0xb8] sm:$0xff] }
0x1be4   :  { %v6112_v29 = vpack.c.bf16 %v4056_v28, %v4055_v35  ;;  %v4193_v35 = vld [vmem:[#allocation10 + $0x200] sm:$0xff] }
0x1be5   :  { %v3454_v32 = vmul.f32 1.442695, %v3453_v30  ;;  %v4057_v30 = vld [vmem:[#allocation8 + $0xc0] sm:$0xff] }
0x1be6   :  { %v3615_v33 = vpop.xlane.xlu0 %3614  ;;  %v4197_v28 = vld [vmem:[#allocation10 + $0x220] sm:$0xff] }
0x1be7   :  { %6433 = vpow2.f32 %v3454_v32  ;;  %v3616_v34 = vsub.f32 %v3612_v16, %v3615_v33  ;;  %v4058_v32 = vld [vmem:[#allocation8 + $0xc8] sm:$0xff] }
0x1be8   :  { %v6116_v33 = vpack.c.bf16 %v4058_v32, %v4057_v30  ;;  %v6134_v30 = vpack.c.bf16 %v4197_v28, %v4193_v35  ;;  %v4195_v32 = vld [vmem:[#allocation10 + $0x210] sm:$0xff]  ;;  %v4229_v35 = vld [vmem:[#allocation10 + $0x320] sm:$0xff] }
0x1be9   :  { %v3617_v39 = vmul.f32 1.442695, %v3616_v34  ;;  %v4059_v34 = vld [vmem:[#allocation8 + $0xd0] sm:$0xff] }
0x1bea   :  { %v3782_v41 = vpop.xlane.xlu0 %3781 }
0x1beb   :  { %6435 = vpow2.f32 %v3617_v39  ;;  %v3783_v2 = vsub.f32 %v3779_v5, %v3782_v41  ;;  %v4050_v5 = vld [vmem:[#allocation8 + $0x88] sm:$0xff]  ;;  %v4060_v39 = vld [vmem:[#allocation8 + $0xd8] sm:$0xff] }
0x1bec   :  { %v6100_v49 = vpack.c.bf16 %v4050_v5, %v4049_v19  ;;  %v6120_v41 = vpack.c.bf16 %v4060_v39, %v4059_v34  ;;  %v4202_v34 = vld [vmem:[#allocation10 + $0x248] sm:$0xff] }
0x1bed   :  { %v6432_v42 = vpop.eup %6431  ;;  %v3784_v43 = vmul.f32 1.442695, %v3783_v2 }
0x1bee   :  { %v3948_v44 = vpop.xlane.xlu1 %3947  ;;  %v3277_v46 = vsel %vm488_vm2, %v6432_v42, 0.0  ;;  %6101 = vmatprep.subr.bf16.mxu0 %v6100_v49 }
0x1bef   :  { %6437 = vpow2.f32 %v3784_v43  ;;  %v3949_v0 = vsub.f32 %v3945_v22, %v3948_v44  ;;  %3278 = vadd.xlane.f32.xlu0 %v3277_v46  ;;  %v6104_v22 = vpack.c.bf16 %v4052_v6, %v4051_v21  ;;  %6103 = vmatpush3.bf16.msra.mxu0 %v6100_v49  ;;  %v4061_v43 = vld [vmem:[#allocation8 + $0xe0] sm:$0xff]  ;;  %v4062_v44 = vld [vmem:[#allocation8 + $0xe8] sm:$0xff] }
0x1bf0   :  { %v6124_v46 = vpack.c.bf16 %v4062_v44, %v4061_v43  ;;  %v4194_v6 = vld [vmem:[#allocation10 + $0x208] sm:$0xff]  ;;  %v4201_v43 = vld [vmem:[#allocation10 + $0x240] sm:$0xff] }
0x1bf1   :  { %v6434_v51 = vpop.eup %6433  ;;  %v3950_v48 = vmul.f32 1.442695, %v3949_v0  ;;  %6105 = vmatprep.subr.bf16.mxu0 %v6104_v22  ;;  %v4205_v44 = vld [vmem:[#allocation10 + $0x260] sm:$0xff] }
0x1bf2   :  { %v3283_v55 = vpop.permute.xlu1 %3282  ;;  %v3456_v57 = vsel %vm488_vm2, %v6434_v51, 0.0 }
0x1bf3   :  { %6439 = vpow2.f32 %v3950_v48  ;;  %3457 = vadd.xlane.f32.xlu1 %v3456_v57  ;;  %5663 = vmatpush3.msra.mxu1 %v3283_v55  ;;  %v4063_v48 = vld [vmem:[#allocation8 + $0xf0] sm:$0xff]  ;;  %v4064_v55 = vld [vmem:[#allocation8 + $0xf8] sm:$0xff] }
0x1bf4   :  { %5672 = vmatprep.subr.mxu1 %v6659_v47  ;;  %6107 = vmatpush3.bf16.msra.mxu0 %v6104_v22  ;;  %v6128_v57 = vpack.c.bf16 %v4064_v55, %v4063_v48  ;;  %v4198_v22 = vld [vmem:[#allocation10 + $0x228] sm:$0xff] }
0x1bf5   :  { %v6436_v58 = vpop.eup %6435  ;;  %6109 = vmatprep.subr.bf16.mxu0 %v6108_v27  ;;  %v6132_v36 = vpack.c.bf16 %v4198_v22, %v4194_v6  ;;  %v4210_v48 = vld [vmem:[#allocation10 + $0x288] sm:$0xff]  ;;  %v4228_v22 = vld [vmem:[#allocation10 + $0x318] sm:$0xff] }
0x1bf6   :  { %v3619_v59 = vsel %vm488_vm2, %v6436_v58, 0.0  ;;  %v4214_v55 = vld [vmem:[#allocation10 + $0x2a8] sm:$0xff] }
0x1bf7   :  { %3620 = vadd.xlane.f32.xlu0 %v3619_v59  ;;  %v4230_v6 = vld [vmem:[#allocation10 + $0x328] sm:$0xff] }
0x1bf8   :  { %6111 = vmatpush3.bf16.msra.mxu0 %v6108_v27  ;;  %v4200_v27 = vld [vmem:[#allocation10 + $0x238] sm:$0xff] }
0x1bf9   :  { %v6438_v62 = vpop.eup %6437  ;;  %6113 = vmatprep.subr.bf16.mxu0 %v6112_v29 }
0x1bfa   :  { %v3786_v50 = vsel %vm488_vm2, %v6438_v62, 0.0 }
0x1bfb   :  { %3787 = vadd.xlane.f32.xlu1 %v3786_v50 }
0x1bfc   :  { %6115 = vmatpush3.bf16.msra.mxu0 %v6112_v29  ;;  %v6164_v29 = vpack.c.bf16 %v4200_v27, %v4196_v23  ;;  %v4225_v27 = vld [vmem:[#allocation10 + $0x300] sm:$0xff] }
0x1bfd   :  { %v6440_v53 = vpop.eup %6439  ;;  %6117 = vmatprep.subr.bf16.mxu0 %v6116_v33 }
0x1bfe   :  { %v3952_v61 = vsel %vm488_vm2, %v6440_v53, 0.0 }
0x1bff   :  { %3953 = vadd.xlane.f32.xlu0 %v3952_v61 }
0x1c00   :  { %6119 = vmatpush3.bf16.msra.mxu0 %v6116_v33  ;;  %v4199_v33 = vld [vmem:[#allocation10 + $0x230] sm:$0xff] }
0x1c01   :  { %6121 = vmatprep.subr.bf16.mxu0 %v6120_v41  ;;  %v6166_v39 = vpack.c.bf16 %v4199_v33, %v4195_v32  ;;  %v4231_v32 = vld [vmem:[#allocation10 + $0x330] sm:$0xff] }
0x1c04   :  { %6123 = vmatpush3.bf16.msra.mxu0 %v6120_v41  ;;  %v4206_v41 = vld [vmem:[#allocation10 + $0x268] sm:$0xff] }
0x1c05   :  { %6125 = vmatprep.subr.bf16.mxu0 %v6124_v46 }
0x1c08   :  { %6127 = vmatpush3.bf16.msra.mxu0 %v6124_v46  ;;  %v4203_v46 = vld [vmem:[#allocation10 + $0x250] sm:$0xff] }
0x1c09   :  { %6129 = vmatprep.subr.bf16.mxu0 %v6128_v57 }
0x1c0c   :  { %3791 = vrot.lane.b32.xlu1 %v7177_v63, %s6662_s20  ;;  %6131 = vmatpush3.bf16.msra.mxu0 %v6128_v57 }
0x1c0d   :  { %6165 = vmatprep.subr.bf16.mxu0 %v6164_v29  ;;  %v6150_v29 = vpack.c.bf16 %v4229_v35, %v4225_v27 }
0x1c10   :  { %3957 = vrot.lane.b32.xlu1 %v7177_v63, %s6657_s27 }
0x1c15   :  { %3625 = vrot.lane.b32.xlu0 %v7177_v63, %s6661_s19 }
0x1c7c   :  { %v3279_v52 = vpop.xlane.xlu0 %3278 }
0x1c7d   :  { %6441 = vrcp.f32 %v3279_v52 }
0x1c80   :  { %v3458_v1 = vpop.xlane.xlu1 %3457 }
0x1c81   :  { %6443 = vrcp.f32 %v3458_v1 }
0x1c84   :  { %v3621_v8 = vpop.xlane.xlu0 %3620 }
0x1c85   :  { %6445 = vrcp.f32 %v3621_v8 }
0x1c87   :  { %v6442_v3 = vpop.eup %6441 }
0x1c88   :  { %v3281_v26 = vmul.f32 %v6442_v3, %v6432_v42  ;;  %v3788_v9 = vpop.xlane.xlu1 %3787 }
0x1c89   :  { %6447 = vrcp.f32 %v3788_v9 }
0x1c8a   :  { %5665 = vmatmul.mubr.msk.f32.vlgmr.msra.gmra.mrb[38].mxu1 %vm488_vm2, %v3281_v26 }
0x1c8b   :  { %v6444_v10 = vpop.eup %6443  ;;  %5673 = vmatpush3.msra.mxu1 %v7177_v63  ;;  %5674 = vmatprep.mubr.msk.f32.mxu1 %vm6660_vm0, %v6659_v47 }
0x1c8c   :  { %v3460_v13 = vmul.f32 %v6444_v10, %v6434_v51  ;;  %v3954_v11 = vpop.xlane.xlu0 %3953  ;;  %5682 = vmatprep.subr.mxu1 %v6659_v47  ;;  %v3792_v12 = vpop.permute.xlu1 %3791 }
0x1c8d   :  { %6449 = vrcp.f32 %v3954_v11 }
0x1c8e   :  { %5675 = vmatmul.mubr.msk.f32.vlgmr.msra.gmra.mrb[40].mxu1 %vm488_vm2, %v3460_v13 }
0x1c8f   :  { %v6446_v54 = vpop.eup %6445  ;;  %5684 = vmatprep.mubr.msk.f32.mxu1 %vm6660_vm0, %v6659_v47 }
0x1c90   :  { %v3623_v7 = vmul.f32 %v6446_v54, %v6436_v58  ;;  %v3626_v60 = vpop.permute.xlu0 %3625  ;;  %v3958_v16 = vpop.permute.xlu1 %3957 }
0x1c91   :  { %5683 = vmatpush3.msra.mxu1 %v3626_v60 }
0x1c92   :  { %5685 = vmatmul.mubr.msk.f32.vlgmr.msra.gmra.mrb[42].mxu1 %vm488_vm2, %v3623_v7  ;;  %5692 = vmatprep.subr.mxu1 %v6659_v47 }
0x1c93   :  { %v6448_v63 = vpop.eup %6447  ;;  %5693 = vmatpush3.msra.mxu1 %v3792_v12  ;;  %5694 = vmatprep.mubr.msk.f32.mxu1 %vm6660_vm0, %v6659_v47 }
0x1c94   :  { %v3790_v14 = vmul.f32 %v6448_v63, %v6438_v62  ;;  %5702 = vmatprep.subr.mxu1 %v6659_v47 }
0x1c96   :  { %5695 = vmatmul.mubr.msk.f32.vlgmr.msra.gmra.mrb[44].mxu1 %vm488_vm2, %v3790_v14 }
0x1c97   :  { %v6450_v17 = vpop.eup %6449  ;;  %5703 = vmatpush3.msra.mxu1 %v3958_v16  ;;  %5704 = vmatprep.mubr.msk.f32.mxu1 %vm6660_vm0, %v6659_v47 }
0x1c98   :  { %v3956_v18 = vmul.f32 %v6450_v17, %v6440_v53  ;;  %v5104_v17 = vld [vmem:[%s7541_s7 + $0x1] ss:$0 sm:$0xff]  ;;  %6133 = vmatprep.subr.bf16.mxu1 %v6132_v36  ;;  %v4232_v36 = vld [vmem:[#allocation10 + $0x338] sm:$0xff] }
0x1c99   :  { %v6180_v28 = vpack.c.bf16 %v4232_v36, %v4228_v22  ;;  %v5108_v22 = vld [vmem:[%s7543_s9 + $0x1] ss:$0 sm:$0xff] }
0x1c9a   :  { %5705 = vmatmul.mubr.msk.f32.vlgmr.msra.gmra.mrb[46].mxu1 %vm488_vm2, %v3956_v18 }
0x1c9b   :  { %4344 = vmatprep.mubr.f32.mxu1 %v6659_v47  ;;  %6135 = vmatpush1.bf16.msra.mxu1 %v6134_v30  ;;  %v4227_v30 = vld [vmem:[#allocation10 + $0x310] sm:$0xff] }
0x1c9c   :  { %v6182_v33 = vpack.c.bf16 %v4231_v32, %v4227_v30  ;;  %v4524_v30 = vld [vmem:[#allocation11 + $0x288] sm:$0xff]  ;;  %v4555_v32 = vld [vmem:[#allocation11 + $0x380] sm:$0xff] }
0x1d5d   :  { %v3354_v2 = vpop.f32.mrb[38].mxu1 }
0x1d5e   :  { %v5666_v42 = vpop.f32.mrb[39].mxu1 }
0x1d61   :  { %v3530_v0 = vpop.f32.mrb[40].mxu1 }
0x1d62   :  { %v5676_v51 = vpop.f32.mrb[41].mxu1 }
0x1d63   :  { %v4207_v51 = vld [vmem:[#allocation10 + $0x270] sm:$0xff] }
0x1d64   :  { %v6170_v57 = vpack.c.bf16 %v4207_v51, %v4203_v46  ;;  %v4235_v46 = vld [vmem:[#allocation10 + $0x350] sm:$0xff]  ;;  %v4242_v51 = vld [vmem:[#allocation10 + $0x388] sm:$0xff] }
0x1d65   :  { %v3697_v58 = vpop.f32.mrb[42].mxu1 }
0x1d66   :  { %v6344_v59 = vpack.i.bf16 %v3697_v58, %v7218_v31  ;;  %v5686_v62 = vpop.f32.mrb[43].mxu1  ;;  %v6140_v58 = vpack.c.bf16 %v4214_v55, %v4210_v48  ;;  %v4246_v55 = vld [vmem:[#allocation10 + $0x3a8] sm:$0xff] }
0x1d67   :  { %v4216_v62 = vld [vmem:[#allocation10 + $0x2b8] sm:$0xff] }
0x1d68   :  { %6345 = vrot.lane.b32.xlu1 %v6344_v59, %s6657_s27  ;;  %v4212_v59 = vld [vmem:[#allocation10 + $0x298] sm:$0xff] }
0x1d69   :  { %v3863_v50 = vpop.f32.mrb[44].mxu1 }
0x1d6a   :  { %v6349_v53 = vpack.i.bf16 %v3863_v50, %v7264_v56  ;;  %v5696_v61 = vpop.f32.mrb[45].mxu1  ;;  %v4209_v50 = vld [vmem:[#allocation10 + $0x280] sm:$0xff] }
0x1d6b   :  { %v4213_v61 = vld [vmem:[#allocation10 + $0x2a0] sm:$0xff] }
0x1d6c   :  { %6350 = vrot.lane.b32.xlu0 %v6349_v53, %s6662_s20  ;;  %v6172_v53 = vpack.c.bf16 %v4216_v62, %v4212_v59  ;;  %v6156_v59 = vpack.c.bf16 %v4246_v55, %v4242_v51  ;;  %v4558_v51 = vld [vmem:[#allocation11 + $0x398] sm:$0xff] }
0x1d6d   :  { %v4029_v52 = vpop.f32.mrb[46].mxu1  ;;  %v4510_v55 = vld [vmem:[#allocation11 + $0x218] sm:$0xff] }
0x1d6e   :  { %v6354_v1 = vpack.i.bf16 %v4029_v52, %v3354_v2  ;;  %v5706_v8 = vpop.f32.mrb[47].mxu1  ;;  %v4208_v2 = vld [vmem:[#allocation10 + $0x278] sm:$0xff]  ;;  %v4211_v52 = vld [vmem:[#allocation10 + $0x290] sm:$0xff] }
0x1d6f   :  { %v6142_v8 = vpack.c.bf16 %v4213_v61, %v4209_v50  ;;  %v4241_v50 = vld [vmem:[#allocation10 + $0x380] sm:$0xff]  ;;  %v4243_v61 = vld [vmem:[#allocation10 + $0x390] sm:$0xff] }
0x1d70   :  { %6355 = vrot.lane.b32.xlu1 %v6354_v1, %s6661_s19  ;;  %v4215_v1 = vld [vmem:[#allocation10 + $0x2b0] sm:$0xff] }
0x1dda   :  { %v6346_v3 = vpop.permute.xlu1 %6345 }
0x1ddb   :  { %v6348_v9 = vunpack.i.h.bf16 %v6346_v3  ;;  %v6347_v10 = vunpack.i.l.bf16 %v6346_v3  ;;  %v6174_v3 = vpack.c.bf16 %v4215_v1, %v4211_v52  ;;  %v4247_v1 = vld [vmem:[#allocation10 + $0x3b0] sm:$0xff] }
0x1ddd   :  { %v4045_v54 = vsel %vm410_vm1, %v3530_v0, %v6348_v9  ;;  %v3370_v56 = vsel %vm410_vm1, %v7199_v15, %v6347_v10  ;;  %v6138_v0 = vpack.c.bf16 %v4205_v44, %v4201_v43 }
0x1dde   :  { %v6351_v26 = vpop.permute.xlu0 %6350 }
0x1ddf   :  { %v6353_v31 = vunpack.i.h.bf16 %v6351_v26  ;;  %v6352_v13 = vunpack.i.l.bf16 %v6351_v26 }
0x1de1   :  { %v3371_v60 = vsel %vm1085_vm3, %v3370_v56, %v6352_v13  ;;  %v4046_v63 = vsel %vm1085_vm3, %v4045_v54, %v6353_v31  ;;  %v4222_v56 = vld [vmem:[#allocation10 + $0x2e8] sm:$0xff] }
0x1de2   :  { %v6356_v11 = vpop.permute.xlu1 %6355 }
0x1de3   :  { %v6358_v7 = vunpack.i.h.bf16 %v6356_v11  ;;  %v6357_v12 = vunpack.i.l.bf16 %v6356_v11 }
0x1de5   :  { %v3372_v14 = vsel %vm1087_vm4, %v3371_v60, %v6357_v12  ;;  %v4047_v16 = vsel %vm1087_vm4, %v4046_v63, %v6358_v7  ;;  %v4218_v12 = vld [vmem:[#allocation10 + $0x2c8] sm:$0xff]  ;;  %v4220_v60 = vld [vmem:[#allocation10 + $0x2d8] sm:$0xff] }
0x1de6   :  { %5739 = vmatprep.mubr.f32.mxu0 %v3372_v14  ;;  %v6144_v63 = vpack.c.bf16 %v4222_v56, %v4218_v12  ;;  %v4224_v14 = vld [vmem:[#allocation10 + $0x2f8] sm:$0xff]  ;;  %v4253_v12 = vld [vmem:[#allocation10 + $0x3e0] sm:$0xff]  ;;  %v4251_v56 = vld [vmem:[#allocation10 + $0x3d0] sm:$0xff] }
0x1de7   :  { %5740 = vmatmul.mubr.f32.vlgmr.msra.gmra.mrb[46].mxu0 %v4047_v16  ;;  %v4217_v16 = vld [vmem:[#allocation10 + $0x2c0] sm:$0xff] }
0x1de8   :  { %4421 = vmatprep.mubr.f32.mxu0 %v6659_v47  ;;  %6167 = vmatpush1.bf16.msra.mxu0 %v6166_v39  ;;  %v4238_v39 = vld [vmem:[#allocation10 + $0x368] sm:$0xff] }
0x1eba   :  { %v5741_v18 = vpop.f32.mrb[46].mxu0 }
0x1ebb   :  { %v4145_v19 = vadd.f32 %v5741_v18, %v5104_v17  ;;  %v4139_v5 = vpop.f32.mrb[47].mxu0  ;;  %v6176_v18 = vpack.c.bf16 %v4224_v14, %v4220_v60  ;;  %v4255_v60 = vld [vmem:[#allocation10 + $0x3f0] sm:$0xff] }
0x1ebc   :  { %v4140_v15 = vadd.f32 %v5104_v17, %v4139_v5  ;;  %v4221_v17 = vld [vmem:[#allocation10 + $0x2e0] sm:$0xff]  ;;  %v4219_v5 = vld [vmem:[#allocation10 + $0x2d0] sm:$0xff]  ;;  %v6194_v14 = vpack.c.bf16 %v4255_v60, %v4251_v56  ;;  %v4530_v56 = vld [vmem:[#allocation11 + $0x2b8] sm:$0xff] }
0x1ebd   :  { %v4149_v21 = vadd.f32 %v4145_v19, %v7144_v45  ;;  %v4204_v45 = vld [vmem:[#allocation10 + $0x258] sm:$0xff]  ;;  %v6146_v19 = vpack.c.bf16 %v4221_v17, %v4217_v16  ;;  %v4561_v60 = vld [vmem:[#allocation11 + $0x3b0] sm:$0xff] }
0x1ebe   :  { %v4148_v49 = vadd.f32 %v4140_v15, %v7138_v20  ;;  %v6136_v20 = vpack.c.bf16 %v4206_v41, %v4202_v34  ;;  %v6168_v42 = vpack.c.bf16 %v4208_v2, %v4204_v45  ;;  %v4223_v15 = vld [vmem:[#allocation10 + $0x2f0] sm:$0xff]  ;;  %v4234_v34 = vld [vmem:[#allocation10 + $0x348] sm:$0xff]  ;;  %v4236_v41 = vld [vmem:[#allocation10 + $0x358] sm:$0xff] }
0x1ebf   :  { %4156 = vadd.xlane.f32.xlu1 %v4149_v21  ;;  %v6152_v45 = vpack.c.bf16 %v4238_v39, %v4234_v34  ;;  %v4240_v2 = vld [vmem:[#allocation10 + $0x378] sm:$0xff]  ;;  %v4507_v34 = vld [vmem:[#allocation11 + $0x200] sm:$0xff]  ;;  %v4508_v39 = vld [vmem:[#allocation11 + $0x208] sm:$0xff] }
0x1ec0   :  { %4154 = vadd.xlane.f32.xlu0 %v4148_v49  ;;  %6137 = vmatprep.subr.bf16.mxu1 %v6136_v20  ;;  %v4233_v20 = vld [vmem:[#allocation10 + $0x340] sm:$0xff]  ;;  %v6184_v43 = vpack.c.bf16 %v4240_v2, %v4236_v41 }
0x1ec1   :  { %6169 = vmatprep.subr.bf16.mxu0 %v6168_v42  ;;  %6139 = vmatpush1.bf16.msra.mxu1 %v6138_v0  ;;  %v4237_v42 = vld [vmem:[#allocation10 + $0x360] sm:$0xff]  ;;  %v4239_v0 = vld [vmem:[#allocation10 + $0x370] sm:$0xff] }
0x1ec2   :  { %6171 = vmatpush1.bf16.msra.mxu0 %v6170_v57  ;;  %6141 = vmatprep.subr.bf16.mxu1 %v6140_v58  ;;  %v6154_v44 = vpack.c.bf16 %v4237_v42, %v4233_v20  ;;  %v6186_v48 = vpack.c.bf16 %v4239_v0, %v4235_v46  ;;  %v4244_v57 = vld [vmem:[#allocation10 + $0x398] sm:$0xff]  ;;  %v4539_v2 = vld [vmem:[#allocation11 + $0x300] sm:$0xff]  ;;  %v4540_v20 = vld [vmem:[#allocation11 + $0x308] sm:$0xff] }
0x1ec3   :  { %6173 = vmatprep.subr.bf16.mxu0 %v6172_v53  ;;  %v4248_v58 = vld [vmem:[#allocation10 + $0x3b8] sm:$0xff]  ;;  %v4245_v53 = vld [vmem:[#allocation10 + $0x3a0] sm:$0xff]  ;;  %v6230_v42 = vpack.c.bf16 %v4540_v20, %v4539_v2  ;;  %v4557_v46 = vld [vmem:[#allocation11 + $0x390] sm:$0xff] }
0x1ec4   :  { %v6188_v62 = vpack.c.bf16 %v4248_v58, %v4244_v57  ;;  %v6158_v52 = vpack.c.bf16 %v4245_v53, %v4241_v50  ;;  %v6232_v57 = vpack.c.bf16 %v4558_v51, %v4557_v46  ;;  %v4527_v53 = vld [vmem:[#allocation11 + $0x2a0] sm:$0xff]  ;;  %v4566_v2 = vld [vmem:[#allocation11 + $0x3d8] sm:$0xff]  ;;  %v4517_v20 = vld [vmem:[#allocation11 + $0x250] sm:$0xff] }
0x1ec5   :  { %6143 = vmatpush1.bf16.msra.mxu1 %v6142_v8  ;;  %v4250_v8 = vld [vmem:[#allocation10 + $0x3c8] sm:$0xff]  ;;  %v4549_v46 = vld [vmem:[#allocation11 + $0x350] sm:$0xff] }
0x1ec6   :  { %6175 = vmatpush1.bf16.msra.mxu0 %v6174_v3  ;;  %6145 = vmatprep.subr.bf16.mxu1 %v6144_v63  ;;  %v4254_v3 = vld [vmem:[#allocation10 + $0x3e8] sm:$0xff] }
0x1ec7   :  { %6177 = vmatprep.subr.bf16.mxu0 %v6176_v18 }
0x1ec9   :  { %6147 = vmatpush1.bf16.msra.mxu1 %v6146_v19 }
0x1f4c   :  { %v4157_v26 = vpop.xlane.xlu1 %4156 }
0x1f4d   :  { %v4155_v9 = vpop.xlane.xlu0 %4154  ;;  %v4159_v10 = vmul.f32 0.0078125, %v4157_v26  ;;  %v6190_v26 = vpack.c.bf16 %v4247_v1, %v4243_v61  ;;  %v4528_v61 = vld [vmem:[#allocation11 + $0x2a8] sm:$0xff] }
0x1f4e   :  { %v4158_v31 = vmul.f32 0.0078125, %v4155_v9  ;;  %v6160_v9 = vpack.c.bf16 %v4254_v3, %v4250_v8  ;;  %v6204_v1 = vpack.c.bf16 %v4528_v61, %v4527_v53  ;;  %v4560_v8 = vld [vmem:[#allocation11 + $0x3a8] sm:$0xff]  ;;  %v4511_v3 = vld [vmem:[#allocation11 + $0x220] sm:$0xff] }
0x1f4f   :  { %v7323_v11 = vsub.f32 %v4149_v21, %v4159_v10  ;;  %v6178_v21 = vpack.c.bf16 %v4223_v15, %v4219_v5  ;;  %v4252_v10 = vld [vmem:[#allocation10 + $0x3d8] sm:$0xff] }
0x1f50   :  { %v7321_v13 = vsub.f32 %v4148_v49, %v4158_v31  ;;  %v4226_v49 = vld [vmem:[#allocation10 + $0x308] sm:$0xff]  ;;  %v4256_v31 = vld [vmem:[#allocation10 + $0x3f8] sm:$0xff] }
0x1f51   :  { %v4163_v7 = vmul.f32 %v7323_v11, %v7323_v11  ;;  %6179 = vmatpush1.bf16.msra.mxu0 %v6178_v21  ;;  %v6148_v23 = vpack.c.bf16 %v4230_v6, %v4226_v49  ;;  %v5107_v49 = vld [vmem:[%s7542_s8 + $0x1] ss:$0 sm:$0xff] }
0x1f52   :  { %v4162_v54 = vmul.f32 %v7321_v13, %v7321_v13  ;;  %6181 = vmatprep.subr.bf16.mxu0 %v6180_v28 }
0x1f53   :  { %6149 = vmatprep.subr.bf16.mxu1 %v6148_v23 }
0x1f54   :  { %4164 = vadd.xlane.f32.xlu0 %v4162_v54  ;;  %6151 = vmatpush1.bf16.msra.mxu1 %v6150_v29  ;;  %v4249_v54 = vld [vmem:[#allocation10 + $0x3c0] sm:$0xff] }
0x1f55   :  { %6183 = vmatpush1.bf16.msra.mxu0 %v6182_v33  ;;  %6153 = vmatprep.subr.bf16.mxu1 %v6152_v45  ;;  %v6162_v63 = vpack.c.bf16 %v4253_v12, %v4249_v54  ;;  %v4523_v29 = vld [vmem:[#allocation11 + $0x280] sm:$0xff]  ;;  %v6198_v45 = vpack.c.bf16 %v4508_v39, %v4507_v34  ;;  %v4544_v54 = vld [vmem:[#allocation11 + $0x328] sm:$0xff]  ;;  %v4529_v12 = vld [vmem:[#allocation11 + $0x2b0] sm:$0xff] }
0x1f56   :  { %6185 = vmatprep.subr.bf16.mxu0 %v6184_v43  ;;  %v6196_v33 = vpack.c.bf16 %v4524_v30, %v4523_v29  ;;  %v4525_v43 = vld [vmem:[#allocation11 + $0x290] sm:$0xff]  ;;  %v4534_v39 = vld [vmem:[#allocation11 + $0x2d8] sm:$0xff] }
0x1f57   :  { %v4533_v34 = vld [vmem:[#allocation11 + $0x2d0] sm:$0xff] }
0x1f58   :  { %4166 = vadd.xlane.f32.xlu0 %v4163_v7  ;;  %6155 = vmatpush1.bf16.msra.mxu1 %v6154_v44  ;;  %v6192_v7 = vpack.c.bf16 %v4256_v31, %v4252_v10  ;;  %v4526_v44 = vld [vmem:[#allocation11 + $0x298] sm:$0xff]  ;;  %v4543_v31 = vld [vmem:[#allocation11 + $0x320] sm:$0xff] }
0x1f59   :  { %6187 = vmatpush1.bf16.msra.mxu0 %v6186_v48  ;;  %6157 = vmatprep.subr.bf16.mxu1 %v6156_v59  ;;  %v6200_v0 = vpack.c.bf16 %v4526_v44, %v4525_v43  ;;  %v4509_v48 = vld [vmem:[#allocation11 + $0x210] sm:$0xff] }
0x1f5a   :  { %6189 = vmatprep.subr.bf16.mxu0 %v6188_v62  ;;  %v6202_v58 = vpack.c.bf16 %v4510_v55, %v4509_v48  ;;  %v4541_v59 = vld [vmem:[#allocation11 + $0x310] sm:$0xff]  ;;  %v4542_v62 = vld [vmem:[#allocation11 + $0x318] sm:$0xff]  ;;  %v4535_v48 = vld [vmem:[#allocation11 + $0x2e0] sm:$0xff] }
0x1f5b   :  { %v6234_v50 = vpack.c.bf16 %v4542_v62, %v4541_v59  ;;  %v4536_v55 = vld [vmem:[#allocation11 + $0x2e8] sm:$0xff]  ;;  %v4519_v62 = vld [vmem:[#allocation11 + $0x260] sm:$0xff] }
0x1f5c   :  { %6159 = vmatpush1.bf16.msra.mxu1 %v6158_v52  ;;  %v4559_v52 = vld [vmem:[#allocation11 + $0x3a0] sm:$0xff]  ;;  %v4568_v59 = vld [vmem:[#allocation11 + $0x3e8] sm:$0xff] }
0x1f5d   :  { %6191 = vmatpush1.bf16.msra.mxu0 %v6190_v26  ;;  %6161 = vmatprep.subr.bf16.mxu1 %v6160_v9  ;;  %v4512_v26 = vld [vmem:[#allocation11 + $0x228] sm:$0xff]  ;;  %v6236_v9 = vpack.c.bf16 %v4560_v8, %v4559_v52  ;;  %v4551_v52 = vld [vmem:[#allocation11 + $0x360] sm:$0xff] }
0x1f5e   :  { %6193 = vmatprep.subr.bf16.mxu0 %v6192_v7  ;;  %v6206_v10 = vpack.c.bf16 %v4512_v26, %v4511_v3  ;;  %v6238_v7 = vpack.c.bf16 %v4544_v54, %v4543_v31  ;;  %v4537_v3 = vld [vmem:[#allocation11 + $0x2f0] sm:$0xff]  ;;  %v4538_v26 = vld [vmem:[#allocation11 + $0x2f8] sm:$0xff] }
0x1f5f   :  { %v4570_v31 = vld [vmem:[#allocation11 + $0x3f8] sm:$0xff]  ;;  %v4521_v54 = vld [vmem:[#allocation11 + $0x270] sm:$0xff] }
0x1f60   :  { %6163 = vmatpush1.bf16.msra.mxu1 %v6162_v63  ;;  %v6208_v63 = vpack.c.bf16 %v4530_v56, %v4529_v12 }
0x1f61   :  { %6195 = vmatpush1.bf16.msra.mxu0 %v6194_v14  ;;  %6197 = vmatprep.subr.bf16.mxu1 %v6196_v33  ;;  %v4562_v14 = vld [vmem:[#allocation11 + $0x3b8] sm:$0xff]  ;;  %v4548_v33 = vld [vmem:[#allocation11 + $0x348] sm:$0xff] }
0x1fe1   :  { %v4165_v16 = vpop.xlane.xlu0 %4164 }
0x1fe2   :  { %v4168_v17 = vmul.f32 0.0078125, %v4165_v16  ;;  %v4513_v16 = vld [vmem:[#allocation11 + $0x230] sm:$0xff] }
0x1fe4   :  { %v4170_v18 = vadd.f32 1e-12, %v4168_v17  ;;  %v4514_v17 = vld [vmem:[#allocation11 + $0x238] sm:$0xff] }
0x1fe5   :  { %v4167_v19 = vpop.xlane.xlu0 %4166 }
0x1fe6   :  { %6451 = vrsqrt.f32 %v4170_v18  ;;  %v4169_v5 = vmul.f32 0.0078125, %v4167_v19  ;;  %v6240_v18 = vpack.c.bf16 %v4562_v14, %v4561_v60  ;;  %v6210_v19 = vpack.c.bf16 %v4514_v17, %v4513_v16  ;;  %v4553_v60 = vld [vmem:[#allocation11 + $0x370] sm:$0xff]  ;;  %v5109_v16 = vld [vmem:[%s7545_s11 + $0x4] sm:$0xf] }
0x1fe7   :  { %v4263_v17 = vrot.slane %v5109_v16, %v6900_v40 }
0x1fe8   :  { %v4171_v15 = vadd.f32 1e-12, %v4169_v5  ;;  %v4545_v5 = vld [vmem:[#allocation11 + $0x330] sm:$0xff] }
0x1fea   :  { %6453 = vrsqrt.f32 %v4171_v15  ;;  %v4546_v15 = vld [vmem:[#allocation11 + $0x338] sm:$0xff] }
0x1ff0   :  { %v6452_v21 = vpop.eup %6451 }
0x1ff1   :  { %v4174_v6 = vmul.f32 %v6452_v21, %v7321_v13  ;;  %v6242_v21 = vpack.c.bf16 %v4546_v15, %v4545_v5  ;;  %v4275_v5 = vrot.slane %v5109_v16, %v1984_v4 }
0x1ff3   :  { %v4182_v23 = vmul.f32 %v5107_v49, %v4174_v6  ;;  %v4532_v6 = vld [vmem:[#allocation11 + $0x2c8] sm:$0xff] }
0x1ff4   :  { %v6454_v36 = vpop.eup %6453 }
0x1ff5   :  { %v7336_v27 = vadd.f32 %v5108_v22, %v4182_v23  ;;  %v4175_v35 = vmul.f32 %v6454_v36, %v7323_v11  ;;  %v4556_v11 = vld [vmem:[#allocation11 + $0x388] sm:$0xff] }
0x1ff6   :  { %v6228_v41 = vpack.c.bf16 %v4556_v11, %v4555_v32  ;;  %v4564_v36 = vld [vmem:[#allocation11 + $0x3c8] sm:$0xff]  ;;  %v4547_v32 = vld [vmem:[#allocation11 + $0x340] sm:$0xff] }
0x1ff7   :  { %4345 = vmatmul.mubr.f32.vlgmr.msra.gmra.mrb[48].mxu1 %v7336_v27  ;;  %4422 = vmatmul.mubr.f32.vlgmr.msra.gmra.mrb[48].mxu0 %v7336_v27  ;;  %v4183_v28 = vmul.f32 %v5107_v49, %v4175_v35  ;;  %v4531_v49 = vld [vmem:[#allocation11 + $0x2c0] sm:$0xff]  ;;  %v6246_v11 = vpack.c.bf16 %v4548_v33, %v4547_v32 }
0x1ff8   :  { %4350 = vmatprep.mubr.f32.mxu1 %v6659_v47  ;;  %4427 = vmatprep.mubr.f32.mxu0 %v6659_v47  ;;  %v6212_v23 = vpack.c.bf16 %v4532_v6, %v4531_v49  ;;  %v4515_v35 = vld [vmem:[#allocation11 + $0x240] sm:$0xff] }
0x1ff9   :  { %v7343_v13 = vadd.f32 %v5108_v22, %v4183_v28  ;;  %6229 = vmatprep.subr.bf16.mxu0 %v6228_v41  ;;  %6199 = vmatpush3.bf16.msra.mxu1 %v6198_v45  ;;  %v4563_v22 = vld [vmem:[#allocation11 + $0x3c0] sm:$0xff]  ;;  %v4516_v28 = vld [vmem:[#allocation11 + $0x248] sm:$0xff]  ;;  %v4565_v41 = vld [vmem:[#allocation11 + $0x3d0] sm:$0xff]  ;;  %v6216_v45 = vpack.c.bf16 %v4534_v39, %v4533_v34 }
0x1ffa   :  { %6231 = vmatpush3.bf16.msra.mxu0 %v6230_v42  ;;  %6201 = vmatprep.subr.bf16.mxu1 %v6200_v0  ;;  %v6244_v29 = vpack.c.bf16 %v4564_v36, %v4563_v22  ;;  %v6214_v30 = vpack.c.bf16 %v4516_v28, %v4515_v35  ;;  %v4518_v42 = vld [vmem:[#allocation11 + $0x258] sm:$0xff]  ;;  %v6248_v43 = vpack.c.bf16 %v4566_v2, %v4565_v41 }
0x1ffb   :  { %4351 = vmatmul.mubr.f32.gmra.mrb[50].mxu1 %v7343_v13  ;;  %4428 = vmatmul.mubr.f32.gmra.mrb[50].mxu0 %v7343_v13  ;;  %v6218_v44 = vpack.c.bf16 %v4518_v42, %v4517_v20  ;;  %v4550_v0 = vld [vmem:[#allocation11 + $0x358] sm:$0xff] }
0x1ffc   :  { %6233 = vmatprep.subr.bf16.mxu0 %v6232_v57  ;;  %v6250_v51 = vpack.c.bf16 %v4550_v0, %v4549_v46  ;;  %v4567_v57 = vld [vmem:[#allocation11 + $0x3e0] sm:$0xff] }
0x1ffd   :  { %6203 = vmatpush3.bf16.msra.mxu1 %v6202_v58  ;;  %v6220_v58 = vpack.c.bf16 %v4536_v55, %v4535_v48  ;;  %v6252_v53 = vpack.c.bf16 %v4568_v59, %v4567_v57 }
0x1ffe   :  { %6235 = vmatpush3.bf16.msra.mxu0 %v6234_v50  ;;  %6205 = vmatprep.subr.bf16.mxu1 %v6204_v1  ;;  %v4520_v50 = vld [vmem:[#allocation11 + $0x268] sm:$0xff] }
0x1fff   :  { %6237 = vmatprep.subr.bf16.mxu0 %v6236_v9  ;;  %v6222_v61 = vpack.c.bf16 %v4520_v50, %v4519_v62  ;;  %v4552_v1 = vld [vmem:[#allocation11 + $0x368] sm:$0xff]  ;;  %v4569_v9 = vld [vmem:[#allocation11 + $0x3f0] sm:$0xff] }
0x2000   :  { %v6254_v8 = vpack.c.bf16 %v4552_v1, %v4551_v52  ;;  %v6256_v12 = vpack.c.bf16 %v4570_v31, %v4569_v9 }
0x2001   :  { %6207 = vmatpush3.bf16.msra.mxu1 %v6206_v10  ;;  %v6224_v10 = vpack.c.bf16 %v4538_v26, %v4537_v3 }
0x2002   :  { %6239 = vmatpush3.bf16.msra.mxu0 %v6238_v7  ;;  %6209 = vmatprep.subr.bf16.mxu1 %v6208_v63  ;;  %v4522_v7 = vld [vmem:[#allocation11 + $0x278] sm:$0xff] }
0x2003   :  { %6241 = vmatprep.subr.bf16.mxu0 %v6240_v18  ;;  %v6226_v56 = vpack.c.bf16 %v4522_v7, %v4521_v54  ;;  %v4554_v63 = vld [vmem:[#allocation11 + $0x378] sm:$0xff]  ;;  %v4271_v18 = vrot.slane %v5109_v16, %v6894_v38 }
0x2004   :  { %v6258_v14 = vpack.c.bf16 %v4554_v63, %v4553_v60 }
0x2005   :  { %6211 = vmatpush3.bf16.msra.mxu1 %v6210_v19  ;;  %v4267_v19 = vrot.slane %v5109_v16, %v6891_v37 }
0x2006   :  { %6243 = vmatpush3.bf16.msra.mxu0 %v6242_v21  ;;  %6213 = vmatprep.subr.bf16.mxu1 %v6212_v23 }
0x2007   :  { %6245 = vmatprep.subr.bf16.mxu0 %v6244_v29 }
0x2009   :  { %6215 = vmatpush3.bf16.msra.mxu1 %v6214_v30 }
0x200a   :  { %6247 = vmatpush3.bf16.msra.mxu0 %v6246_v11  ;;  %6217 = vmatprep.subr.bf16.mxu1 %v6216_v45 }
0x200b   :  { %6249 = vmatprep.subr.bf16.mxu0 %v6248_v43 }
0x200d   :  { %6219 = vmatpush3.bf16.msra.mxu1 %v6218_v44 }
0x200e   :  { %6251 = vmatpush3.bf16.msra.mxu0 %v6250_v51  ;;  %6221 = vmatprep.subr.bf16.mxu1 %v6220_v58 }
0x200f   :  { %6253 = vmatprep.subr.bf16.mxu0 %v6252_v53 }
0x2011   :  { %6223 = vmatpush3.bf16.msra.mxu1 %v6222_v61 }
0x2012   :  { %6255 = vmatpush3.bf16.msra.mxu0 %v6254_v8  ;;  %6225 = vmatprep.subr.bf16.mxu1 %v6224_v10 }
0x2013   :  { %6257 = vmatprep.subr.bf16.mxu0 %v6256_v12 }
0x2015   :  { %6227 = vmatpush3.bf16.msra.mxu1 %v6226_v56 }
0x2016   :  { %6259 = vmatpush3.bf16.msra.mxu0 %v6258_v14 }
0x20ca   :  { %v4346_v15 = vpop.f32.mrb[48].mxu1  ;;  %v4423_v21 = vpop.f32.mrb[48].mxu0 }
0x20cb   :  { %v7355_v49 = vadd.f32 %v4346_v15, %v4263_v17  ;;  %v7357_v6 = vadd.f32 %v4423_v21, %v4271_v18  ;;  %v4348_v22 = vpop.f32.mrb[49].mxu1  ;;  %v4425_v23 = vpop.f32.mrb[49].mxu0 }
0x20cc   :  { %v7359_v36 = vadd.f32 %v4348_v22, %v4267_v19  ;;  %v7361_v35 = vadd.f32 %v4425_v23, %v4275_v5 }
0x20cd   :  { %v4434_v38 = vmul.f32 %v7355_v49, %v7355_v49  ;;  %v4436_v37 = vmul.f32 %v7357_v6, %v7357_v6 }
0x20ce   :  { %v4435_v40 = vmul.f32 %v7359_v36, %v7359_v36  ;;  %v4437_v4 = vmul.f32 %v7361_v35, %v7361_v35  ;;  %v4352_v28 = vpop.f32.mrb[50].mxu1  ;;  %v4429_v29 = vpop.f32.mrb[50].mxu0 }
0x20cf   :  { %v4442_v30 = vmul.f32 %v4434_v38, %v7355_v49  ;;  %v4444_v32 = vmul.f32 %v4436_v37, %v7357_v6  ;;  %v7373_v33 = vadd.f32 %v4352_v28, %v4263_v17  ;;  %v7375_v11 = vadd.f32 %v4429_v29, %v4271_v18  ;;  %v4354_v34 = vpop.f32.mrb[51].mxu1  ;;  %v4431_v39 = vpop.f32.mrb[51].mxu0 }
0x20d0   :  { %v4443_v41 = vmul.f32 %v4435_v40, %v7359_v36  ;;  %v4445_v45 = vmul.f32 %v4437_v4, %v7361_v35  ;;  %v7379_v2 = vadd.f32 %v4354_v34, %v4267_v19  ;;  %v7381_v20 = vadd.f32 %v4431_v39, %v4275_v5 }
0x20d1   :  { %v4450_v42 = vmul.f32 0.044715, %v4442_v30  ;;  %v4452_v43 = vmul.f32 0.044715, %v4444_v32  ;;  %v4438_v44 = vmul.f32 %v7373_v33, %v7373_v33  ;;  %v4440_v46 = vmul.f32 %v7375_v11, %v7375_v11 }
0x20d2   :  { %v4451_v0 = vmul.f32 0.044715, %v4443_v41  ;;  %v4453_v51 = vmul.f32 0.044715, %v4445_v45  ;;  %v4439_v48 = vmul.f32 %v7379_v2, %v7379_v2  ;;  %v4441_v55 = vmul.f32 %v7381_v20, %v7381_v20 }
0x20d3   :  { %v4458_v57 = vadd.f32 %v4450_v42, %v7355_v49  ;;  %v4460_v58 = vadd.f32 %v4452_v43, %v7357_v6  ;;  %v4446_v59 = vmul.f32 %v4438_v44, %v7373_v33  ;;  %v4448_v62 = vmul.f32 %v4440_v46, %v7375_v11 }
0x20d4   :  { %v4459_v50 = vadd.f32 %v4451_v0, %v7359_v36  ;;  %v4461_v53 = vadd.f32 %v4453_v51, %v7361_v35  ;;  %v4447_v61 = vmul.f32 %v4439_v48, %v7379_v2  ;;  %v4449_v52 = vmul.f32 %v4441_v55, %v7381_v20 }
0x20d5   :  { %v4466_v1 = vmul.f32 0.7978846, %v4458_v57  ;;  %v4468_v8 = vmul.f32 0.7978846, %v4460_v58  ;;  %v4454_v3 = vmul.f32 0.044715, %v4446_v59 }
0x20d6   :  { %v4467_v26 = vmul.f32 0.7978846, %v4459_v50  ;;  %v4469_v9 = vmul.f32 0.7978846, %v4461_v53  ;;  %v4456_v10 = vmul.f32 0.044715, %v4448_v62 }
0x20d7   :  { %6455 = vtanh.f32 %v4466_v1  ;;  %v4462_v31 = vadd.f32 %v4454_v3, %v7373_v33  ;;  %v4455_v54 = vmul.f32 0.044715, %v4447_v61  ;;  %v4457_v7 = vmul.f32 0.044715, %v4449_v52 }
0x20d8   :  { %6457 = vtanh.f32 %v4468_v8  ;;  %v4464_v12 = vadd.f32 %v4456_v10, %v7375_v11 }
0x20d9   :  { %v4470_v56 = vmul.f32 0.7978846, %v4462_v31  ;;  %v4463_v60 = vadd.f32 %v4455_v54, %v7379_v2  ;;  %v4465_v63 = vadd.f32 %v4457_v7, %v7381_v20  ;;  %6459 = vtanh.f32 %v4467_v26  ;;  %v4778_v7 = vld [vmem:[%s7550_s16] sm:$0xff] }
0x20da   :  { %v4472_v14 = vmul.f32 0.7978846, %v4464_v12  ;;  %6461 = vtanh.f32 %v4469_v9  ;;  %v4779_v12 = vld [vmem:[%s7550_s16 + $0x8] sm:$0xff] }
0x20db   :  { %v4471_v16 = vmul.f32 0.7978846, %v4463_v60  ;;  %v4473_v17 = vmul.f32 0.7978846, %v4465_v63  ;;  %6463 = vtanh.f32 %v4470_v56  ;;  %v6663_v56 = vmov 0.0|0.0  }
0x20dc   :  { %6465 = vtanh.f32 %v4472_v14  ;;  %6260 = vmatprep.subr.bf16.mxu1 %v6663_v56  ;;  %v6261_v60 = vpack.c.bf16 %v4779_v12, %v4778_v7  ;;  %6284 = vmatprep.subr.bf16.mxu0 %v6663_v56  ;;  %v5115_v7 = vld [vmem:[%s7549_s15 + $0x1] ss:$0 sm:$0xff] }
0x20dd   :  { %6467 = vtanh.f32 %v4471_v16 }
0x20de   :  { %6469 = vtanh.f32 %v4473_v17 }
0x20e1   :  { %v6456_v18 = vpop.eup %6455 }
0x20e2   :  { %v6458_v19 = vpop.eup %6457  ;;  %v4482_v5 = vadd.f32 1.0, %v6456_v18 }
0x20e3   :  { %v6460_v15 = vpop.eup %6459  ;;  %v4484_v21 = vadd.f32 1.0, %v6458_v19 }
0x20e4   :  { %v6462_v22 = vpop.eup %6461  ;;  %v4483_v23 = vadd.f32 1.0, %v6460_v15  ;;  %v4490_v37 = vmul.f32 0.5, %v4482_v5  ;;  %v4780_v5 = vld [vmem:[%s7550_s16 + $0x10] sm:$0xff]  ;;  %v4781_v15 = vld [vmem:[%s7550_s16 + $0x18] sm:$0xff] }
0x20e5   :  { %v6464_v38 = vpop.eup %6463  ;;  %v4485_v40 = vadd.f32 1.0, %v6462_v22  ;;  %v4492_v28 = vmul.f32 0.5, %v4484_v21  ;;  %v6264_v21 = vpack.c.bf16 %v4781_v15, %v4780_v5  ;;  %v4782_v22 = vld [vmem:[%s7550_s16 + $0x20] sm:$0xff]  ;;  %v4887_v15 = vld [vmem:[#allocation13 + $0x78] sm:$0xff] }
0x20e6   :  { %v6466_v4 = vpop.eup %6465  ;;  %v4491_v29 = vmul.f32 0.5, %v4483_v23  ;;  %v4486_v30 = vadd.f32 1.0, %v6464_v38  ;;  %v4498_v43 = vmul.f32 %v4490_v37, %v7355_v49  ;;  %v4783_v23 = vld [vmem:[%s7550_s16 + $0x28] sm:$0xff]  ;;  %v4784_v37 = vld [vmem:[%s7550_s16 + $0x30] sm:$0xff] }
0x20e7   :  { %v6468_v32 = vpop.eup %6467  ;;  %v4493_v34 = vmul.f32 0.5, %v4485_v40  ;;  %v4488_v39 = vadd.f32 1.0, %v6466_v4  ;;  %v4500_v51 = vmul.f32 %v4492_v28, %v7357_v6  ;;  %v6267_v38 = vpack.c.bf16 %v4783_v23, %v4782_v22  ;;  %v4785_v40 = vld [vmem:[%s7550_s16 + $0x38] sm:$0xff]  ;;  %v4786_v28 = vld [vmem:[%s7550_s16 + $0x40] sm:$0xff] }
0x20e8   :  { %v6470_v41 = vpop.eup %6469  ;;  %v4499_v45 = vmul.f32 %v4491_v29, %v7359_v36  ;;  %v4487_v42 = vadd.f32 1.0, %v6468_v32  ;;  %v4494_v0 = vmul.f32 0.5, %v4486_v30  ;;  %v6270_v4 = vpack.c.bf16 %v4785_v40, %v4784_v37  ;;  %v4787_v29 = vld [vmem:[%s7550_s16 + $0x48] sm:$0xff]  ;;  %v4788_v32 = vld [vmem:[%s7550_s16 + $0x50] sm:$0xff]  ;;  %v5116_v22 = vld [vmem:[%s7551_s17] ss:$0 sm:$0xff] }
0x20e9   :  { %v4501_v44 = vmul.f32 %v4493_v34, %v7361_v35  ;;  %v4489_v46 = vadd.f32 1.0, %v6470_v41  ;;  %v4496_v55 = vmul.f32 0.5, %v4488_v39  ;;  %v6273_v30 = vpack.c.bf16 %v4787_v29, %v4786_v28  ;;  %v4789_v34 = vld [vmem:[%s7550_s16 + $0x58] sm:$0xff]  ;;  %v4790_v41 = vld [vmem:[%s7550_s16 + $0x60] sm:$0xff] }
0x20ea   :  { %4643 = vmatprep.mubr.f32.mxu1 %v4499_v45  ;;  %v4495_v48 = vmul.f32 0.5, %v4487_v42  ;;  %v4502_v59 = vmul.f32 %v4494_v0, %v7373_v33  ;;  %v6276_v39 = vpack.c.bf16 %v4789_v34, %v4788_v32  ;;  %v4791_v45 = vld [vmem:[%s7550_s16 + $0x68] sm:$0xff]  ;;  %v4792_v42 = vld [vmem:[%s7550_s16 + $0x70] sm:$0xff]  ;;  %v4872_v0 = vld [vmem:[#allocation13] sm:$0xff]  ;;  %v4982_v29 = vand.u32 127, %v243_v24 }
0x20eb   :  { %4718 = vmatprep.mubr.f32.mxu0 %v4501_v44  ;;  %4644 = vmatmul.mubr.f32.vlgmr.msra.gmra.mrb[52].mxu1 %v4498_v43  ;;  %v4497_v57 = vmul.f32 0.5, %v4489_v46  ;;  %v4504_v49 = vmul.f32 %v4496_v55, %v7375_v11  ;;  %v6279_v43 = vpack.c.bf16 %v4791_v45, %v4790_v41  ;;  %v4793_v44 = vld [vmem:[%s7550_s16 + $0x78] sm:$0xff]  ;;  %v5117_v32 = vld [vmem:[%s7576_s18] ss:$0 sm:$0xff] }
0x20ec   :  { %4719 = vmatmul.mubr.f32.vlgmr.msra.gmra.mrb[52].mxu0 %v4500_v51  ;;  %v4503_v58 = vmul.f32 %v4495_v48, %v7379_v2  ;;  %v5111_v2 = vld [vmem:[%s7547_s13 + $0x1] ss:$0 sm:$0xff]  ;;  %6262 = vmatpush3.bf16.msra.mxu1 %v6261_v60  ;;  %v6282_v46 = vpack.c.bf16 %v4793_v44, %v4792_v42  ;;  %v4873_v51 = vld [vmem:[#allocation13 + $0x8] sm:$0xff]  ;;  %v4874_v48 = vld [vmem:[#allocation13 + $0x10] sm:$0xff] }
0x20ed   :  { %v4505_v36 = vmul.f32 %v4497_v57, %v7381_v20  ;;  %6263 = vmatprep.subr.bf16.mxu1 %v6663_v56  ;;  %v6285_v55 = vpack.c.bf16 %v4873_v51, %v4872_v0  ;;  %v4875_v57 = vld [vmem:[#allocation13 + $0x18] sm:$0xff] }
0x20ee   :  { %4648 = vmatprep.mubr.f32.mxu1 %v4503_v58  ;;  %v6288_v58 = vpack.c.bf16 %v4875_v57, %v4874_v48 }
0x20ef   :  { %4723 = vmatprep.mubr.f32.mxu0 %v4505_v36  ;;  %4649 = vmatmul.mubr.f32.gmra.mrb[54].mxu1 %v4502_v59  ;;  %v4876_v36 = vld [vmem:[#allocation13 + $0x20] sm:$0xff]  ;;  %v4877_v59 = vld [vmem:[#allocation13 + $0x28] sm:$0xff] }
0x20f0   :  { %4724 = vmatmul.mubr.f32.gmra.mrb[54].mxu0 %v4504_v49  ;;  %5774 = vmatprep.mubr.msk.f32.mxu1 %vm6660_vm0, %v6659_v47  ;;  %v6291_v49 = vpack.c.bf16 %v4877_v59, %v4876_v36 }
0x20f1   :  { %5809 = vmatprep.mubr.msk.f32.mxu0 %vm6660_vm0, %v6659_v47  ;;  %6265 = vmatpush3.bf16.msra.mxu1 %v6264_v21 }
0x20f2   :  { %6266 = vmatprep.subr.bf16.mxu1 %v6663_v56  ;;  %6286 = vmatpush3.bf16.msra.mxu0 %v6285_v55 }
0x20f3   :  { %6287 = vmatprep.subr.bf16.mxu0 %v6663_v56 }
0x20f5   :  { %6268 = vmatpush3.bf16.msra.mxu1 %v6267_v38 }
0x20f6   :  { %6269 = vmatprep.subr.bf16.mxu1 %v6663_v56  ;;  %6289 = vmatpush3.bf16.msra.mxu0 %v6288_v58 }
0x20f7   :  { %6290 = vmatprep.subr.bf16.mxu0 %v6663_v56 }
0x20f9   :  { %6271 = vmatpush3.bf16.msra.mxu1 %v6270_v4  ;;  %v4985_v4 = vstv %s4984_s12 }
0x20fa   :  { %6272 = vmatprep.subr.bf16.mxu1 %v6663_v56  ;;  %6292 = vmatpush3.bf16.msra.mxu0 %v6291_v49  ;;  %v4986_v28 = vsel %vm4983_vm6, %v4985_v4, 0 }
0x20fb   :  { %6293 = vmatprep.subr.bf16.mxu0 %v6663_v56 }
0x20fd   :  { %6274 = vmatpush3.bf16.msra.mxu1 %v6273_v30 }
0x20fe   :  { %6275 = vmatprep.subr.bf16.mxu1 %v6663_v56 }
0x2101   :  { %6277 = vmatpush3.bf16.msra.mxu1 %v6276_v39 }
0x2102   :  { %6278 = vmatprep.subr.bf16.mxu1 %v6663_v56 }
0x2105   :  { %6280 = vmatpush3.bf16.msra.mxu1 %v6279_v43 }
0x2106   :  { %6281 = vmatprep.subr.bf16.mxu1 %v6663_v56 }
0x2109   :  { %6283 = vmatpush3.bf16.msra.mxu1 %v6282_v46 }
0x21be   :  { %v5364_v6 = vpop.f32.mrb[52].mxu1 }
0x21bf   :  { %v5402_v35 = vpop.f32.mrb[52].mxu0  ;;  %v5365_v20 = vpop.f32.mrb[53].mxu1 }
0x21c0   :  { %v5366_v33 = vadd.f32 %v5365_v20, %v5364_v6  ;;  %v5403_v62 = vpop.f32.mrb[53].mxu0  ;;  %v4878_v6 = vld [vmem:[#allocation13 + $0x30] sm:$0xff]  ;;  %v4880_v20 = vld [vmem:[#allocation13 + $0x40] sm:$0xff] }
0x21c1   :  { %v5404_v50 = vadd.f32 %v5403_v62, %v5402_v35  ;;  %v4879_v35 = vld [vmem:[#allocation13 + $0x38] sm:$0xff] }
0x21c2   :  { %v4646_v11 = vadd.f32 %v5366_v33, %v5111_v2  ;;  %v5367_v53 = vpop.f32.mrb[54].mxu1  ;;  %v4881_v33 = vld [vmem:[#allocation13 + $0x48] sm:$0xff] }
0x21c3   :  { %v5405_v61 = vpop.f32.mrb[54].mxu0  ;;  %v5368_v52 = vpop.f32.mrb[55].mxu1  ;;  %v6297_v62 = vpack.c.bf16 %v4881_v33, %v4880_v20 }
0x21c4   :  { %v4721_v1 = vadd.f32 %v5404_v50, %v4646_v11  ;;  %v5369_v8 = vadd.f32 %v5368_v52, %v5367_v53  ;;  %v5406_v3 = vpop.f32.mrb[55].mxu0 }
0x21c5   :  { %v5407_v26 = vadd.f32 %v5406_v3, %v5405_v61 }
0x21c6   :  { %v4651_v9 = vadd.f32 %v5369_v8, %v5111_v2  ;;  %v4729_v10 = vadd.f32 %v4721_v1, %v7336_v27  ;;  %v6294_v2 = vpack.c.bf16 %v4879_v35, %v4878_v6 }
0x21c8   :  { %v4726_v31 = vadd.f32 %v5407_v26, %v4651_v9  ;;  %4735 = vadd.xlane.f32.xlu1 %v4729_v10  ;;  %6295 = vmatpush3.bf16.msra.mxu0 %v6294_v2  ;;  %v5114_v9 = vld [vmem:[%s7548_s14 + $0x1] ss:$0 sm:$0xff] }
0x21c9   :  { %6296 = vmatprep.subr.bf16.mxu0 %v6663_v56 }
0x21ca   :  { %v4730_v54 = vadd.f32 %v4726_v31, %v7343_v13 }
0x21cc   :  { %4737 = vadd.xlane.f32.xlu0 %v4730_v54  ;;  %6298 = vmatpush3.bf16.msra.mxu0 %v6297_v62 }
0x21cd   :  { %6299 = vmatprep.subr.bf16.mxu0 %v6663_v56 }
0x2255   :  { %v4736_v27 = vpop.xlane.xlu1 %4735 }
0x2256   :  { %v4739_v13 = vmul.f32 0.0078125, %v4736_v27 }
0x2258   :  { %v7429_v63 = vsub.f32 %v4729_v10, %v4739_v13 }
0x2259   :  { %v4738_v14 = vpop.xlane.xlu0 %4737 }
0x225a   :  { %v4740_v16 = vmul.f32 0.0078125, %v4738_v14  ;;  %v4743_v17 = vmul.f32 %v7429_v63, %v7429_v63  ;;  %v4883_v14 = vld [vmem:[#allocation13 + $0x58] sm:$0xff] }
0x225c   :  { %v7433_v18 = vsub.f32 %v4730_v54, %v4740_v16  ;;  %4745 = vadd.xlane.f32.xlu1 %v4743_v17  ;;  %v4884_v17 = vld [vmem:[#allocation13 + $0x60] sm:$0xff] }
0x225e   :  { %v4744_v19 = vmul.f32 %v7433_v18, %v7433_v18 }
0x2260   :  { %4747 = vadd.xlane.f32.xlu0 %v4744_v19  ;;  %v4885_v19 = vld [vmem:[#allocation13 + $0x68] sm:$0xff] }
0x2261   :  { %v6303_v5 = vpack.c.bf16 %v4885_v19, %v4884_v17 }
0x22e9   :  { %v4746_v50 = vpop.xlane.xlu1 %4745 }
0x22ea   :  { %v4749_v11 = vmul.f32 0.0078125, %v4746_v50 }
0x22ec   :  { %v4751_v53 = vadd.f32 1e-12, %v4749_v11 }
0x22ed   :  { %v4748_v61 = vpop.xlane.xlu0 %4747 }
0x22ee   :  { %6471 = vrsqrt.f32 %v4751_v53  ;;  %v4750_v52 = vmul.f32 0.0078125, %v4748_v61 }
0x22f0   :  { %v4752_v1 = vadd.f32 1e-12, %v4750_v52 }
0x22f2   :  { %6473 = vrsqrt.f32 %v4752_v1 }
0x22f8   :  { %v6472_v8 = vpop.eup %6471 }
0x22f9   :  { %v4755_v3 = vmul.f32 %v6472_v8, %v7429_v63  ;;  %v4882_v63 = vld [vmem:[#allocation13 + $0x50] sm:$0xff] }
0x22fa   :  { %v6300_v16 = vpack.c.bf16 %v4883_v14, %v4882_v63 }
0x22fb   :  { %v4763_v31 = vmul.f32 %v5114_v9, %v4755_v3 }
0x22fc   :  { %v6474_v26 = vpop.eup %6473  ;;  %6301 = vmatpush3.bf16.msra.mxu0 %v6300_v16 }
0x22fd   :  { %v4756_v10 = vmul.f32 %v6474_v26, %v7433_v18  ;;  %v4771_v60 = vadd.f32 %v5115_v7, %v4763_v31  ;;  %6302 = vmatprep.subr.bf16.mxu0 %v6663_v56  ;;  %v4886_v18 = vld [vmem:[#allocation13 + $0x70] sm:$0xff] }
0x22fe   :  { %v6306_v21 = vpack.c.bf16 %v4887_v15, %v4886_v18 }
0x22ff   :  { %v4764_v54 = vmul.f32 %v5114_v9, %v4756_v10 }
0x2300   :  { %6304 = vmatpush3.bf16.msra.mxu0 %v6303_v5 }
0x2301   :  { %v4772_v12 = vadd.f32 %v5115_v7, %v4764_v54  ;;  %6305 = vmatprep.subr.bf16.mxu0 %v6663_v56  ;;  %v4989_v56 = vstv %s5118_s1 }
0x2302   :  { %v4990_v30 = vsel %vm4987_vm7, %v4989_v56, %v4986_v28 }
0x2303   :  { %v4774_v27 = vrot.slane %v4772_v12, 7  ;;  %vm4991_vm8 = vcmp.eq.s32.totalorder %v4982_v29, %v4990_v30 }
0x2304   :  { %6307 = vmatpush3.bf16.msra.mxu0 %v6306_v21  ;;  %v5119_v39 = vsel %vm4991_vm8, 1.0, %v6659_v47 }
0x2305   :  { %v4777_v13 = vsel %vm4776_vm5, %v4771_v60, %v4774_v27 }
0x2306   :  { %5775 = vmatmul.mubr.f32.vlgmr.msra.gmra.mrb[56].mxu1 %v4777_v13 }
0x23d9   :  { %v4867_v23 = vpop.f32.mrb[56].mxu1 }
0x23da   :  { %v4868_v38 = vadd.f32 %v5116_v22, %v4867_v23  ;;  %v5776_v37 = vpop.f32.mrb[57].mxu1 }
0x23dc   :  { %6475 = vtanh.f32 %v4868_v38 }
0x23e6   :  { %v6476_v40 = vpop.eup %6475 }
0x23e7   :  { %5810 = vmatmul.mubr.f32.vlgmr.msra.gmra.mrb[56].mxu0 %v6476_v40 }
0x24ba   :  { %v4961_v34 = vpop.f32.mrb[56].mxu0 }
0x24bb   :  { %v4962_v41 = vadd.f32 %v5117_v32, %v4961_v34  ;;  %v5811_v45 = vpop.f32.mrb[57].mxu0 }
0x24bd   :  { %4965 = vst [vmem:[#allocation14] sm:$0x3] %v4962_v41  ;;  %v4967_v42 = vsel %vm4966_vm9, %v4962_v41, -inf  ;;  %v4994_v43 = vmul.f32 %v5119_v39, %v4962_v41 }
0x24be   :  { %4968 = vmax.xlane.f32.xlu0 %v4967_v42 }
0x24bf   :  { %v4995_v25 = vsel %vm4966_vm9, %v4994_v43, 0.0 }
0x24c2   :  { %4996 = vadd.xlane.f32.xlu0 %v4995_v25 }
0x254b   :  { %v4969_v44 = vpop.xlane.xlu0 %4968 }
0x254c   :  { %v4970_v24 = vsub.f32 %v4962_v41, %v4969_v44 }
0x254e   :  { %v4971_v46 = vmul.f32 1.442695, %v4970_v24 }
0x254f   :  { %v4997_v58 = vpop.xlane.xlu0 %4996 }
0x2550   :  { %6477 = vpow2.f32 %v4971_v46 }
0x255a   :  { %v6478_v0 = vpop.eup %6477 }
0x255b   :  { %v4973_v51 = vsel %vm4966_vm9, %v6478_v0, 0.0 }
0x255c   :  { %4974 = vadd.xlane.f32.xlu1 %v4973_v51 }
0x25e9   :  { %v4975_v48 = vpop.xlane.xlu1 %4974 }
0x25ea   :  { %6479 = vlog2.f32 %v4975_v48 }
0x25f4   :  { %v6480_v55 = vpop.eup %6479 }
0x25f5   :  { %v4977_v57 = vmul.f32 0.6931472, %v6480_v55 }
0x25f7   :  { %v4978_v47 = vadd.f32 %v4977_v57, %v4969_v44 }
0x25f9   :  { %v4998_v36 = vsub.f32 %v4978_v47, %v4997_v58 }
0x25fb   :  { %v5000_v59 = vsel %vm4999_vm10, %v4998_v36, 0.0 }
0x25fc   :  { %5001 = vadd.xlane.f32.xlu1 %v5000_v59 }
0x25fd   :  { %6614 = shalt.err (!%p6611_p7)
}
0x25fe   :  { %s7577_s27 = sld [smem:[#allocation29_spill]] }
0x2604   :  { %s6615_s6 = scalar_lea.hbm %s7577_s27, 32 }
0x2605   :  { %p6616_p8 = scmp.ne.s32.totalorder %s7577_s27, %s6615_s6  ;;  %p6619_p9 = scmp.lt.u32.totalorder %s6615_s6, %s7577_s27 }
0x2607   :  { %p6621_p10 = pnand %p6619_p9, %p6616_p8 }
0x2609   :  { %6624 = shalt.err (!%p6621_p10)
}
0x260a   :  { %5024 = dma.vmem_to_hbm [thread:$0]  %s5022_s22, 32, %s7577_s27, [#allocation4]  }
0x260b   :  { %s7578_s26 = sld [smem:[#allocation30_spill]] }
0x2611   :  { %s6625_s3 = scalar_lea.hbm %s7578_s26, 16 }
0x2612   :  { %p6626_p11 = scmp.ne.s32.totalorder %s7578_s26, %s6625_s3  ;;  %p6629_p12 = scmp.lt.u32.totalorder %s6625_s3, %s7578_s26 }
0x2614   :  { %p6631_p13 = pnand %p6629_p12, %p6626_p11 }
0x2689   :  { %v5002_v49 = vpop.xlane.xlu1 %5001 }
0x268a   :  { %v5003_v6 = vrot.slane %v5002_v49, 4 }
0x268c   :  { %v5004_v35 = vadd.f32 %v5003_v6, %v5002_v49 }
0x268e   :  { %v5005_v2 = vrot.slane %v5004_v35, 2 }
0x2690   :  { %v5006_v20 = vadd.f32 %v5005_v2, %v5004_v35 }
0x2692   :  { %v5007_v33 = vrot.slane %v5006_v20, 1 }
0x2694   :  { %v5008_v62 = vadd.f32 %v5007_v33, %v5006_v20 }
0x2696   :  { %6308 = vpush %v5008_v62 }
0x26c7   :  { %s6309_s11 = spop %6308 }
0x26c8   :  { %s5012_s20 = smul.f32 0.5, %s6309_s11 }
0x26ca   :  { %5014 = sst [smem:[#allocation15]] %s5012_s20 }
0x26cb   :  { %6634 = shalt.err (!%p6631_p13)
}
0x26cc   :  { %s6665_s0 = smov [#allocation15]  }
0x26cd   :  { %5032 = dma.smem_to_hbm %s6665_s0, 16, %s7578_s26, [#allocation5]  }
0x26ce   :  { %6643 = dma.done.wait [#allocation4], 32  }
0x26cf   :  { %6644 = vsyncadd [#allocation4], 4294967264 }
0x26d0   :  { %6645 = dma.done.wait [#allocation5], 16  }
0x26d1   :  { %6646 = vsyncadd [#allocation5], 4294967280 }
0x26d2   :  { %5039 = sfence }
0x26d3   :  { %5040 = vsyncpa [#allocation3], 1 }
0x26d4   :  { %5041 = vsyncpa [#allocation9], 1 }
0x26d5   :  { %5042 = vsyncpa [#allocation12], 1 }
0x26d6   :  { %5043 = vsyncpa [#allocation4], 1 }
0x26d7   :  { %5044 = vsyncpa [#allocation5], 1 }
0x26d8   :  { %5045 = vsyncpa [#allocation6], 1 }

</bundles_post_ra>
